<compile_context>
chip_gen: v6e
topology: v6e:2x2x1
jax: 0.10.0
libtpu: 0.0.40
codegen_flags: <defaults>
</compile_context>

<pallas_src>
import jax
import jax.numpy as jnp
from jax.experimental import pallas as pl
from jax.experimental.pallas import tpu as pltpu

# ----------------------------- hyper params --------------------------------
H = 32            # h_size
D = 16            # feature_representation_size
NNF = 5           # num_node_feature (= length of the gru_combine sequence)
NUM_CLASSES = 2   # kept for fidelity (unused by the forward's output)
NUM_CONV = 3      # num_conv_layers
N_NODES = 8       # nodes per graph
T_SEQ = 6         # sequence length for feature_2..5
B_GRAPHS = 2      # batch of graphs
NUM_SEQ_GRU = 4   # gru_1 .. gru_4
DROPOUT = 0.5     # identity in eval mode


# ----------------------------- fused kernel ---------------------------------
def ivd_fused_kernel(
    x1_ref, xseq_ref, adj_ref,
    w_ioux_ref, b_iou_ref,
    wih_g_ref, whh_g_ref, bih_g_ref, bhh_g_ref,
    wih_cf_ref, whh_cf_ref, bih_cf_ref, bhh_cf_ref,
    wih_cb_ref, whh_cb_ref, bih_cb_ref, bhh_cb_ref,
    w_conn_ref, b_conn_ref,
    w_c0_ref, b_c0_ref, w_c1_ref, b_c1_ref, w_c2_ref, b_c2_ref,
    out_ref,
):
    """Entire IVDmodel forward for one graph (one grid step = one graph)."""
    f32 = jnp.float32
    n = x1_ref.shape[0]          # N nodes
    h = H
    g4 = NUM_SEQ_GRU * H         # 128: per-gate block width of the fused GRU

    # --- 1. ChildSumTreeLSTM, leaf path (child_c = child_h = 0) -> (N, H) ---
    iou = jnp.dot(x1_ref[...], w_ioux_ref[...],
                  preferred_element_type=f32) + b_iou_ref[...]
    i_g = jax.nn.sigmoid(iou[:, :h])
    o_g = jax.nn.sigmoid(iou[:, h:2 * h])
    u_g = jnp.tanh(iou[:, 2 * h:])
    h_tree = o_g * jnp.tanh(i_g * u_g)                         # (N, H)

    # --- 2. gru_1..gru_4 fused: block-diagonal, gate-major weights ----------
    # xseq_ref: (T*N, 4D).  Input projection hoisted out of the recurrence:
    gi_all = (jnp.dot(xseq_ref[...], wih_g_ref[...],
                      preferred_element_type=f32) + bih_g_ref[...])  # (T*N, 12H)
    h4 = jnp.zeros((n, NUM_SEQ_GRU * h), f32)                  # (N, 4H) = (8,128)
    for t in range(T_SEQ):                                     # static unroll
        gi = gi_all[t * n:(t + 1) * n, :]
        gh = (jnp.dot(h4, whh_g_ref[...], preferred_element_type=f32)
              + bhh_g_ref[...])
        r = jax.nn.sigmoid(gi[:, 0 * g4:1 * g4] + gh[:, 0 * g4:1 * g4])
        z = jax.nn.sigmoid(gi[:, 1 * g4:2 * g4] + gh[:, 1 * g4:2 * g4])
        c = jnp.tanh(gi[:, 2 * g4:3 * g4] + r * gh[:, 2 * g4:3 * g4])
        h4 = (1.0 - z) * c + z * h4

    # --- 3. stacked feature sequence (L=NNF steps, batch = nodes) -----------
    # torch order: [tree output, gru_1 last, gru_2 last, gru_3 last, gru_4 last]
    feat = jnp.concatenate(
        [h_tree] + [h4[:, k * h:(k + 1) * h] for k in range(NUM_SEQ_GRU)],
        axis=0)                                                # (L*N, H)

    # --- 4. bidirectional GRU (gru_combine): hoisted gi, unrolled L=5 -------
    gi_f = (jnp.dot(feat, wih_cf_ref[...], preferred_element_type=f32)
            + bih_cf_ref[...])                                 # (L*N, 3H)
    gi_b = (jnp.dot(feat, wih_cb_ref[...], preferred_element_type=f32)
            + bih_cb_ref[...])

    def gru_step(gi, hprev, whh, bhh):
        gh = jnp.dot(hprev, whh, preferred_element_type=f32) + bhh
        r = jax.nn.sigmoid(gi[:, :h] + gh[:, :h])
        z = jax.nn.sigmoid(gi[:, h:2 * h] + gh[:, h:2 * h])
        c = jnp.tanh(gi[:, 2 * h:] + r * gh[:, 2 * h:])
        return (1.0 - z) * c + z * hprev

    hf = jnp.zeros((n, h), f32)
    hb = jnp.zeros((n, h), f32)
    out_f = [None] * NNF
    out_b = [None] * NNF
    for s in range(NNF):                                       # static unroll
        hf = gru_step(gi_f[s * n:(s + 1) * n, :], hf,
                      whh_cf_ref[...], bhh_cf_ref[...])
        out_f[s] = hf
        tb = NNF - 1 - s
        hb = gru_step(gi_b[tb * n:(tb + 1) * n, :], hb,
                      whh_cb_ref[...], bhh_cb_ref[...])
        out_b[tb] = hb

    # --- 5. dropout (eval -> identity), flatten node-major, `connect` -------
    # matches torch.flatten((N, L, 2H), 1): per node [f0|b0|f1|b1|...|f4|b4]
    flat = jnp.concatenate(
        [jnp.concatenate([out_f[s], out_b[s]], axis=1) for s in range(NNF)],
        axis=1)                                                # (N, NNF*2H)
    fv = (jnp.dot(flat, w_conn_ref[...], preferred_element_type=f32)
          + b_conn_ref[...])                                   # (N, H)

    # --- 6. GCN stack (ReLU between) + global max pool + softmax ------------
    adj = adj_ref[...]
    convs = [(w_c0_ref, b_c0_ref), (w_c1_ref, b_c1_ref), (w_c2_ref, b_c2_ref)]
    for i_c, (w_ref, b_ref) in enumerate(convs):
        xw = jnp.dot(fv, w_ref[...], preferred_element_type=f32)
        fv = jnp.dot(adj, xw, preferred_element_type=f32) + b_ref[...]
        if i_c < NUM_CONV - 1:
            fv = jnp.maximum(fv, 0.0)

    pooled = jnp.max(fv, axis=0, keepdims=True)                # (1, NNF)
    m = jnp.max(pooled, axis=1, keepdims=True)
    e = jnp.exp(pooled - m)
    out_ref[...] = e / jnp.sum(e, axis=1, keepdims=True)


# ----------------------------- wrapper ---------------------------------------
def _batched_spec(shape):
    """Per-graph block (leading batch axis squeezed), selected by grid index."""
    ntrail = len(shape) - 1
    return pl.BlockSpec((None,) + tuple(shape[1:]),
                        lambda b, _n=ntrail: (b,) + (0,) * _n)


def _weight_spec(arr):
    """Full-array block with a constant index_map: DMA once, stays resident."""
    return pl.BlockSpec(arr.shape, lambda b: (0, 0))


def ivdetect_forward(x1_b, xseq_b, adj_b, weights):
    b_graphs = x1_b.shape[0]
    wlist = [
        weights["w_ioux"], weights["b_iou"],
        weights["wih_g"], weights["whh_g"], weights["bih_g"], weights["bhh_g"],
        weights["wih_cf"], weights["whh_cf"], weights["bih_cf"], weights["bhh_cf"],
        weights["wih_cb"], weights["whh_cb"], weights["bih_cb"], weights["bhh_cb"],
        weights["w_connect"], weights["b_connect"],
        weights["conv_w0"], weights["conv_b0"],
        weights["conv_w1"], weights["conv_b1"],
        weights["conv_w2"], weights["conv_b2"],
    ]
    in_specs = ([_batched_spec(x1_b.shape),
                 _batched_spec(xseq_b.shape),
                 _batched_spec(adj_b.shape)]
                + [_weight_spec(w) for w in wlist])
    out = pl.pallas_call(
        ivd_fused_kernel,
        out_shape=jax.ShapeDtypeStruct((b_graphs, 1, NNF), jnp.float32),
        grid=(b_graphs,),
        in_specs=in_specs,
        out_specs=pl.BlockSpec((None, 1, NNF), lambda b: (b, 0, 0)),
        compiler_params=pltpu.CompilerParams(
            dimension_semantics=("parallel",)),   # graphs split across TCs (v7x)
    )(x1_b, xseq_b, adj_b, *wlist)
    return out.reshape(b_graphs, NNF)


# ----------------------------- host-side glue --------------------------------
def build_norm_adj(edge_index, n):
    """Dense D^{-1/2}(A + I)D^{-1/2} as used by PyG GCNConv (A[dst, src] = 1)."""
    a = jnp.zeros((n, n), jnp.float32).at[edge_index[1], edge_index[0]].set(1.0)
    a = a + jnp.eye(n, dtype=jnp.float32)
    dinv = 1.0 / jnp.sqrt(a.sum(axis=1))
    return a * dinv[:, None] * dinv[None, :]


def fuse_feature_grus(grus):
    """Pack gru_1..gru_4 into block-diagonal, gate-major weights.

    Column layout of the fused 12H-wide output: [r-gate 4H | z-gate 4H | n-gate 4H],
    and inside each 4H(=128-lane) gate block, GRU k occupies columns k*H:(k+1)*H.
    """
    k_n = len(grus)
    wih = jnp.zeros((k_n * D, 3 * k_n * H), jnp.float32)
    whh = jnp.zeros((k_n * H, 3 * k_n * H), jnp.float32)
    bih = jnp.zeros((1, 3 * k_n * H), jnp.float32)
    bhh = jnp.zeros((1, 3 * k_n * H), jnp.float32)
    for k, p in enumerate(grus):
        for g in range(3):
            col = g * k_n * H + k * H
            wih = wih.at[k * D:(k + 1) * D, col:col + H].set(p["wih"][:, g * H:(g + 1) * H])
            whh = whh.at[k * H:(k + 1) * H, col:col + H].set(p["whh"][:, g * H:(g + 1) * H])
            bih = bih.at[:, col:col + H].set(p["bih"][:, g * H:(g + 1) * H])
            bhh = bhh.at[:, col:col + H].set(p["bhh"][:, g * H:(g + 1) * H])
    return wih, whh, bih, bhh


def reference_forward(x1_b, seqs, adj_b, feat_grus, gru_cf, gru_cb,
                      w_ioux, b_iou, w_connect, b_connect, conv_ws, conv_bs):
    """Pure-JAX, un-fused reference of the same forward (validates the fusion)."""
    def mm(a, b):
        return jnp.dot(a, b, precision=jax.lax.Precision.HIGHEST)

    def gru_cell(x_t, hh, p):
        gi = mm(x_t, p["wih"]) + p["bih"]
        gh = mm(hh, p["whh"]) + p["bhh"]
        r = jax.nn.sigmoid(gi[:, :H] + gh[:, :H])
        z = jax.nn.sigmoid(gi[:, H:2 * H] + gh[:, H:2 * H])
        c = jnp.tanh(gi[:, 2 * H:] + r * gh[:, 2 * H:])
        return (1.0 - z) * c + z * hh

    outs = []
    for b in range(x1_b.shape[0]):
        x1, adj = x1_b[b], adj_b[b]
        iou = mm(x1, w_ioux) + b_iou
        ii = jax.nn.sigmoid(iou[:, :H])
        oo = jax.nn.sigmoid(iou[:, H:2 * H])
        uu = jnp.tanh(iou[:, 2 * H:])
        feats = [oo * jnp.tanh(ii * uu)]
        for k, p in enumerate(feat_grus):
            hk = jnp.zeros((N_NODES, H), jnp.float32)
            for t in range(T_SEQ):
                hk = gru_cell(seqs[b, k][:, t, :], hk, p)
            feats.append(hk)
        hf = jnp.zeros((N_NODES, H), jnp.float32)
        hb = jnp.zeros((N_NODES, H), jnp.float32)
        out_f, out_b = [None] * NNF, [None] * NNF
        for s in range(NNF):
            hf = gru_cell(feats[s], hf, gru_cf)
            out_f[s] = hf
            tb = NNF - 1 - s
            hb = gru_cell(feats[tb], hb, gru_cb)
            out_b[tb] = hb
        flat = jnp.concatenate(
            [jnp.concatenate([out_f[s], out_b[s]], axis=1) for s in range(NNF)],
            axis=1)
        fv = mm(flat, w_connect) + b_connect
        for i_c, (w, bb) in enumerate(zip(conv_ws, conv_bs)):
            fv = mm(adj, mm(fv, w)) + bb
            if i_c < NUM_CONV - 1:
                fv = jnp.maximum(fv, 0.0)
        pooled = jnp.max(fv, axis=0, keepdims=True)
        outs.append(jax.nn.softmax(pooled, axis=1))
    return jnp.concatenate(outs, axis=0)


# ----------------------------- main ------------------------------------------
if __name__ == "__main__":
    key = jax.random.PRNGKey(0)
    kit = iter(jax.random.split(key, 128))

    def nxt():
        return next(kit)

    def unif(shape, fan_in):
        s = 1.0 / float(fan_in) ** 0.5
        return jax.random.uniform(nxt(), shape, jnp.float32, -s, s)

    # --- ChildSumTreeLSTM (leaf path) parameters ---
    w_ioux = unif((D, 3 * H), D)
    b_iou = unif((1, 3 * H), D) + unif((1, 3 * H), H)   # b_ioux + b_iouh
    # TODO(synk): the recursive host-side tree walk of ChildSumTreeLSTM (and its
    # fx/fh gates, only active for nodes with children) has no clean Pallas
    # equivalent; only the leaf node_forward (num_children == 0) is implemented.

    def gru_params(in_dim):
        return dict(wih=unif((in_dim, 3 * H), H), whh=unif((H, 3 * H), H),
                    bih=unif((1, 3 * H), H), bhh=unif((1, 3 * H), H))

    feat_grus = [gru_params(D) for _ in range(NUM_SEQ_GRU)]   # gru_1..gru_4
    gru_cf = gru_params(H)                                    # gru_combine fwd
    gru_cb = gru_params(H)                                    # gru_combine bwd

    w_connect = unif((NNF * 2 * H, H), NNF * 2 * H)
    b_connect = unif((1, H), NNF * 2 * H)
    conv_ws = [unif((H, H), H), unif((H, H), H), unif((H, NNF), H)]
    conv_bs = [unif((1, H), H), unif((1, H), H), unif((1, NNF), H)]

    # Fuse the four feature GRUs (done once, host side).
    wih_g, whh_g, bih_g, bhh_g = fuse_feature_grus(feat_grus)

    weights = dict(
        w_ioux=w_ioux, b_iou=b_iou,
        wih_g=wih_g, whh_g=whh_g, bih_g=bih_g, bhh_g=bhh_g,
        wih_cf=gru_cf["wih"], whh_cf=gru_cf["whh"],
        bih_cf=gru_cf["bih"], bhh_cf=gru_cf["bhh"],
        wih_cb=gru_cb["wih"], whh_cb=gru_cb["whh"],
        bih_cb=gru_cb["bih"], bhh_cb=gru_cb["bhh"],
        w_connect=w_connect, b_connect=b_connect,
        conv_w0=conv_ws[0], conv_b0=conv_bs[0],
        conv_w1=conv_ws[1], conv_b1=conv_bs[1],
        conv_w2=conv_ws[2], conv_b2=conv_bs[2],
    )

    # --- deterministic example inputs (B graphs, N nodes each) ---
    x1_b = jax.random.normal(nxt(), (B_GRAPHS, N_NODES, D), jnp.float32)
    seqs = jax.random.normal(
        nxt(), (B_GRAPHS, NUM_SEQ_GRU, N_NODES, T_SEQ, D), jnp.float32)
    # stage once: time-major, feature-stacked slab (B, T*N, 4D)
    xseq_b = jnp.transpose(seqs, (0, 3, 2, 1, 4)).reshape(
        B_GRAPHS, T_SEQ * N_NODES, NUM_SEQ_GRU * D)

    # ring-graph edges; precompute normalized adjacencies once for the batch
    src = jnp.arange(N_NODES)
    dst = (src + 1) % N_NODES
    edge_index = jnp.stack([jnp.concatenate([src, dst]),
                            jnp.concatenate([dst, src])])
    adj_b = jnp.stack([build_norm_adj(edge_index, N_NODES)
                       for _ in range(B_GRAPHS)])

    # --- fused forward pass (single pallas_call, grid over graphs) ---
    fwd = jax.jit(ivdetect_forward)
    result = fwd(x1_b, xseq_b, adj_b, weights)
    jax.block_until_ready(result)
    assert result.shape == (B_GRAPHS, NNF)

    # --- validate the fused kernel against the un-fused pure-JAX reference ---
    ref = reference_forward(x1_b, seqs, adj_b, feat_grus, gru_cf, gru_cb,
                            w_ioux, b_iou, w_connect, b_connect,
                            conv_ws, conv_bs)
    max_err = float(jnp.max(jnp.abs(result - ref)))
    assert max_err < 2e-3, f"kernel/reference mismatch: max abs err {max_err}"

    print("KERNEL_OK")
</pallas_src>

<mosaic_0001>
module attributes {stable_mosaic.version = 11 : i64} {
  func.func @ivd_fused_kernel(%arg0: i32, %arg1: memref<1x8x16xf32, #tpu.memory_space<vmem>>, %arg2: memref<1x48x64xf32, #tpu.memory_space<vmem>>, %arg3: memref<1x8x8xf32, #tpu.memory_space<vmem>>, %arg4: memref<16x96xf32, #tpu.memory_space<vmem>>, %arg5: memref<1x96xf32, #tpu.memory_space<vmem>>, %arg6: memref<64x384xf32, #tpu.memory_space<vmem>>, %arg7: memref<128x384xf32, #tpu.memory_space<vmem>>, %arg8: memref<1x384xf32, #tpu.memory_space<vmem>>, %arg9: memref<1x384xf32, #tpu.memory_space<vmem>>, %arg10: memref<32x96xf32, #tpu.memory_space<vmem>>, %arg11: memref<32x96xf32, #tpu.memory_space<vmem>>, %arg12: memref<1x96xf32, #tpu.memory_space<vmem>>, %arg13: memref<1x96xf32, #tpu.memory_space<vmem>>, %arg14: memref<32x96xf32, #tpu.memory_space<vmem>>, %arg15: memref<32x96xf32, #tpu.memory_space<vmem>>, %arg16: memref<1x96xf32, #tpu.memory_space<vmem>>, %arg17: memref<1x96xf32, #tpu.memory_space<vmem>>, %arg18: memref<320x32xf32, #tpu.memory_space<vmem>>, %arg19: memref<1x32xf32, #tpu.memory_space<vmem>>, %arg20: memref<32x32xf32, #tpu.memory_space<vmem>>, %arg21: memref<1x32xf32, #tpu.memory_space<vmem>>, %arg22: memref<32x32xf32, #tpu.memory_space<vmem>>, %arg23: memref<1x32xf32, #tpu.memory_space<vmem>>, %arg24: memref<32x5xf32, #tpu.memory_space<vmem>>, %arg25: memref<1x5xf32, #tpu.memory_space<vmem>>, %arg26: memref<1x1x5xf32, #tpu.memory_space<vmem>>) attributes {dimension_semantics = [#tpu.dimension_semantics<parallel>], iteration_bounds = array<i64: 2>, scalar_prefetch = 0 : i64, scratch_operands = 0 : i64, tpu.core_type = #tpu.core_type<tc>, window_params = [{transform_indices = @transform_0, window_bounds = array<i64: 1, 8, 16>}, {transform_indices = @transform_1, window_bounds = array<i64: 1, 48, 64>}, {transform_indices = @transform_2, window_bounds = array<i64: 1, 8, 8>}, {pipeline_mode = #tpu.pipeline_mode<synchronous>, transform_indices = @transform_3, window_bounds = array<i64: 16, 96>}, {pipeline_mode = #tpu.pipeline_mode<synchronous>, transform_indices = @transform_4, window_bounds = array<i64: 1, 96>}, {pipeline_mode = #tpu.pipeline_mode<synchronous>, transform_indices = @transform_5, window_bounds = array<i64: 64, 384>}, {pipeline_mode = #tpu.pipeline_mode<synchronous>, transform_indices = @transform_6, window_bounds = array<i64: 128, 384>}, {pipeline_mode = #tpu.pipeline_mode<synchronous>, transform_indices = @transform_7, window_bounds = array<i64: 1, 384>}, {pipeline_mode = #tpu.pipeline_mode<synchronous>, transform_indices = @transform_8, window_bounds = array<i64: 1, 384>}, {pipeline_mode = #tpu.pipeline_mode<synchronous>, transform_indices = @transform_9, window_bounds = array<i64: 32, 96>}, {pipeline_mode = #tpu.pipeline_mode<synchronous>, transform_indices = @transform_10, window_bounds = array<i64: 32, 96>}, {pipeline_mode = #tpu.pipeline_mode<synchronous>, transform_indices = @transform_11, window_bounds = array<i64: 1, 96>}, {pipeline_mode = #tpu.pipeline_mode<synchronous>, transform_indices = @transform_12, window_bounds = array<i64: 1, 96>}, {pipeline_mode = #tpu.pipeline_mode<synchronous>, transform_indices = @transform_13, window_bounds = array<i64: 32, 96>}, {pipeline_mode = #tpu.pipeline_mode<synchronous>, transform_indices = @transform_14, window_bounds = array<i64: 32, 96>}, {pipeline_mode = #tpu.pipeline_mode<synchronous>, transform_indices = @transform_15, window_bounds = array<i64: 1, 96>}, {pipeline_mode = #tpu.pipeline_mode<synchronous>, transform_indices = @transform_16, window_bounds = array<i64: 1, 96>}, {pipeline_mode = #tpu.pipeline_mode<synchronous>, transform_indices = @transform_17, window_bounds = array<i64: 320, 32>}, {pipeline_mode = #tpu.pipeline_mode<synchronous>, transform_indices = @transform_18, window_bounds = array<i64: 1, 32>}, {pipeline_mode = #tpu.pipeline_mode<synchronous>, transform_indices = @transform_19, window_bounds = array<i64: 32, 32>}, {pipeline_mode = #tpu.pipeline_mode<synchronous>, transform_indices = @transform_20, window_bounds = array<i64: 1, 32>}, {pipeline_mode = #tpu.pipeline_mode<synchronous>, transform_indices = @transform_21, window_bounds = array<i64: 32, 32>}, {pipeline_mode = #tpu.pipeline_mode<synchronous>, transform_indices = @transform_22, window_bounds = array<i64: 1, 32>}, {pipeline_mode = #tpu.pipeline_mode<synchronous>, transform_indices = @transform_23, window_bounds = array<i64: 32, 5>}, {pipeline_mode = #tpu.pipeline_mode<synchronous>, transform_indices = @transform_24, window_bounds = array<i64: 1, 5>}, {transform_indices = @transform_25, window_bounds = array<i64: 1, 1, 5>}]} {
    %c0 = arith.constant 0 : index
    %c0_0 = arith.constant 0 : index
    %c0_1 = arith.constant 0 : index
    %0 = vector.load %arg1[%c0, %c0_0, %c0_1] : memref<1x8x16xf32, #tpu.memory_space<vmem>>, vector<1x8x16xf32>
    %1 = vector.shape_cast %0 : vector<1x8x16xf32> to vector<8x16xf32>
    %c0_2 = arith.constant 0 : index
    %c0_3 = arith.constant 0 : index
    %2 = vector.load %arg4[%c0_2, %c0_3] : memref<16x96xf32, #tpu.memory_space<vmem>>, vector<16x96xf32>
    %cst = arith.constant dense<0.000000e+00> : vector<8x96xf32>
    %3 = tpu.matmul %1, %2, %cst {dimension_numbers = #tpu.dot_dimension_numbers<[1], [0], [0], [1], [0, 0, 1, 1], [], []>} : vector<8x16xf32>, vector<16x96xf32>, vector<8x96xf32> -> vector<8x96xf32>
    %c0_4 = arith.constant 0 : index
    %c0_5 = arith.constant 0 : index
    %4 = vector.load %arg5[%c0_4, %c0_5] : memref<1x96xf32, #tpu.memory_space<vmem>>, vector<1x96xf32>
    %5 = vector.broadcast %4 : vector<1x96xf32> to vector<8x96xf32>
    %6 = arith.addf %3, %5 : vector<8x96xf32>
    %7 = vector.extract_strided_slice %6 {offsets = [0, 0], sizes = [8, 32], strides = [1, 1]} : vector<8x96xf32> to vector<8x32xf32>
    %8 = arith.negf %7 : vector<8x32xf32>
    %9 = math.exp %8 : vector<8x32xf32>
    %cst_6 = arith.constant 1.000000e+00 : f32
    %10 = vector.broadcast %cst_6 : f32 to vector<8x32xf32>
    %11 = arith.addf %10, %9 : vector<8x32xf32>
    %12 = arith.divf %10, %11 : vector<8x32xf32>
    %13 = vector.extract_strided_slice %6 {offsets = [0, 32], sizes = [8, 32], strides = [1, 1]} : vector<8x96xf32> to vector<8x32xf32>
    %14 = arith.negf %13 : vector<8x32xf32>
    %15 = math.exp %14 : vector<8x32xf32>
    %cst_7 = arith.constant 1.000000e+00 : f32
    %16 = vector.broadcast %cst_7 : f32 to vector<8x32xf32>
    %17 = arith.addf %16, %15 : vector<8x32xf32>
    %18 = arith.divf %16, %17 : vector<8x32xf32>
    %19 = vector.extract_strided_slice %6 {offsets = [0, 64], sizes = [8, 32], strides = [1, 1]} : vector<8x96xf32> to vector<8x32xf32>
    %20 = math.tanh %19 : vector<8x32xf32>
    %21 = arith.mulf %12, %20 : vector<8x32xf32>
    %22 = math.tanh %21 : vector<8x32xf32>
    %23 = arith.mulf %18, %22 : vector<8x32xf32>
    %c0_8 = arith.constant 0 : index
    %c0_9 = arith.constant 0 : index
    %c0_10 = arith.constant 0 : index
    %24 = vector.load %arg2[%c0_8, %c0_9, %c0_10] : memref<1x48x64xf32, #tpu.memory_space<vmem>>, vector<1x48x64xf32>
    %25 = vector.shape_cast %24 : vector<1x48x64xf32> to vector<48x64xf32>
    %c0_11 = arith.constant 0 : index
    %c0_12 = arith.constant 0 : index
    %26 = vector.load %arg6[%c0_11, %c0_12] : memref<64x384xf32, #tpu.memory_space<vmem>>, vector<64x384xf32>
    %cst_13 = arith.constant dense<0.000000e+00> : vector<48x384xf32>
    %27 = tpu.matmul %25, %26, %cst_13 {dimension_numbers = #tpu.dot_dimension_numbers<[1], [0], [0], [1], [0, 0, 1, 1], [], []>} : vector<48x64xf32>, vector<64x384xf32>, vector<48x384xf32> -> vector<48x384xf32>
    %c0_14 = arith.constant 0 : index
    %c0_15 = arith.constant 0 : index
    %28 = vector.load %arg8[%c0_14, %c0_15] : memref<1x384xf32, #tpu.memory_space<vmem>>, vector<1x384xf32>
    %29 = vector.broadcast %28 : vector<1x384xf32> to vector<48x384xf32>
    %30 = arith.addf %27, %29 : vector<48x384xf32>
    %cst_16 = arith.constant 0.000000e+00 : f32
    %31 = vector.broadcast %cst_16 : f32 to vector<8x128xf32>
    %32 = vector.extract_strided_slice %30 {offsets = [0, 0], sizes = [8, 384], strides = [1, 1]} : vector<48x384xf32> to vector<8x384xf32>
    %c0_17 = arith.constant 0 : index
    %c0_18 = arith.constant 0 : index
    %33 = vector.load %arg7[%c0_17, %c0_18] : memref<128x384xf32, #tpu.memory_space<vmem>>, vector<128x384xf32>
    %cst_19 = arith.constant dense<0.000000e+00> : vector<8x384xf32>
    %34 = tpu.matmul %31, %33, %cst_19 {dimension_numbers = #tpu.dot_dimension_numbers<[1], [0], [0], [1], [0, 0, 1, 1], [], []>} : vector<8x128xf32>, vector<128x384xf32>, vector<8x384xf32> -> vector<8x384xf32>
    %c0_20 = arith.constant 0 : index
    %c0_21 = arith.constant 0 : index
    %35 = vector.load %arg9[%c0_20, %c0_21] : memref<1x384xf32, #tpu.memory_space<vmem>>, vector<1x384xf32>
    %36 = vector.broadcast %35 : vector<1x384xf32> to vector<8x384xf32>
    %37 = arith.addf %34, %36 : vector<8x384xf32>
    %38 = vector.extract_strided_slice %32 {offsets = [0, 0], sizes = [8, 128], strides = [1, 1]} : vector<8x384xf32> to vector<8x128xf32>
    %39 = vector.extract_strided_slice %37 {offsets = [0, 0], sizes = [8, 128], strides = [1, 1]} : vector<8x384xf32> to vector<8x128xf32>
    %40 = arith.addf %38, %39 : vector<8x128xf32>
    %41 = arith.negf %40 : vector<8x128xf32>
    %42 = math.exp %41 : vector<8x128xf32>
    %cst_22 = arith.constant 1.000000e+00 : f32
    %43 = vector.broadcast %cst_22 : f32 to vector<8x128xf32>
    %44 = arith.addf %43, %42 : vector<8x128xf32>
    %45 = arith.divf %43, %44 : vector<8x128xf32>
    %46 = vector.extract_strided_slice %32 {offsets = [0, 128], sizes = [8, 128], strides = [1, 1]} : vector<8x384xf32> to vector<8x128xf32>
    %47 = vector.extract_strided_slice %37 {offsets = [0, 128], sizes = [8, 128], strides = [1, 1]} : vector<8x384xf32> to vector<8x128xf32>
    %48 = arith.addf %46, %47 : vector<8x128xf32>
    %49 = arith.negf %48 : vector<8x128xf32>
    %50 = math.exp %49 : vector<8x128xf32>
    %cst_23 = arith.constant 1.000000e+00 : f32
    %51 = vector.broadcast %cst_23 : f32 to vector<8x128xf32>
    %52 = arith.addf %51, %50 : vector<8x128xf32>
    %53 = arith.divf %51, %52 : vector<8x128xf32>
    %54 = vector.extract_strided_slice %32 {offsets = [0, 256], sizes = [8, 128], strides = [1, 1]} : vector<8x384xf32> to vector<8x128xf32>
    %55 = vector.extract_strided_slice %37 {offsets = [0, 256], sizes = [8, 128], strides = [1, 1]} : vector<8x384xf32> to vector<8x128xf32>
    %56 = arith.mulf %45, %55 : vector<8x128xf32>
    %57 = arith.addf %54, %56 : vector<8x128xf32>
    %58 = math.tanh %57 : vector<8x128xf32>
    %cst_24 = arith.constant 1.000000e+00 : f32
    %59 = vector.broadcast %cst_24 : f32 to vector<8x128xf32>
    %60 = arith.subf %59, %53 : vector<8x128xf32>
    %61 = arith.mulf %60, %58 : vector<8x128xf32>
    %62 = arith.mulf %53, %31 : vector<8x128xf32>
    %63 = arith.addf %61, %62 : vector<8x128xf32>
    %64 = vector.extract_strided_slice %30 {offsets = [8, 0], sizes = [8, 384], strides = [1, 1]} : vector<48x384xf32> to vector<8x384xf32>
    %c0_25 = arith.constant 0 : index
    %c0_26 = arith.constant 0 : index
    %65 = vector.load %arg7[%c0_25, %c0_26] : memref<128x384xf32, #tpu.memory_space<vmem>>, vector<128x384xf32>
    %cst_27 = arith.constant dense<0.000000e+00> : vector<8x384xf32>
    %66 = tpu.matmul %63, %65, %cst_27 {dimension_numbers = #tpu.dot_dimension_numbers<[1], [0], [0], [1], [0, 0, 1, 1], [], []>} : vector<8x128xf32>, vector<128x384xf32>, vector<8x384xf32> -> vector<8x384xf32>
    %c0_28 = arith.constant 0 : index
    %c0_29 = arith.constant 0 : index
    %67 = vector.load %arg9[%c0_28, %c0_29] : memref<1x384xf32, #tpu.memory_space<vmem>>, vector<1x384xf32>
    %68 = vector.broadcast %67 : vector<1x384xf32> to vector<8x384xf32>
    %69 = arith.addf %66, %68 : vector<8x384xf32>
    %70 = vector.extract_strided_slice %64 {offsets = [0, 0], sizes = [8, 128], strides = [1, 1]} : vector<8x384xf32> to vector<8x128xf32>
    %71 = vector.extract_strided_slice %69 {offsets = [0, 0], sizes = [8, 128], strides = [1, 1]} : vector<8x384xf32> to vector<8x128xf32>
    %72 = arith.addf %70, %71 : vector<8x128xf32>
    %73 = arith.negf %72 : vector<8x128xf32>
    %74 = math.exp %73 : vector<8x128xf32>
    %cst_30 = arith.constant 1.000000e+00 : f32
    %75 = vector.broadcast %cst_30 : f32 to vector<8x128xf32>
    %76 = arith.addf %75, %74 : vector<8x128xf32>
    %77 = arith.divf %75, %76 : vector<8x128xf32>
    %78 = vector.extract_strided_slice %64 {offsets = [0, 128], sizes = [8, 128], strides = [1, 1]} : vector<8x384xf32> to vector<8x128xf32>
    %79 = vector.extract_strided_slice %69 {offsets = [0, 128], sizes = [8, 128], strides = [1, 1]} : vector<8x384xf32> to vector<8x128xf32>
    %80 = arith.addf %78, %79 : vector<8x128xf32>
    %81 = arith.negf %80 : vector<8x128xf32>
    %82 = math.exp %81 : vector<8x128xf32>
    %cst_31 = arith.constant 1.000000e+00 : f32
    %83 = vector.broadcast %cst_31 : f32 to vector<8x128xf32>
    %84 = arith.addf %83, %82 : vector<8x128xf32>
    %85 = arith.divf %83, %84 : vector<8x128xf32>
    %86 = vector.extract_strided_slice %64 {offsets = [0, 256], sizes = [8, 128], strides = [1, 1]} : vector<8x384xf32> to vector<8x128xf32>
    %87 = vector.extract_strided_slice %69 {offsets = [0, 256], sizes = [8, 128], strides = [1, 1]} : vector<8x384xf32> to vector<8x128xf32>
    %88 = arith.mulf %77, %87 : vector<8x128xf32>
    %89 = arith.addf %86, %88 : vector<8x128xf32>
    %90 = math.tanh %89 : vector<8x128xf32>
    %cst_32 = arith.constant 1.000000e+00 : f32
    %91 = vector.broadcast %cst_32 : f32 to vector<8x128xf32>
    %92 = arith.subf %91, %85 : vector<8x128xf32>
    %93 = arith.mulf %92, %90 : vector<8x128xf32>
    %94 = arith.mulf %85, %63 : vector<8x128xf32>
    %95 = arith.addf %93, %94 : vector<8x128xf32>
    %96 = vector.extract_strided_slice %30 {offsets = [16, 0], sizes = [8, 384], strides = [1, 1]} : vector<48x384xf32> to vector<8x384xf32>
    %c0_33 = arith.constant 0 : index
    %c0_34 = arith.constant 0 : index
    %97 = vector.load %arg7[%c0_33, %c0_34] : memref<128x384xf32, #tpu.memory_space<vmem>>, vector<128x384xf32>
    %cst_35 = arith.constant dense<0.000000e+00> : vector<8x384xf32>
    %98 = tpu.matmul %95, %97, %cst_35 {dimension_numbers = #tpu.dot_dimension_numbers<[1], [0], [0], [1], [0, 0, 1, 1], [], []>} : vector<8x128xf32>, vector<128x384xf32>, vector<8x384xf32> -> vector<8x384xf32>
    %c0_36 = arith.constant 0 : index
    %c0_37 = arith.constant 0 : index
    %99 = vector.load %arg9[%c0_36, %c0_37] : memref<1x384xf32, #tpu.memory_space<vmem>>, vector<1x384xf32>
    %100 = vector.broadcast %99 : vector<1x384xf32> to vector<8x384xf32>
    %101 = arith.addf %98, %100 : vector<8x384xf32>
    %102 = vector.extract_strided_slice %96 {offsets = [0, 0], sizes = [8, 128], strides = [1, 1]} : vector<8x384xf32> to vector<8x128xf32>
    %103 = vector.extract_strided_slice %101 {offsets = [0, 0], sizes = [8, 128], strides = [1, 1]} : vector<8x384xf32> to vector<8x128xf32>
    %104 = arith.addf %102, %103 : vector<8x128xf32>
    %105 = arith.negf %104 : vector<8x128xf32>
    %106 = math.exp %105 : vector<8x128xf32>
    %cst_38 = arith.constant 1.000000e+00 : f32
    %107 = vector.broadcast %cst_38 : f32 to vector<8x128xf32>
    %108 = arith.addf %107, %106 : vector<8x128xf32>
    %109 = arith.divf %107, %108 : vector<8x128xf32>
    %110 = vector.extract_strided_slice %96 {offsets = [0, 128], sizes = [8, 128], strides = [1, 1]} : vector<8x384xf32> to vector<8x128xf32>
    %111 = vector.extract_strided_slice %101 {offsets = [0, 128], sizes = [8, 128], strides = [1, 1]} : vector<8x384xf32> to vector<8x128xf32>
    %112 = arith.addf %110, %111 : vector<8x128xf32>
    %113 = arith.negf %112 : vector<8x128xf32>
    %114 = math.exp %113 : vector<8x128xf32>
    %cst_39 = arith.constant 1.000000e+00 : f32
    %115 = vector.broadcast %cst_39 : f32 to vector<8x128xf32>
    %116 = arith.addf %115, %114 : vector<8x128xf32>
    %117 = arith.divf %115, %116 : vector<8x128xf32>
    %118 = vector.extract_strided_slice %96 {offsets = [0, 256], sizes = [8, 128], strides = [1, 1]} : vector<8x384xf32> to vector<8x128xf32>
    %119 = vector.extract_strided_slice %101 {offsets = [0, 256], sizes = [8, 128], strides = [1, 1]} : vector<8x384xf32> to vector<8x128xf32>
    %120 = arith.mulf %109, %119 : vector<8x128xf32>
    %121 = arith.addf %118, %120 : vector<8x128xf32>
    %122 = math.tanh %121 : vector<8x128xf32>
    %cst_40 = arith.constant 1.000000e+00 : f32
    %123 = vector.broadcast %cst_40 : f32 to vector<8x128xf32>
    %124 = arith.subf %123, %117 : vector<8x128xf32>
    %125 = arith.mulf %124, %122 : vector<8x128xf32>
    %126 = arith.mulf %117, %95 : vector<8x128xf32>
    %127 = arith.addf %125, %126 : vector<8x128xf32>
    %128 = vector.extract_strided_slice %30 {offsets = [24, 0], sizes = [8, 384], strides = [1, 1]} : vector<48x384xf32> to vector<8x384xf32>
    %c0_41 = arith.constant 0 : index
    %c0_42 = arith.constant 0 : index
    %129 = vector.load %arg7[%c0_41, %c0_42] : memref<128x384xf32, #tpu.memory_space<vmem>>, vector<128x384xf32>
    %cst_43 = arith.constant dense<0.000000e+00> : vector<8x384xf32>
    %130 = tpu.matmul %127, %129, %cst_43 {dimension_numbers = #tpu.dot_dimension_numbers<[1], [0], [0], [1], [0, 0, 1, 1], [], []>} : vector<8x128xf32>, vector<128x384xf32>, vector<8x384xf32> -> vector<8x384xf32>
    %c0_44 = arith.constant 0 : index
    %c0_45 = arith.constant 0 : index
    %131 = vector.load %arg9[%c0_44, %c0_45] : memref<1x384xf32, #tpu.memory_space<vmem>>, vector<1x384xf32>
    %132 = vector.broadcast %131 : vector<1x384xf32> to vector<8x384xf32>
    %133 = arith.addf %130, %132 : vector<8x384xf32>
    %134 = vector.extract_strided_slice %128 {offsets = [0, 0], sizes = [8, 128], strides = [1, 1]} : vector<8x384xf32> to vector<8x128xf32>
    %135 = vector.extract_strided_slice %133 {offsets = [0, 0], sizes = [8, 128], strides = [1, 1]} : vector<8x384xf32> to vector<8x128xf32>
    %136 = arith.addf %134, %135 : vector<8x128xf32>
    %137 = arith.negf %136 : vector<8x128xf32>
    %138 = math.exp %137 : vector<8x128xf32>
    %cst_46 = arith.constant 1.000000e+00 : f32
    %139 = vector.broadcast %cst_46 : f32 to vector<8x128xf32>
    %140 = arith.addf %139, %138 : vector<8x128xf32>
    %141 = arith.divf %139, %140 : vector<8x128xf32>
    %142 = vector.extract_strided_slice %128 {offsets = [0, 128], sizes = [8, 128], strides = [1, 1]} : vector<8x384xf32> to vector<8x128xf32>
    %143 = vector.extract_strided_slice %133 {offsets = [0, 128], sizes = [8, 128], strides = [1, 1]} : vector<8x384xf32> to vector<8x128xf32>
    %144 = arith.addf %142, %143 : vector<8x128xf32>
    %145 = arith.negf %144 : vector<8x128xf32>
    %146 = math.exp %145 : vector<8x128xf32>
    %cst_47 = arith.constant 1.000000e+00 : f32
    %147 = vector.broadcast %cst_47 : f32 to vector<8x128xf32>
    %148 = arith.addf %147, %146 : vector<8x128xf32>
    %149 = arith.divf %147, %148 : vector<8x128xf32>
    %150 = vector.extract_strided_slice %128 {offsets = [0, 256], sizes = [8, 128], strides = [1, 1]} : vector<8x384xf32> to vector<8x128xf32>
    %151 = vector.extract_strided_slice %133 {offsets = [0, 256], sizes = [8, 128], strides = [1, 1]} : vector<8x384xf32> to vector<8x128xf32>
    %152 = arith.mulf %141, %151 : vector<8x128xf32>
    %153 = arith.addf %150, %152 : vector<8x128xf32>
    %154 = math.tanh %153 : vector<8x128xf32>
    %cst_48 = arith.constant 1.000000e+00 : f32
    %155 = vector.broadcast %cst_48 : f32 to vector<8x128xf32>
    %156 = arith.subf %155, %149 : vector<8x128xf32>
    %157 = arith.mulf %156, %154 : vector<8x128xf32>
    %158 = arith.mulf %149, %127 : vector<8x128xf32>
    %159 = arith.addf %157, %158 : vector<8x128xf32>
    %160 = vector.extract_strided_slice %30 {offsets = [32, 0], sizes = [8, 384], strides = [1, 1]} : vector<48x384xf32> to vector<8x384xf32>
    %c0_49 = arith.constant 0 : index
    %c0_50 = arith.constant 0 : index
    %161 = vector.load %arg7[%c0_49, %c0_50] : memref<128x384xf32, #tpu.memory_space<vmem>>, vector<128x384xf32>
    %cst_51 = arith.constant dense<0.000000e+00> : vector<8x384xf32>
    %162 = tpu.matmul %159, %161, %cst_51 {dimension_numbers = #tpu.dot_dimension_numbers<[1], [0], [0], [1], [0, 0, 1, 1], [], []>} : vector<8x128xf32>, vector<128x384xf32>, vector<8x384xf32> -> vector<8x384xf32>
    %c0_52 = arith.constant 0 : index
    %c0_53 = arith.constant 0 : index
    %163 = vector.load %arg9[%c0_52, %c0_53] : memref<1x384xf32, #tpu.memory_space<vmem>>, vector<1x384xf32>
    %164 = vector.broadcast %163 : vector<1x384xf32> to vector<8x384xf32>
    %165 = arith.addf %162, %164 : vector<8x384xf32>
    %166 = vector.extract_strided_slice %160 {offsets = [0, 0], sizes = [8, 128], strides = [1, 1]} : vector<8x384xf32> to vector<8x128xf32>
    %167 = vector.extract_strided_slice %165 {offsets = [0, 0], sizes = [8, 128], strides = [1, 1]} : vector<8x384xf32> to vector<8x128xf32>
    %168 = arith.addf %166, %167 : vector<8x128xf32>
    %169 = arith.negf %168 : vector<8x128xf32>
    %170 = math.exp %169 : vector<8x128xf32>
    %cst_54 = arith.constant 1.000000e+00 : f32
    %171 = vector.broadcast %cst_54 : f32 to vector<8x128xf32>
    %172 = arith.addf %171, %170 : vector<8x128xf32>
    %173 = arith.divf %171, %172 : vector<8x128xf32>
    %174 = vector.extract_strided_slice %160 {offsets = [0, 128], sizes = [8, 128], strides = [1, 1]} : vector<8x384xf32> to vector<8x128xf32>
    %175 = vector.extract_strided_slice %165 {offsets = [0, 128], sizes = [8, 128], strides = [1, 1]} : vector<8x384xf32> to vector<8x128xf32>
    %176 = arith.addf %174, %175 : vector<8x128xf32>
    %177 = arith.negf %176 : vector<8x128xf32>
    %178 = math.exp %177 : vector<8x128xf32>
    %cst_55 = arith.constant 1.000000e+00 : f32
    %179 = vector.broadcast %cst_55 : f32 to vector<8x128xf32>
    %180 = arith.addf %179, %178 : vector<8x128xf32>
    %181 = arith.divf %179, %180 : vector<8x128xf32>
    %182 = vector.extract_strided_slice %160 {offsets = [0, 256], sizes = [8, 128], strides = [1, 1]} : vector<8x384xf32> to vector<8x128xf32>
    %183 = vector.extract_strided_slice %165 {offsets = [0, 256], sizes = [8, 128], strides = [1, 1]} : vector<8x384xf32> to vector<8x128xf32>
    %184 = arith.mulf %173, %183 : vector<8x128xf32>
    %185 = arith.addf %182, %184 : vector<8x128xf32>
    %186 = math.tanh %185 : vector<8x128xf32>
    %cst_56 = arith.constant 1.000000e+00 : f32
    %187 = vector.broadcast %cst_56 : f32 to vector<8x128xf32>
    %188 = arith.subf %187, %181 : vector<8x128xf32>
    %189 = arith.mulf %188, %186 : vector<8x128xf32>
    %190 = arith.mulf %181, %159 : vector<8x128xf32>
    %191 = arith.addf %189, %190 : vector<8x128xf32>
    %192 = vector.extract_strided_slice %30 {offsets = [40, 0], sizes = [8, 384], strides = [1, 1]} : vector<48x384xf32> to vector<8x384xf32>
    %c0_57 = arith.constant 0 : index
    %c0_58 = arith.constant 0 : index
    %193 = vector.load %arg7[%c0_57, %c0_58] : memref<128x384xf32, #tpu.memory_space<vmem>>, vector<128x384xf32>
    %cst_59 = arith.constant dense<0.000000e+00> : vector<8x384xf32>
    %194 = tpu.matmul %191, %193, %cst_59 {dimension_numbers = #tpu.dot_dimension_numbers<[1], [0], [0], [1], [0, 0, 1, 1], [], []>} : vector<8x128xf32>, vector<128x384xf32>, vector<8x384xf32> -> vector<8x384xf32>
    %c0_60 = arith.constant 0 : index
    %c0_61 = arith.constant 0 : index
    %195 = vector.load %arg9[%c0_60, %c0_61] : memref<1x384xf32, #tpu.memory_space<vmem>>, vector<1x384xf32>
    %196 = vector.broadcast %195 : vector<1x384xf32> to vector<8x384xf32>
    %197 = arith.addf %194, %196 : vector<8x384xf32>
    %198 = vector.extract_strided_slice %192 {offsets = [0, 0], sizes = [8, 128], strides = [1, 1]} : vector<8x384xf32> to vector<8x128xf32>
    %199 = vector.extract_strided_slice %197 {offsets = [0, 0], sizes = [8, 128], strides = [1, 1]} : vector<8x384xf32> to vector<8x128xf32>
    %200 = arith.addf %198, %199 : vector<8x128xf32>
    %201 = arith.negf %200 : vector<8x128xf32>
    %202 = math.exp %201 : vector<8x128xf32>
    %cst_62 = arith.constant 1.000000e+00 : f32
    %203 = vector.broadcast %cst_62 : f32 to vector<8x128xf32>
    %204 = arith.addf %203, %202 : vector<8x128xf32>
    %205 = arith.divf %203, %204 : vector<8x128xf32>
    %206 = vector.extract_strided_slice %192 {offsets = [0, 128], sizes = [8, 128], strides = [1, 1]} : vector<8x384xf32> to vector<8x128xf32>
    %207 = vector.extract_strided_slice %197 {offsets = [0, 128], sizes = [8, 128], strides = [1, 1]} : vector<8x384xf32> to vector<8x128xf32>
    %208 = arith.addf %206, %207 : vector<8x128xf32>
    %209 = arith.negf %208 : vector<8x128xf32>
    %210 = math.exp %209 : vector<8x128xf32>
    %cst_63 = arith.constant 1.000000e+00 : f32
    %211 = vector.broadcast %cst_63 : f32 to vector<8x128xf32>
    %212 = arith.addf %211, %210 : vector<8x128xf32>
    %213 = arith.divf %211, %212 : vector<8x128xf32>
    %214 = vector.extract_strided_slice %192 {offsets = [0, 256], sizes = [8, 128], strides = [1, 1]} : vector<8x384xf32> to vector<8x128xf32>
    %215 = vector.extract_strided_slice %197 {offsets = [0, 256], sizes = [8, 128], strides = [1, 1]} : vector<8x384xf32> to vector<8x128xf32>
    %216 = arith.mulf %205, %215 : vector<8x128xf32>
    %217 = arith.addf %214, %216 : vector<8x128xf32>
    %218 = math.tanh %217 : vector<8x128xf32>
    %cst_64 = arith.constant 1.000000e+00 : f32
    %219 = vector.broadcast %cst_64 : f32 to vector<8x128xf32>
    %220 = arith.subf %219, %213 : vector<8x128xf32>
    %221 = arith.mulf %220, %218 : vector<8x128xf32>
    %222 = arith.mulf %213, %191 : vector<8x128xf32>
    %223 = arith.addf %221, %222 : vector<8x128xf32>
    %224 = vector.extract_strided_slice %223 {offsets = [0, 0], sizes = [8, 32], strides = [1, 1]} : vector<8x128xf32> to vector<8x32xf32>
    %225 = vector.extract_strided_slice %223 {offsets = [0, 32], sizes = [8, 32], strides = [1, 1]} : vector<8x128xf32> to vector<8x32xf32>
    %226 = vector.extract_strided_slice %223 {offsets = [0, 64], sizes = [8, 32], strides = [1, 1]} : vector<8x128xf32> to vector<8x32xf32>
    %227 = vector.extract_strided_slice %223 {offsets = [0, 96], sizes = [8, 32], strides = [1, 1]} : vector<8x128xf32> to vector<8x32xf32>
    %228 = tpu.concatenate %23, %224, %225, %226, %227 in 0 : vector<8x32xf32>, vector<8x32xf32>, vector<8x32xf32>, vector<8x32xf32>, vector<8x32xf32> -> vector<40x32xf32>
    %c0_65 = arith.constant 0 : index
    %c0_66 = arith.constant 0 : index
    %229 = vector.load %arg10[%c0_65, %c0_66] : memref<32x96xf32, #tpu.memory_space<vmem>>, vector<32x96xf32>
    %cst_67 = arith.constant dense<0.000000e+00> : vector<40x96xf32>
    %230 = tpu.matmul %228, %229, %cst_67 {dimension_numbers = #tpu.dot_dimension_numbers<[1], [0], [0], [1], [0, 0, 1, 1], [], []>} : vector<40x32xf32>, vector<32x96xf32>, vector<40x96xf32> -> vector<40x96xf32>
    %c0_68 = arith.constant 0 : index
    %c0_69 = arith.constant 0 : index
    %231 = vector.load %arg12[%c0_68, %c0_69] : memref<1x96xf32, #tpu.memory_space<vmem>>, vector<1x96xf32>
    %232 = vector.broadcast %231 : vector<1x96xf32> to vector<40x96xf32>
    %233 = arith.addf %230, %232 : vector<40x96xf32>
    %c0_70 = arith.constant 0 : index
    %c0_71 = arith.constant 0 : index
    %234 = vector.load %arg14[%c0_70, %c0_71] : memref<32x96xf32, #tpu.memory_space<vmem>>, vector<32x96xf32>
    %cst_72 = arith.constant dense<0.000000e+00> : vector<40x96xf32>
    %235 = tpu.matmul %228, %234, %cst_72 {dimension_numbers = #tpu.dot_dimension_numbers<[1], [0], [0], [1], [0, 0, 1, 1], [], []>} : vector<40x32xf32>, vector<32x96xf32>, vector<40x96xf32> -> vector<40x96xf32>
    %c0_73 = arith.constant 0 : index
    %c0_74 = arith.constant 0 : index
    %236 = vector.load %arg16[%c0_73, %c0_74] : memref<1x96xf32, #tpu.memory_space<vmem>>, vector<1x96xf32>
    %237 = vector.broadcast %236 : vector<1x96xf32> to vector<40x96xf32>
    %238 = arith.addf %235, %237 : vector<40x96xf32>
    %cst_75 = arith.constant 0.000000e+00 : f32
    %239 = vector.broadcast %cst_75 : f32 to vector<8x32xf32>
    %cst_76 = arith.constant 0.000000e+00 : f32
    %240 = vector.broadcast %cst_76 : f32 to vector<8x32xf32>
    %241 = vector.extract_strided_slice %233 {offsets = [0, 0], sizes = [8, 96], strides = [1, 1]} : vector<40x96xf32> to vector<8x96xf32>
    %c0_77 = arith.constant 0 : index
    %c0_78 = arith.constant 0 : index
    %242 = vector.load %arg11[%c0_77, %c0_78] : memref<32x96xf32, #tpu.memory_space<vmem>>, vector<32x96xf32>
    %c0_79 = arith.constant 0 : index
    %c0_80 = arith.constant 0 : index
    %243 = vector.load %arg13[%c0_79, %c0_80] : memref<1x96xf32, #tpu.memory_space<vmem>>, vector<1x96xf32>
    %cst_81 = arith.constant dense<0.000000e+00> : vector<8x96xf32>
    %244 = tpu.matmul %239, %242, %cst_81 {dimension_numbers = #tpu.dot_dimension_numbers<[1], [0], [0], [1], [0, 0, 1, 1], [], []>} : vector<8x32xf32>, vector<32x96xf32>, vector<8x96xf32> -> vector<8x96xf32>
    %245 = vector.broadcast %243 : vector<1x96xf32> to vector<8x96xf32>
    %246 = arith.addf %244, %245 : vector<8x96xf32>
    %247 = vector.extract_strided_slice %241 {offsets = [0, 0], sizes = [8, 32], strides = [1, 1]} : vector<8x96xf32> to vector<8x32xf32>
    %248 = vector.extract_strided_slice %246 {offsets = [0, 0], sizes = [8, 32], strides = [1, 1]} : vector<8x96xf32> to vector<8x32xf32>
    %249 = arith.addf %247, %248 : vector<8x32xf32>
    %250 = arith.negf %249 : vector<8x32xf32>
    %251 = math.exp %250 : vector<8x32xf32>
    %cst_82 = arith.constant 1.000000e+00 : f32
    %252 = vector.broadcast %cst_82 : f32 to vector<8x32xf32>
    %253 = arith.addf %252, %251 : vector<8x32xf32>
    %254 = arith.divf %252, %253 : vector<8x32xf32>
    %255 = vector.extract_strided_slice %241 {offsets = [0, 32], sizes = [8, 32], strides = [1, 1]} : vector<8x96xf32> to vector<8x32xf32>
    %256 = vector.extract_strided_slice %246 {offsets = [0, 32], sizes = [8, 32], strides = [1, 1]} : vector<8x96xf32> to vector<8x32xf32>
    %257 = arith.addf %255, %256 : vector<8x32xf32>
    %258 = arith.negf %257 : vector<8x32xf32>
    %259 = math.exp %258 : vector<8x32xf32>
    %cst_83 = arith.constant 1.000000e+00 : f32
    %260 = vector.broadcast %cst_83 : f32 to vector<8x32xf32>
    %261 = arith.addf %260, %259 : vector<8x32xf32>
    %262 = arith.divf %260, %261 : vector<8x32xf32>
    %263 = vector.extract_strided_slice %241 {offsets = [0, 64], sizes = [8, 32], strides = [1, 1]} : vector<8x96xf32> to vector<8x32xf32>
    %264 = vector.extract_strided_slice %246 {offsets = [0, 64], sizes = [8, 32], strides = [1, 1]} : vector<8x96xf32> to vector<8x32xf32>
    %265 = arith.mulf %254, %264 : vector<8x32xf32>
    %266 = arith.addf %263, %265 : vector<8x32xf32>
    %267 = math.tanh %266 : vector<8x32xf32>
    %cst_84 = arith.constant 1.000000e+00 : f32
    %268 = vector.broadcast %cst_84 : f32 to vector<8x32xf32>
    %269 = arith.subf %268, %262 : vector<8x32xf32>
    %270 = arith.mulf %269, %267 : vector<8x32xf32>
    %271 = arith.mulf %262, %239 : vector<8x32xf32>
    %272 = arith.addf %270, %271 : vector<8x32xf32>
    %273 = vector.extract_strided_slice %238 {offsets = [32, 0], sizes = [8, 96], strides = [1, 1]} : vector<40x96xf32> to vector<8x96xf32>
    %c0_85 = arith.constant 0 : index
    %c0_86 = arith.constant 0 : index
    %274 = vector.load %arg15[%c0_85, %c0_86] : memref<32x96xf32, #tpu.memory_space<vmem>>, vector<32x96xf32>
    %c0_87 = arith.constant 0 : index
    %c0_88 = arith.constant 0 : index
    %275 = vector.load %arg17[%c0_87, %c0_88] : memref<1x96xf32, #tpu.memory_space<vmem>>, vector<1x96xf32>
    %cst_89 = arith.constant dense<0.000000e+00> : vector<8x96xf32>
    %276 = tpu.matmul %240, %274, %cst_89 {dimension_numbers = #tpu.dot_dimension_numbers<[1], [0], [0], [1], [0, 0, 1, 1], [], []>} : vector<8x32xf32>, vector<32x96xf32>, vector<8x96xf32> -> vector<8x96xf32>
    %277 = vector.broadcast %275 : vector<1x96xf32> to vector<8x96xf32>
    %278 = arith.addf %276, %277 : vector<8x96xf32>
    %279 = vector.extract_strided_slice %273 {offsets = [0, 0], sizes = [8, 32], strides = [1, 1]} : vector<8x96xf32> to vector<8x32xf32>
    %280 = vector.extract_strided_slice %278 {offsets = [0, 0], sizes = [8, 32], strides = [1, 1]} : vector<8x96xf32> to vector<8x32xf32>
    %281 = arith.addf %279, %280 : vector<8x32xf32>
    %282 = arith.negf %281 : vector<8x32xf32>
    %283 = math.exp %282 : vector<8x32xf32>
    %cst_90 = arith.constant 1.000000e+00 : f32
    %284 = vector.broadcast %cst_90 : f32 to vector<8x32xf32>
    %285 = arith.addf %284, %283 : vector<8x32xf32>
    %286 = arith.divf %284, %285 : vector<8x32xf32>
    %287 = vector.extract_strided_slice %273 {offsets = [0, 32], sizes = [8, 32], strides = [1, 1]} : vector<8x96xf32> to vector<8x32xf32>
    %288 = vector.extract_strided_slice %278 {offsets = [0, 32], sizes = [8, 32], strides = [1, 1]} : vector<8x96xf32> to vector<8x32xf32>
    %289 = arith.addf %287, %288 : vector<8x32xf32>
    %290 = arith.negf %289 : vector<8x32xf32>
    %291 = math.exp %290 : vector<8x32xf32>
    %cst_91 = arith.constant 1.000000e+00 : f32
    %292 = vector.broadcast %cst_91 : f32 to vector<8x32xf32>
    %293 = arith.addf %292, %291 : vector<8x32xf32>
    %294 = arith.divf %292, %293 : vector<8x32xf32>
    %295 = vector.extract_strided_slice %273 {offsets = [0, 64], sizes = [8, 32], strides = [1, 1]} : vector<8x96xf32> to vector<8x32xf32>
    %296 = vector.extract_strided_slice %278 {offsets = [0, 64], sizes = [8, 32], strides = [1, 1]} : vector<8x96xf32> to vector<8x32xf32>
    %297 = arith.mulf %286, %296 : vector<8x32xf32>
    %298 = arith.addf %295, %297 : vector<8x32xf32>
    %299 = math.tanh %298 : vector<8x32xf32>
    %cst_92 = arith.constant 1.000000e+00 : f32
    %300 = vector.broadcast %cst_92 : f32 to vector<8x32xf32>
    %301 = arith.subf %300, %294 : vector<8x32xf32>
    %302 = arith.mulf %301, %299 : vector<8x32xf32>
    %303 = arith.mulf %294, %240 : vector<8x32xf32>
    %304 = arith.addf %302, %303 : vector<8x32xf32>
    %305 = vector.extract_strided_slice %233 {offsets = [8, 0], sizes = [8, 96], strides = [1, 1]} : vector<40x96xf32> to vector<8x96xf32>
    %c0_93 = arith.constant 0 : index
    %c0_94 = arith.constant 0 : index
    %306 = vector.load %arg11[%c0_93, %c0_94] : memref<32x96xf32, #tpu.memory_space<vmem>>, vector<32x96xf32>
    %c0_95 = arith.constant 0 : index
    %c0_96 = arith.constant 0 : index
    %307 = vector.load %arg13[%c0_95, %c0_96] : memref<1x96xf32, #tpu.memory_space<vmem>>, vector<1x96xf32>
    %cst_97 = arith.constant dense<0.000000e+00> : vector<8x96xf32>
    %308 = tpu.matmul %272, %306, %cst_97 {dimension_numbers = #tpu.dot_dimension_numbers<[1], [0], [0], [1], [0, 0, 1, 1], [], []>} : vector<8x32xf32>, vector<32x96xf32>, vector<8x96xf32> -> vector<8x96xf32>
    %309 = vector.broadcast %307 : vector<1x96xf32> to vector<8x96xf32>
    %310 = arith.addf %308, %309 : vector<8x96xf32>
    %311 = vector.extract_strided_slice %305 {offsets = [0, 0], sizes = [8, 32], strides = [1, 1]} : vector<8x96xf32> to vector<8x32xf32>
    %312 = vector.extract_strided_slice %310 {offsets = [0, 0], sizes = [8, 32], strides = [1, 1]} : vector<8x96xf32> to vector<8x32xf32>
    %313 = arith.addf %311, %312 : vector<8x32xf32>
    %314 = arith.negf %313 : vector<8x32xf32>
    %315 = math.exp %314 : vector<8x32xf32>
    %cst_98 = arith.constant 1.000000e+00 : f32
    %316 = vector.broadcast %cst_98 : f32 to vector<8x32xf32>
    %317 = arith.addf %316, %315 : vector<8x32xf32>
    %318 = arith.divf %316, %317 : vector<8x32xf32>
    %319 = vector.extract_strided_slice %305 {offsets = [0, 32], sizes = [8, 32], strides = [1, 1]} : vector<8x96xf32> to vector<8x32xf32>
    %320 = vector.extract_strided_slice %310 {offsets = [0, 32], sizes = [8, 32], strides = [1, 1]} : vector<8x96xf32> to vector<8x32xf32>
    %321 = arith.addf %319, %320 : vector<8x32xf32>
    %322 = arith.negf %321 : vector<8x32xf32>
    %323 = math.exp %322 : vector<8x32xf32>
    %cst_99 = arith.constant 1.000000e+00 : f32
    %324 = vector.broadcast %cst_99 : f32 to vector<8x32xf32>
    %325 = arith.addf %324, %323 : vector<8x32xf32>
    %326 = arith.divf %324, %325 : vector<8x32xf32>
    %327 = vector.extract_strided_slice %305 {offsets = [0, 64], sizes = [8, 32], strides = [1, 1]} : vector<8x96xf32> to vector<8x32xf32>
    %328 = vector.extract_strided_slice %310 {offsets = [0, 64], sizes = [8, 32], strides = [1, 1]} : vector<8x96xf32> to vector<8x32xf32>
    %329 = arith.mulf %318, %328 : vector<8x32xf32>
    %330 = arith.addf %327, %329 : vector<8x32xf32>
    %331 = math.tanh %330 : vector<8x32xf32>
    %cst_100 = arith.constant 1.000000e+00 : f32
    %332 = vector.broadcast %cst_100 : f32 to vector<8x32xf32>
    %333 = arith.subf %332, %326 : vector<8x32xf32>
    %334 = arith.mulf %333, %331 : vector<8x32xf32>
    %335 = arith.mulf %326, %272 : vector<8x32xf32>
    %336 = arith.addf %334, %335 : vector<8x32xf32>
    %337 = vector.extract_strided_slice %238 {offsets = [24, 0], sizes = [8, 96], strides = [1, 1]} : vector<40x96xf32> to vector<8x96xf32>
    %c0_101 = arith.constant 0 : index
    %c0_102 = arith.constant 0 : index
    %338 = vector.load %arg15[%c0_101, %c0_102] : memref<32x96xf32, #tpu.memory_space<vmem>>, vector<32x96xf32>
    %c0_103 = arith.constant 0 : index
    %c0_104 = arith.constant 0 : index
    %339 = vector.load %arg17[%c0_103, %c0_104] : memref<1x96xf32, #tpu.memory_space<vmem>>, vector<1x96xf32>
    %cst_105 = arith.constant dense<0.000000e+00> : vector<8x96xf32>
    %340 = tpu.matmul %304, %338, %cst_105 {dimension_numbers = #tpu.dot_dimension_numbers<[1], [0], [0], [1], [0, 0, 1, 1], [], []>} : vector<8x32xf32>, vector<32x96xf32>, vector<8x96xf32> -> vector<8x96xf32>
    %341 = vector.broadcast %339 : vector<1x96xf32> to vector<8x96xf32>
    %342 = arith.addf %340, %341 : vector<8x96xf32>
    %343 = vector.extract_strided_slice %337 {offsets = [0, 0], sizes = [8, 32], strides = [1, 1]} : vector<8x96xf32> to vector<8x32xf32>
    %344 = vector.extract_strided_slice %342 {offsets = [0, 0], sizes = [8, 32], strides = [1, 1]} : vector<8x96xf32> to vector<8x32xf32>
    %345 = arith.addf %343, %344 : vector<8x32xf32>
    %346 = arith.negf %345 : vector<8x32xf32>
    %347 = math.exp %346 : vector<8x32xf32>
    %cst_106 = arith.constant 1.000000e+00 : f32
    %348 = vector.broadcast %cst_106 : f32 to vector<8x32xf32>
    %349 = arith.addf %348, %347 : vector<8x32xf32>
    %350 = arith.divf %348, %349 : vector<8x32xf32>
    %351 = vector.extract_strided_slice %337 {offsets = [0, 32], sizes = [8, 32], strides = [1, 1]} : vector<8x96xf32> to vector<8x32xf32>
    %352 = vector.extract_strided_slice %342 {offsets = [0, 32], sizes = [8, 32], strides = [1, 1]} : vector<8x96xf32> to vector<8x32xf32>
    %353 = arith.addf %351, %352 : vector<8x32xf32>
    %354 = arith.negf %353 : vector<8x32xf32>
    %355 = math.exp %354 : vector<8x32xf32>
    %cst_107 = arith.constant 1.000000e+00 : f32
    %356 = vector.broadcast %cst_107 : f32 to vector<8x32xf32>
    %357 = arith.addf %356, %355 : vector<8x32xf32>
    %358 = arith.divf %356, %357 : vector<8x32xf32>
    %359 = vector.extract_strided_slice %337 {offsets = [0, 64], sizes = [8, 32], strides = [1, 1]} : vector<8x96xf32> to vector<8x32xf32>
    %360 = vector.extract_strided_slice %342 {offsets = [0, 64], sizes = [8, 32], strides = [1, 1]} : vector<8x96xf32> to vector<8x32xf32>
    %361 = arith.mulf %350, %360 : vector<8x32xf32>
    %362 = arith.addf %359, %361 : vector<8x32xf32>
    %363 = math.tanh %362 : vector<8x32xf32>
    %cst_108 = arith.constant 1.000000e+00 : f32
    %364 = vector.broadcast %cst_108 : f32 to vector<8x32xf32>
    %365 = arith.subf %364, %358 : vector<8x32xf32>
    %366 = arith.mulf %365, %363 : vector<8x32xf32>
    %367 = arith.mulf %358, %304 : vector<8x32xf32>
    %368 = arith.addf %366, %367 : vector<8x32xf32>
    %369 = vector.extract_strided_slice %233 {offsets = [16, 0], sizes = [8, 96], strides = [1, 1]} : vector<40x96xf32> to vector<8x96xf32>
    %c0_109 = arith.constant 0 : index
    %c0_110 = arith.constant 0 : index
    %370 = vector.load %arg11[%c0_109, %c0_110] : memref<32x96xf32, #tpu.memory_space<vmem>>, vector<32x96xf32>
    %c0_111 = arith.constant 0 : index
    %c0_112 = arith.constant 0 : index
    %371 = vector.load %arg13[%c0_111, %c0_112] : memref<1x96xf32, #tpu.memory_space<vmem>>, vector<1x96xf32>
    %cst_113 = arith.constant dense<0.000000e+00> : vector<8x96xf32>
    %372 = tpu.matmul %336, %370, %cst_113 {dimension_numbers = #tpu.dot_dimension_numbers<[1], [0], [0], [1], [0, 0, 1, 1], [], []>} : vector<8x32xf32>, vector<32x96xf32>, vector<8x96xf32> -> vector<8x96xf32>
    %373 = vector.broadcast %371 : vector<1x96xf32> to vector<8x96xf32>
    %374 = arith.addf %372, %373 : vector<8x96xf32>
    %375 = vector.extract_strided_slice %369 {offsets = [0, 0], sizes = [8, 32], strides = [1, 1]} : vector<8x96xf32> to vector<8x32xf32>
    %376 = vector.extract_strided_slice %374 {offsets = [0, 0], sizes = [8, 32], strides = [1, 1]} : vector<8x96xf32> to vector<8x32xf32>
    %377 = arith.addf %375, %376 : vector<8x32xf32>
    %378 = arith.negf %377 : vector<8x32xf32>
    %379 = math.exp %378 : vector<8x32xf32>
    %cst_114 = arith.constant 1.000000e+00 : f32
    %380 = vector.broadcast %cst_114 : f32 to vector<8x32xf32>
    %381 = arith.addf %380, %379 : vector<8x32xf32>
    %382 = arith.divf %380, %381 : vector<8x32xf32>
    %383 = vector.extract_strided_slice %369 {offsets = [0, 32], sizes = [8, 32], strides = [1, 1]} : vector<8x96xf32> to vector<8x32xf32>
    %384 = vector.extract_strided_slice %374 {offsets = [0, 32], sizes = [8, 32], strides = [1, 1]} : vector<8x96xf32> to vector<8x32xf32>
    %385 = arith.addf %383, %384 : vector<8x32xf32>
    %386 = arith.negf %385 : vector<8x32xf32>
    %387 = math.exp %386 : vector<8x32xf32>
    %cst_115 = arith.constant 1.000000e+00 : f32
    %388 = vector.broadcast %cst_115 : f32 to vector<8x32xf32>
    %389 = arith.addf %388, %387 : vector<8x32xf32>
    %390 = arith.divf %388, %389 : vector<8x32xf32>
    %391 = vector.extract_strided_slice %369 {offsets = [0, 64], sizes = [8, 32], strides = [1, 1]} : vector<8x96xf32> to vector<8x32xf32>
    %392 = vector.extract_strided_slice %374 {offsets = [0, 64], sizes = [8, 32], strides = [1, 1]} : vector<8x96xf32> to vector<8x32xf32>
    %393 = arith.mulf %382, %392 : vector<8x32xf32>
    %394 = arith.addf %391, %393 : vector<8x32xf32>
    %395 = math.tanh %394 : vector<8x32xf32>
    %cst_116 = arith.constant 1.000000e+00 : f32
    %396 = vector.broadcast %cst_116 : f32 to vector<8x32xf32>
    %397 = arith.subf %396, %390 : vector<8x32xf32>
    %398 = arith.mulf %397, %395 : vector<8x32xf32>
    %399 = arith.mulf %390, %336 : vector<8x32xf32>
    %400 = arith.addf %398, %399 : vector<8x32xf32>
    %401 = vector.extract_strided_slice %238 {offsets = [16, 0], sizes = [8, 96], strides = [1, 1]} : vector<40x96xf32> to vector<8x96xf32>
    %c0_117 = arith.constant 0 : index
    %c0_118 = arith.constant 0 : index
    %402 = vector.load %arg15[%c0_117, %c0_118] : memref<32x96xf32, #tpu.memory_space<vmem>>, vector<32x96xf32>
    %c0_119 = arith.constant 0 : index
    %c0_120 = arith.constant 0 : index
    %403 = vector.load %arg17[%c0_119, %c0_120] : memref<1x96xf32, #tpu.memory_space<vmem>>, vector<1x96xf32>
    %cst_121 = arith.constant dense<0.000000e+00> : vector<8x96xf32>
    %404 = tpu.matmul %368, %402, %cst_121 {dimension_numbers = #tpu.dot_dimension_numbers<[1], [0], [0], [1], [0, 0, 1, 1], [], []>} : vector<8x32xf32>, vector<32x96xf32>, vector<8x96xf32> -> vector<8x96xf32>
    %405 = vector.broadcast %403 : vector<1x96xf32> to vector<8x96xf32>
    %406 = arith.addf %404, %405 : vector<8x96xf32>
    %407 = vector.extract_strided_slice %401 {offsets = [0, 0], sizes = [8, 32], strides = [1, 1]} : vector<8x96xf32> to vector<8x32xf32>
    %408 = vector.extract_strided_slice %406 {offsets = [0, 0], sizes = [8, 32], strides = [1, 1]} : vector<8x96xf32> to vector<8x32xf32>
    %409 = arith.addf %407, %408 : vector<8x32xf32>
    %410 = arith.negf %409 : vector<8x32xf32>
    %411 = math.exp %410 : vector<8x32xf32>
    %cst_122 = arith.constant 1.000000e+00 : f32
    %412 = vector.broadcast %cst_122 : f32 to vector<8x32xf32>
    %413 = arith.addf %412, %411 : vector<8x32xf32>
    %414 = arith.divf %412, %413 : vector<8x32xf32>
    %415 = vector.extract_strided_slice %401 {offsets = [0, 32], sizes = [8, 32], strides = [1, 1]} : vector<8x96xf32> to vector<8x32xf32>
    %416 = vector.extract_strided_slice %406 {offsets = [0, 32], sizes = [8, 32], strides = [1, 1]} : vector<8x96xf32> to vector<8x32xf32>
    %417 = arith.addf %415, %416 : vector<8x32xf32>
    %418 = arith.negf %417 : vector<8x32xf32>
    %419 = math.exp %418 : vector<8x32xf32>
    %cst_123 = arith.constant 1.000000e+00 : f32
    %420 = vector.broadcast %cst_123 : f32 to vector<8x32xf32>
    %421 = arith.addf %420, %419 : vector<8x32xf32>
    %422 = arith.divf %420, %421 : vector<8x32xf32>
    %423 = vector.extract_strided_slice %401 {offsets = [0, 64], sizes = [8, 32], strides = [1, 1]} : vector<8x96xf32> to vector<8x32xf32>
    %424 = vector.extract_strided_slice %406 {offsets = [0, 64], sizes = [8, 32], strides = [1, 1]} : vector<8x96xf32> to vector<8x32xf32>
    %425 = arith.mulf %414, %424 : vector<8x32xf32>
    %426 = arith.addf %423, %425 : vector<8x32xf32>
    %427 = math.tanh %426 : vector<8x32xf32>
    %cst_124 = arith.constant 1.000000e+00 : f32
    %428 = vector.broadcast %cst_124 : f32 to vector<8x32xf32>
    %429 = arith.subf %428, %422 : vector<8x32xf32>
    %430 = arith.mulf %429, %427 : vector<8x32xf32>
    %431 = arith.mulf %422, %368 : vector<8x32xf32>
    %432 = arith.addf %430, %431 : vector<8x32xf32>
    %433 = vector.extract_strided_slice %233 {offsets = [24, 0], sizes = [8, 96], strides = [1, 1]} : vector<40x96xf32> to vector<8x96xf32>
    %c0_125 = arith.constant 0 : index
    %c0_126 = arith.constant 0 : index
    %434 = vector.load %arg11[%c0_125, %c0_126] : memref<32x96xf32, #tpu.memory_space<vmem>>, vector<32x96xf32>
    %c0_127 = arith.constant 0 : index
    %c0_128 = arith.constant 0 : index
    %435 = vector.load %arg13[%c0_127, %c0_128] : memref<1x96xf32, #tpu.memory_space<vmem>>, vector<1x96xf32>
    %cst_129 = arith.constant dense<0.000000e+00> : vector<8x96xf32>
    %436 = tpu.matmul %400, %434, %cst_129 {dimension_numbers = #tpu.dot_dimension_numbers<[1], [0], [0], [1], [0, 0, 1, 1], [], []>} : vector<8x32xf32>, vector<32x96xf32>, vector<8x96xf32> -> vector<8x96xf32>
    %437 = vector.broadcast %435 : vector<1x96xf32> to vector<8x96xf32>
    %438 = arith.addf %436, %437 : vector<8x96xf32>
    %439 = vector.extract_strided_slice %433 {offsets = [0, 0], sizes = [8, 32], strides = [1, 1]} : vector<8x96xf32> to vector<8x32xf32>
    %440 = vector.extract_strided_slice %438 {offsets = [0, 0], sizes = [8, 32], strides = [1, 1]} : vector<8x96xf32> to vector<8x32xf32>
    %441 = arith.addf %439, %440 : vector<8x32xf32>
    %442 = arith.negf %441 : vector<8x32xf32>
    %443 = math.exp %442 : vector<8x32xf32>
    %cst_130 = arith.constant 1.000000e+00 : f32
    %444 = vector.broadcast %cst_130 : f32 to vector<8x32xf32>
    %445 = arith.addf %444, %443 : vector<8x32xf32>
    %446 = arith.divf %444, %445 : vector<8x32xf32>
    %447 = vector.extract_strided_slice %433 {offsets = [0, 32], sizes = [8, 32], strides = [1, 1]} : vector<8x96xf32> to vector<8x32xf32>
    %448 = vector.extract_strided_slice %438 {offsets = [0, 32], sizes = [8, 32], strides = [1, 1]} : vector<8x96xf32> to vector<8x32xf32>
    %449 = arith.addf %447, %448 : vector<8x32xf32>
    %450 = arith.negf %449 : vector<8x32xf32>
    %451 = math.exp %450 : vector<8x32xf32>
    %cst_131 = arith.constant 1.000000e+00 : f32
    %452 = vector.broadcast %cst_131 : f32 to vector<8x32xf32>
    %453 = arith.addf %452, %451 : vector<8x32xf32>
    %454 = arith.divf %452, %453 : vector<8x32xf32>
    %455 = vector.extract_strided_slice %433 {offsets = [0, 64], sizes = [8, 32], strides = [1, 1]} : vector<8x96xf32> to vector<8x32xf32>
    %456 = vector.extract_strided_slice %438 {offsets = [0, 64], sizes = [8, 32], strides = [1, 1]} : vector<8x96xf32> to vector<8x32xf32>
    %457 = arith.mulf %446, %456 : vector<8x32xf32>
    %458 = arith.addf %455, %457 : vector<8x32xf32>
    %459 = math.tanh %458 : vector<8x32xf32>
    %cst_132 = arith.constant 1.000000e+00 : f32
    %460 = vector.broadcast %cst_132 : f32 to vector<8x32xf32>
    %461 = arith.subf %460, %454 : vector<8x32xf32>
    %462 = arith.mulf %461, %459 : vector<8x32xf32>
    %463 = arith.mulf %454, %400 : vector<8x32xf32>
    %464 = arith.addf %462, %463 : vector<8x32xf32>
    %465 = vector.extract_strided_slice %238 {offsets = [8, 0], sizes = [8, 96], strides = [1, 1]} : vector<40x96xf32> to vector<8x96xf32>
    %c0_133 = arith.constant 0 : index
    %c0_134 = arith.constant 0 : index
    %466 = vector.load %arg15[%c0_133, %c0_134] : memref<32x96xf32, #tpu.memory_space<vmem>>, vector<32x96xf32>
    %c0_135 = arith.constant 0 : index
    %c0_136 = arith.constant 0 : index
    %467 = vector.load %arg17[%c0_135, %c0_136] : memref<1x96xf32, #tpu.memory_space<vmem>>, vector<1x96xf32>
    %cst_137 = arith.constant dense<0.000000e+00> : vector<8x96xf32>
    %468 = tpu.matmul %432, %466, %cst_137 {dimension_numbers = #tpu.dot_dimension_numbers<[1], [0], [0], [1], [0, 0, 1, 1], [], []>} : vector<8x32xf32>, vector<32x96xf32>, vector<8x96xf32> -> vector<8x96xf32>
    %469 = vector.broadcast %467 : vector<1x96xf32> to vector<8x96xf32>
    %470 = arith.addf %468, %469 : vector<8x96xf32>
    %471 = vector.extract_strided_slice %465 {offsets = [0, 0], sizes = [8, 32], strides = [1, 1]} : vector<8x96xf32> to vector<8x32xf32>
    %472 = vector.extract_strided_slice %470 {offsets = [0, 0], sizes = [8, 32], strides = [1, 1]} : vector<8x96xf32> to vector<8x32xf32>
    %473 = arith.addf %471, %472 : vector<8x32xf32>
    %474 = arith.negf %473 : vector<8x32xf32>
    %475 = math.exp %474 : vector<8x32xf32>
    %cst_138 = arith.constant 1.000000e+00 : f32
    %476 = vector.broadcast %cst_138 : f32 to vector<8x32xf32>
    %477 = arith.addf %476, %475 : vector<8x32xf32>
    %478 = arith.divf %476, %477 : vector<8x32xf32>
    %479 = vector.extract_strided_slice %465 {offsets = [0, 32], sizes = [8, 32], strides = [1, 1]} : vector<8x96xf32> to vector<8x32xf32>
    %480 = vector.extract_strided_slice %470 {offsets = [0, 32], sizes = [8, 32], strides = [1, 1]} : vector<8x96xf32> to vector<8x32xf32>
    %481 = arith.addf %479, %480 : vector<8x32xf32>
    %482 = arith.negf %481 : vector<8x32xf32>
    %483 = math.exp %482 : vector<8x32xf32>
    %cst_139 = arith.constant 1.000000e+00 : f32
    %484 = vector.broadcast %cst_139 : f32 to vector<8x32xf32>
    %485 = arith.addf %484, %483 : vector<8x32xf32>
    %486 = arith.divf %484, %485 : vector<8x32xf32>
    %487 = vector.extract_strided_slice %465 {offsets = [0, 64], sizes = [8, 32], strides = [1, 1]} : vector<8x96xf32> to vector<8x32xf32>
    %488 = vector.extract_strided_slice %470 {offsets = [0, 64], sizes = [8, 32], strides = [1, 1]} : vector<8x96xf32> to vector<8x32xf32>
    %489 = arith.mulf %478, %488 : vector<8x32xf32>
    %490 = arith.addf %487, %489 : vector<8x32xf32>
    %491 = math.tanh %490 : vector<8x32xf32>
    %cst_140 = arith.constant 1.000000e+00 : f32
    %492 = vector.broadcast %cst_140 : f32 to vector<8x32xf32>
    %493 = arith.subf %492, %486 : vector<8x32xf32>
    %494 = arith.mulf %493, %491 : vector<8x32xf32>
    %495 = arith.mulf %486, %432 : vector<8x32xf32>
    %496 = arith.addf %494, %495 : vector<8x32xf32>
    %497 = vector.extract_strided_slice %233 {offsets = [32, 0], sizes = [8, 96], strides = [1, 1]} : vector<40x96xf32> to vector<8x96xf32>
    %c0_141 = arith.constant 0 : index
    %c0_142 = arith.constant 0 : index
    %498 = vector.load %arg11[%c0_141, %c0_142] : memref<32x96xf32, #tpu.memory_space<vmem>>, vector<32x96xf32>
    %c0_143 = arith.constant 0 : index
    %c0_144 = arith.constant 0 : index
    %499 = vector.load %arg13[%c0_143, %c0_144] : memref<1x96xf32, #tpu.memory_space<vmem>>, vector<1x96xf32>
    %cst_145 = arith.constant dense<0.000000e+00> : vector<8x96xf32>
    %500 = tpu.matmul %464, %498, %cst_145 {dimension_numbers = #tpu.dot_dimension_numbers<[1], [0], [0], [1], [0, 0, 1, 1], [], []>} : vector<8x32xf32>, vector<32x96xf32>, vector<8x96xf32> -> vector<8x96xf32>
    %501 = vector.broadcast %499 : vector<1x96xf32> to vector<8x96xf32>
    %502 = arith.addf %500, %501 : vector<8x96xf32>
    %503 = vector.extract_strided_slice %497 {offsets = [0, 0], sizes = [8, 32], strides = [1, 1]} : vector<8x96xf32> to vector<8x32xf32>
    %504 = vector.extract_strided_slice %502 {offsets = [0, 0], sizes = [8, 32], strides = [1, 1]} : vector<8x96xf32> to vector<8x32xf32>
    %505 = arith.addf %503, %504 : vector<8x32xf32>
    %506 = arith.negf %505 : vector<8x32xf32>
    %507 = math.exp %506 : vector<8x32xf32>
    %cst_146 = arith.constant 1.000000e+00 : f32
    %508 = vector.broadcast %cst_146 : f32 to vector<8x32xf32>
    %509 = arith.addf %508, %507 : vector<8x32xf32>
    %510 = arith.divf %508, %509 : vector<8x32xf32>
    %511 = vector.extract_strided_slice %497 {offsets = [0, 32], sizes = [8, 32], strides = [1, 1]} : vector<8x96xf32> to vector<8x32xf32>
    %512 = vector.extract_strided_slice %502 {offsets = [0, 32], sizes = [8, 32], strides = [1, 1]} : vector<8x96xf32> to vector<8x32xf32>
    %513 = arith.addf %511, %512 : vector<8x32xf32>
    %514 = arith.negf %513 : vector<8x32xf32>
    %515 = math.exp %514 : vector<8x32xf32>
    %cst_147 = arith.constant 1.000000e+00 : f32
    %516 = vector.broadcast %cst_147 : f32 to vector<8x32xf32>
    %517 = arith.addf %516, %515 : vector<8x32xf32>
    %518 = arith.divf %516, %517 : vector<8x32xf32>
    %519 = vector.extract_strided_slice %497 {offsets = [0, 64], sizes = [8, 32], strides = [1, 1]} : vector<8x96xf32> to vector<8x32xf32>
    %520 = vector.extract_strided_slice %502 {offsets = [0, 64], sizes = [8, 32], strides = [1, 1]} : vector<8x96xf32> to vector<8x32xf32>
    %521 = arith.mulf %510, %520 : vector<8x32xf32>
    %522 = arith.addf %519, %521 : vector<8x32xf32>
    %523 = math.tanh %522 : vector<8x32xf32>
    %cst_148 = arith.constant 1.000000e+00 : f32
    %524 = vector.broadcast %cst_148 : f32 to vector<8x32xf32>
    %525 = arith.subf %524, %518 : vector<8x32xf32>
    %526 = arith.mulf %525, %523 : vector<8x32xf32>
    %527 = arith.mulf %518, %464 : vector<8x32xf32>
    %528 = arith.addf %526, %527 : vector<8x32xf32>
    %529 = vector.extract_strided_slice %238 {offsets = [0, 0], sizes = [8, 96], strides = [1, 1]} : vector<40x96xf32> to vector<8x96xf32>
    %c0_149 = arith.constant 0 : index
    %c0_150 = arith.constant 0 : index
    %530 = vector.load %arg15[%c0_149, %c0_150] : memref<32x96xf32, #tpu.memory_space<vmem>>, vector<32x96xf32>
    %c0_151 = arith.constant 0 : index
    %c0_152 = arith.constant 0 : index
    %531 = vector.load %arg17[%c0_151, %c0_152] : memref<1x96xf32, #tpu.memory_space<vmem>>, vector<1x96xf32>
    %cst_153 = arith.constant dense<0.000000e+00> : vector<8x96xf32>
    %532 = tpu.matmul %496, %530, %cst_153 {dimension_numbers = #tpu.dot_dimension_numbers<[1], [0], [0], [1], [0, 0, 1, 1], [], []>} : vector<8x32xf32>, vector<32x96xf32>, vector<8x96xf32> -> vector<8x96xf32>
    %533 = vector.broadcast %531 : vector<1x96xf32> to vector<8x96xf32>
    %534 = arith.addf %532, %533 : vector<8x96xf32>
    %535 = vector.extract_strided_slice %529 {offsets = [0, 0], sizes = [8, 32], strides = [1, 1]} : vector<8x96xf32> to vector<8x32xf32>
    %536 = vector.extract_strided_slice %534 {offsets = [0, 0], sizes = [8, 32], strides = [1, 1]} : vector<8x96xf32> to vector<8x32xf32>
    %537 = arith.addf %535, %536 : vector<8x32xf32>
    %538 = arith.negf %537 : vector<8x32xf32>
    %539 = math.exp %538 : vector<8x32xf32>
    %cst_154 = arith.constant 1.000000e+00 : f32
    %540 = vector.broadcast %cst_154 : f32 to vector<8x32xf32>
    %541 = arith.addf %540, %539 : vector<8x32xf32>
    %542 = arith.divf %540, %541 : vector<8x32xf32>
    %543 = vector.extract_strided_slice %529 {offsets = [0, 32], sizes = [8, 32], strides = [1, 1]} : vector<8x96xf32> to vector<8x32xf32>
    %544 = vector.extract_strided_slice %534 {offsets = [0, 32], sizes = [8, 32], strides = [1, 1]} : vector<8x96xf32> to vector<8x32xf32>
    %545 = arith.addf %543, %544 : vector<8x32xf32>
    %546 = arith.negf %545 : vector<8x32xf32>
    %547 = math.exp %546 : vector<8x32xf32>
    %cst_155 = arith.constant 1.000000e+00 : f32
    %548 = vector.broadcast %cst_155 : f32 to vector<8x32xf32>
    %549 = arith.addf %548, %547 : vector<8x32xf32>
    %550 = arith.divf %548, %549 : vector<8x32xf32>
    %551 = vector.extract_strided_slice %529 {offsets = [0, 64], sizes = [8, 32], strides = [1, 1]} : vector<8x96xf32> to vector<8x32xf32>
    %552 = vector.extract_strided_slice %534 {offsets = [0, 64], sizes = [8, 32], strides = [1, 1]} : vector<8x96xf32> to vector<8x32xf32>
    %553 = arith.mulf %542, %552 : vector<8x32xf32>
    %554 = arith.addf %551, %553 : vector<8x32xf32>
    %555 = math.tanh %554 : vector<8x32xf32>
    %cst_156 = arith.constant 1.000000e+00 : f32
    %556 = vector.broadcast %cst_156 : f32 to vector<8x32xf32>
    %557 = arith.subf %556, %550 : vector<8x32xf32>
    %558 = arith.mulf %557, %555 : vector<8x32xf32>
    %559 = arith.mulf %550, %496 : vector<8x32xf32>
    %560 = arith.addf %558, %559 : vector<8x32xf32>
    %561 = tpu.concatenate %272, %560 in 1 : vector<8x32xf32>, vector<8x32xf32> -> vector<8x64xf32>
    %562 = tpu.concatenate %336, %496 in 1 : vector<8x32xf32>, vector<8x32xf32> -> vector<8x64xf32>
    %563 = tpu.concatenate %400, %432 in 1 : vector<8x32xf32>, vector<8x32xf32> -> vector<8x64xf32>
    %564 = tpu.concatenate %464, %368 in 1 : vector<8x32xf32>, vector<8x32xf32> -> vector<8x64xf32>
    %565 = tpu.concatenate %528, %304 in 1 : vector<8x32xf32>, vector<8x32xf32> -> vector<8x64xf32>
    %566 = tpu.concatenate %561, %562, %563, %564, %565 in 1 : vector<8x64xf32>, vector<8x64xf32>, vector<8x64xf32>, vector<8x64xf32>, vector<8x64xf32> -> vector<8x320xf32>
    %c0_157 = arith.constant 0 : index
    %c0_158 = arith.constant 0 : index
    %567 = vector.load %arg18[%c0_157, %c0_158] : memref<320x32xf32, #tpu.memory_space<vmem>>, vector<320x32xf32>
    %cst_159 = arith.constant dense<0.000000e+00> : vector<8x32xf32>
    %568 = tpu.matmul %566, %567, %cst_159 {dimension_numbers = #tpu.dot_dimension_numbers<[1], [0], [0], [1], [0, 0, 1, 1], [], []>} : vector<8x320xf32>, vector<320x32xf32>, vector<8x32xf32> -> vector<8x32xf32>
    %c0_160 = arith.constant 0 : index
    %c0_161 = arith.constant 0 : index
    %569 = vector.load %arg19[%c0_160, %c0_161] : memref<1x32xf32, #tpu.memory_space<vmem>>, vector<1x32xf32>
    %570 = vector.broadcast %569 : vector<1x32xf32> to vector<8x32xf32>
    %571 = arith.addf %568, %570 : vector<8x32xf32>
    %c0_162 = arith.constant 0 : index
    %c0_163 = arith.constant 0 : index
    %c0_164 = arith.constant 0 : index
    %572 = vector.load %arg3[%c0_162, %c0_163, %c0_164] : memref<1x8x8xf32, #tpu.memory_space<vmem>>, vector<1x8x8xf32>
    %573 = vector.shape_cast %572 : vector<1x8x8xf32> to vector<8x8xf32>
    %c0_165 = arith.constant 0 : index
    %c0_166 = arith.constant 0 : index
    %574 = vector.load %arg20[%c0_165, %c0_166] : memref<32x32xf32, #tpu.memory_space<vmem>>, vector<32x32xf32>
    %cst_167 = arith.constant dense<0.000000e+00> : vector<8x32xf32>
    %575 = tpu.matmul %571, %574, %cst_167 {dimension_numbers = #tpu.dot_dimension_numbers<[1], [0], [0], [1], [0, 0, 1, 1], [], []>} : vector<8x32xf32>, vector<32x32xf32>, vector<8x32xf32> -> vector<8x32xf32>
    %cst_168 = arith.constant dense<0.000000e+00> : vector<8x32xf32>
    %576 = tpu.matmul %573, %575, %cst_168 {dimension_numbers = #tpu.dot_dimension_numbers<[1], [0], [0], [1], [0, 0, 1, 1], [], []>} : vector<8x8xf32>, vector<8x32xf32>, vector<8x32xf32> -> vector<8x32xf32>
    %c0_169 = arith.constant 0 : index
    %c0_170 = arith.constant 0 : index
    %577 = vector.load %arg21[%c0_169, %c0_170] : memref<1x32xf32, #tpu.memory_space<vmem>>, vector<1x32xf32>
    %578 = vector.broadcast %577 : vector<1x32xf32> to vector<8x32xf32>
    %579 = arith.addf %576, %578 : vector<8x32xf32>
    %cst_171 = arith.constant 0.000000e+00 : f32
    %580 = vector.broadcast %cst_171 : f32 to vector<8x32xf32>
    %581 = arith.maximumf %579, %580 : vector<8x32xf32>
    %c0_172 = arith.constant 0 : index
    %c0_173 = arith.constant 0 : index
    %582 = vector.load %arg22[%c0_172, %c0_173] : memref<32x32xf32, #tpu.memory_space<vmem>>, vector<32x32xf32>
    %cst_174 = arith.constant dense<0.000000e+00> : vector<8x32xf32>
    %583 = tpu.matmul %581, %582, %cst_174 {dimension_numbers = #tpu.dot_dimension_numbers<[1], [0], [0], [1], [0, 0, 1, 1], [], []>} : vector<8x32xf32>, vector<32x32xf32>, vector<8x32xf32> -> vector<8x32xf32>
    %cst_175 = arith.constant dense<0.000000e+00> : vector<8x32xf32>
    %584 = tpu.matmul %573, %583, %cst_175 {dimension_numbers = #tpu.dot_dimension_numbers<[1], [0], [0], [1], [0, 0, 1, 1], [], []>} : vector<8x8xf32>, vector<8x32xf32>, vector<8x32xf32> -> vector<8x32xf32>
    %c0_176 = arith.constant 0 : index
    %c0_177 = arith.constant 0 : index
    %585 = vector.load %arg23[%c0_176, %c0_177] : memref<1x32xf32, #tpu.memory_space<vmem>>, vector<1x32xf32>
    %586 = vector.broadcast %585 : vector<1x32xf32> to vector<8x32xf32>
    %587 = arith.addf %584, %586 : vector<8x32xf32>
    %cst_178 = arith.constant 0.000000e+00 : f32
    %588 = vector.broadcast %cst_178 : f32 to vector<8x32xf32>
    %589 = arith.maximumf %587, %588 : vector<8x32xf32>
    %c0_179 = arith.constant 0 : index
    %c0_180 = arith.constant 0 : index
    %590 = vector.load %arg24[%c0_179, %c0_180] : memref<32x5xf32, #tpu.memory_space<vmem>>, vector<32x5xf32>
    %cst_181 = arith.constant dense<0.000000e+00> : vector<8x5xf32>
    %591 = tpu.matmul %589, %590, %cst_181 {dimension_numbers = #tpu.dot_dimension_numbers<[1], [0], [0], [1], [0, 0, 1, 1], [], []>} : vector<8x32xf32>, vector<32x5xf32>, vector<8x5xf32> -> vector<8x5xf32>
    %cst_182 = arith.constant dense<0.000000e+00> : vector<8x5xf32>
    %592 = tpu.matmul %573, %591, %cst_182 {dimension_numbers = #tpu.dot_dimension_numbers<[1], [0], [0], [1], [0, 0, 1, 1], [], []>} : vector<8x8xf32>, vector<8x5xf32>, vector<8x5xf32> -> vector<8x5xf32>
    %c0_183 = arith.constant 0 : index
    %c0_184 = arith.constant 0 : index
    %593 = vector.load %arg25[%c0_183, %c0_184] : memref<1x5xf32, #tpu.memory_space<vmem>>, vector<1x5xf32>
    %594 = vector.broadcast %593 : vector<1x5xf32> to vector<8x5xf32>
    %595 = arith.addf %592, %594 : vector<8x5xf32>
    %cst_185 = arith.constant dense<0xFF800000> : vector<5xf32>
    %596 = vector.multi_reduction <maximumf>, %595, %cst_185 [0] : vector<8x5xf32> to vector<5xf32>
    %597 = vector.shape_cast %596 : vector<5xf32> to vector<1x5xf32>
    %cst_186 = arith.constant dense<0xFF800000> : vector<1xf32>
    %598 = vector.multi_reduction <maximumf>, %597, %cst_186 [1] : vector<1x5xf32> to vector<1xf32>
    %599 = vector.shape_cast %598 : vector<1xf32> to vector<1x1xf32>
    %600 = vector.broadcast %599 : vector<1x1xf32> to vector<1x5xf32>
    %601 = arith.subf %597, %600 : vector<1x5xf32>
    %602 = math.exp %601 : vector<1x5xf32>
    %cst_187 = arith.constant dense<0.000000e+00> : vector<1xf32>
    %603 = vector.multi_reduction <add>, %602, %cst_187 [1] : vector<1x5xf32> to vector<1xf32>
    %604 = vector.shape_cast %603 : vector<1xf32> to vector<1x1xf32>
    %605 = vector.broadcast %604 : vector<1x1xf32> to vector<1x5xf32>
    %606 = arith.divf %602, %605 : vector<1x5xf32>
    %c0_188 = arith.constant 0 : index
    %c0_189 = arith.constant 0 : index
    %c0_190 = arith.constant 0 : index
    %607 = vector.load %arg26[%c0_188, %c0_189, %c0_190] : memref<1x1x5xf32, #tpu.memory_space<vmem>>, vector<1x1x5xf32>
    %608 = vector.shape_cast %607 : vector<1x1x5xf32> to vector<1x5xf32>
    %609 = vector.shape_cast %606 : vector<1x5xf32> to vector<1x1x5xf32>
    tpu.vector_store %arg26[%c0_188, %c0_189, %c0_190], %609 {strides = array<i32>} : memref<1x1x5xf32, #tpu.memory_space<vmem>>, vector<1x1x5xf32>,
    return
  }
  func.func @transform_0(%arg0: i32) -> (i32, i32, i32) {
    %c0_i32 = arith.constant 0 : i32
    %c0_i32_0 = arith.constant 0 : i32
    %c0_i32_1 = arith.constant 0 : i32
    return %arg0, %c0_i32, %c0_i32_0 : i32, i32, i32
  }
  func.func @transform_1(%arg0: i32) -> (i32, i32, i32) {
    %c0_i32 = arith.constant 0 : i32
    %c0_i32_0 = arith.constant 0 : i32
    %c0_i32_1 = arith.constant 0 : i32
    return %arg0, %c0_i32, %c0_i32_0 : i32, i32, i32
  }
  func.func @transform_2(%arg0: i32) -> (i32, i32, i32) {
    %c0_i32 = arith.constant 0 : i32
    %c0_i32_0 = arith.constant 0 : i32
    %c0_i32_1 = arith.constant 0 : i32
    return %arg0, %c0_i32, %c0_i32_0 : i32, i32, i32
  }
  func.func @transform_3(%arg0: i32) -> (i32, i32) {
    %c0_i32 = arith.constant 0 : i32
    %c0_i32_0 = arith.constant 0 : i32
    %c0_i32_1 = arith.constant 0 : i32
    return %c0_i32, %c0_i32_0 : i32, i32
  }
  func.func @transform_4(%arg0: i32) -> (i32, i32) {
    %c0_i32 = arith.constant 0 : i32
    %c0_i32_0 = arith.constant 0 : i32
    %c0_i32_1 = arith.constant 0 : i32
    return %c0_i32, %c0_i32_0 : i32, i32
  }
  func.func @transform_5(%arg0: i32) -> (i32, i32) {
    %c0_i32 = arith.constant 0 : i32
    %c0_i32_0 = arith.constant 0 : i32
    %c0_i32_1 = arith.constant 0 : i32
    return %c0_i32, %c0_i32_0 : i32, i32
  }
  func.func @transform_6(%arg0: i32) -> (i32, i32) {
    %c0_i32 = arith.constant 0 : i32
    %c0_i32_0 = arith.constant 0 : i32
    %c0_i32_1 = arith.constant 0 : i32
    return %c0_i32, %c0_i32_0 : i32, i32
  }
  func.func @transform_7(%arg0: i32) -> (i32, i32) {
    %c0_i32 = arith.constant 0 : i32
    %c0_i32_0 = arith.constant 0 : i32
    %c0_i32_1 = arith.constant 0 : i32
    return %c0_i32, %c0_i32_0 : i32, i32
  }
  func.func @transform_8(%arg0: i32) -> (i32, i32) {
    %c0_i32 = arith.constant 0 : i32
    %c0_i32_0 = arith.constant 0 : i32
    %c0_i32_1 = arith.constant 0 : i32
    return %c0_i32, %c0_i32_0 : i32, i32
  }
  func.func @transform_9(%arg0: i32) -> (i32, i32) {
    %c0_i32 = arith.constant 0 : i32
    %c0_i32_0 = arith.constant 0 : i32
    %c0_i32_1 = arith.constant 0 : i32
    return %c0_i32, %c0_i32_0 : i32, i32
  }
  func.func @transform_10(%arg0: i32) -> (i32, i32) {
    %c0_i32 = arith.constant 0 : i32
    %c0_i32_0 = arith.constant 0 : i32
    %c0_i32_1 = arith.constant 0 : i32
    return %c0_i32, %c0_i32_0 : i32, i32
  }
  func.func @transform_11(%arg0: i32) -> (i32, i32) {
    %c0_i32 = arith.constant 0 : i32
    %c0_i32_0 = arith.constant 0 : i32
    %c0_i32_1 = arith.constant 0 : i32
    return %c0_i32, %c0_i32_0 : i32, i32
  }
  func.func @transform_12(%arg0: i32) -> (i32, i32) {
    %c0_i32 = arith.constant 0 : i32
    %c0_i32_0 = arith.constant 0 : i32
    %c0_i32_1 = arith.constant 0 : i32
    return %c0_i32, %c0_i32_0 : i32, i32
  }
  func.func @transform_13(%arg0: i32) -> (i32, i32) {
    %c0_i32 = arith.constant 0 : i32
    %c0_i32_0 = arith.constant 0 : i32
    %c0_i32_1 = arith.constant 0 : i32
    return %c0_i32, %c0_i32_0 : i32, i32
  }
  func.func @transform_14(%arg0: i32) -> (i32, i32) {
    %c0_i32 = arith.constant 0 : i32
    %c0_i32_0 = arith.constant 0 : i32
    %c0_i32_1 = arith.constant 0 : i32
    return %c0_i32, %c0_i32_0 : i32, i32
  }
  func.func @transform_15(%arg0: i32) -> (i32, i32) {
    %c0_i32 = arith.constant 0 : i32
    %c0_i32_0 = arith.constant 0 : i32
    %c0_i32_1 = arith.constant 0 : i32
    return %c0_i32, %c0_i32_0 : i32, i32
  }
  func.func @transform_16(%arg0: i32) -> (i32, i32) {
    %c0_i32 = arith.constant 0 : i32
    %c0_i32_0 = arith.constant 0 : i32
    %c0_i32_1 = arith.constant 0 : i32
    return %c0_i32, %c0_i32_0 : i32, i32
  }
  func.func @transform_17(%arg0: i32) -> (i32, i32) {
    %c0_i32 = arith.constant 0 : i32
    %c0_i32_0 = arith.constant 0 : i32
    %c0_i32_1 = arith.constant 0 : i32
    return %c0_i32, %c0_i32_0 : i32, i32
  }
  func.func @transform_18(%arg0: i32) -> (i32, i32) {
    %c0_i32 = arith.constant 0 : i32
    %c0_i32_0 = arith.constant 0 : i32
    %c0_i32_1 = arith.constant 0 : i32
    return %c0_i32, %c0_i32_0 : i32, i32
  }
  func.func @transform_19(%arg0: i32) -> (i32, i32) {
    %c0_i32 = arith.constant 0 : i32
    %c0_i32_0 = arith.constant 0 : i32
    %c0_i32_1 = arith.constant 0 : i32
    return %c0_i32, %c0_i32_0 : i32, i32
  }
  func.func @transform_20(%arg0: i32) -> (i32, i32) {
    %c0_i32 = arith.constant 0 : i32
    %c0_i32_0 = arith.constant 0 : i32
    %c0_i32_1 = arith.constant 0 : i32
    return %c0_i32, %c0_i32_0 : i32, i32
  }
  func.func @transform_21(%arg0: i32) -> (i32, i32) {
    %c0_i32 = arith.constant 0 : i32
    %c0_i32_0 = arith.constant 0 : i32
    %c0_i32_1 = arith.constant 0 : i32
    return %c0_i32, %c0_i32_0 : i32, i32
  }
  func.func @transform_22(%arg0: i32) -> (i32, i32) {
    %c0_i32 = arith.constant 0 : i32
    %c0_i32_0 = arith.constant 0 : i32
    %c0_i32_1 = arith.constant 0 : i32
    return %c0_i32, %c0_i32_0 : i32, i32
  }
  func.func @transform_23(%arg0: i32) -> (i32, i32) {
    %c0_i32 = arith.constant 0 : i32
    %c0_i32_0 = arith.constant 0 : i32
    %c0_i32_1 = arith.constant 0 : i32
    return %c0_i32, %c0_i32_0 : i32, i32
  }
  func.func @transform_24(%arg0: i32) -> (i32, i32) {
    %c0_i32 = arith.constant 0 : i32
    %c0_i32_0 = arith.constant 0 : i32
    %c0_i32_1 = arith.constant 0 : i32
    return %c0_i32, %c0_i32_0 : i32, i32
  }
  func.func @transform_25(%arg0: i32) -> (i32, i32, i32) {
    %c0_i32 = arith.constant 0 : i32
    %c0_i32_0 = arith.constant 0 : i32
    %c0_i32_1 = arith.constant 0 : i32
    return %arg0, %c0_i32, %c0_i32_0 : i32, i32, i32
  }
}

</mosaic_0001>

<bundles_post_ra>
// kernel: ivdetect_forward.1
= control target key start
LH: loop header
LB: loop body
LE: loop exit
PB: predicated region body
PF: predicated region fallthrough
CT: control target
= control target key end

     0   :  { %s7975_s0 = inlined_call_operand.hbm [shape: f32[2,8,16], index: 0, kind: input, shape index: {}]   ;;  %s7976_s1 = inlined_call_operand.vmem [shape: f32[2,48,64], index: 1, kind: input, shape index: {}]   ;;  %s7977_s2 = inlined_call_operand.hbm [shape: f32[2,8,8], index: 2, kind: input, shape index: {}]   ;;  %s7978_s3 = inlined_call_operand.hbm [shape: f32[16,96], index: 3, kind: input, shape index: {}]   ;;  %s7979_s4 = inlined_call_operand.vmem [shape: f32[1,96], index: 4, kind: input, shape index: {}]   ;;  %s7980_s5 = inlined_call_operand.hbm [shape: f32[64,384], index: 5, kind: input, shape index: {}]   ;;  %s7981_s6 = inlined_call_operand.vmem [shape: f32[128,384], index: 6, kind: input, shape index: {}]   ;;  %s7982_s7 = inlined_call_operand.vmem [shape: f32[1,384], index: 7, kind: input, shape index: {}]   ;;  %s7983_s8 = inlined_call_operand.vmem [shape: f32[1,384], index: 8, kind: input, shape index: {}]   ;;  %s7984_s9 = inlined_call_operand.hbm [shape: f32[32,96], index: 9, kind: input, shape index: {}]   ;;  %s7985_s10 = inlined_call_operand.hbm [shape: f32[32,96], index: 10, kind: input, shape index: {}]   ;;  %s7986_s11 = inlined_call_operand.vmem [shape: f32[1,96], index: 11, kind: input, shape index: {}]   ;;  %s7987_s12 = inlined_call_operand.vmem [shape: f32[1,96], index: 12, kind: input, shape index: {}]   ;;  %s7988_s13 = inlined_call_operand.hbm [shape: f32[32,96], index: 13, kind: input, shape index: {}]   ;;  %s7989_s14 = inlined_call_operand.hbm [shape: f32[32,96], index: 14, kind: input, shape index: {}]   ;;  %s7990_s15 = inlined_call_operand.vmem [shape: f32[1,96], index: 15, kind: input, shape index: {}]   ;;  %s7991_s16 = inlined_call_operand.vmem [shape: f32[1,96], index: 16, kind: input, shape index: {}]   ;;  %s7992_s17 = inlined_call_operand.vmem [shape: f32[320,32], index: 17, kind: input, shape index: {}]   ;;  %s7993_s18 = inlined_call_operand.vmem [shape: f32[1,32], index: 18, kind: input, shape index: {}]   ;;  %s7994_s19 = inlined_call_operand.hbm [shape: f32[32,32], index: 19, kind: input, shape index: {}]   ;;  %s7995_s20 = inlined_call_operand.vmem [shape: f32[1,32], index: 20, kind: input, shape index: {}]   ;;  %s7996_s21 = inlined_call_operand.hbm [shape: f32[32,32], index: 21, kind: input, shape index: {}]   ;;  %s7997_s22 = inlined_call_operand.vmem [shape: f32[1,32], index: 22, kind: input, shape index: {}]   ;;  %s7998_s23 = inlined_call_operand.vmem [shape: f32[32,5], index: 23, kind: input, shape index: {}]   ;;  %s7999_s24 = inlined_call_operand.hbm [shape: f32[1,5], index: 24, kind: input, shape index: {}]   ;;  %s8000_s25 = inlined_call_operand.hbm [shape: f32[2,1,5], index: 25, kind: output, shape index: {}]  }
   0x1   :  { %8036 = sst [smem:[#allocation58_spill]] %s7975_s0 }
   0x2   :  { %8037 = sst [smem:[#allocation59_spill]] %s7976_s1 }
   0x3   :  { %8038 = sst [smem:[#allocation60_spill]] %s7977_s2 }
   0x4   :  { %8039 = sst [smem:[#allocation61_spill]] %s7978_s3 }
   0x5   :  { %8040 = sst [smem:[#allocation62_spill]] %s7979_s4 }
   0x6   :  { %8041 = sst [smem:[#allocation63_spill]] %s7980_s5 }
   0x7   :  { %8042 = sst [smem:[#allocation64_spill]] %s7981_s6 }
   0x8   :  { %8043 = sst [smem:[#allocation65_spill]] %s7982_s7 }
   0x9   :  { %8044 = sst [smem:[#allocation66_spill]] %s7983_s8 }
   0xa   :  { %8045 = sst [smem:[#allocation67_spill]] %s7984_s9 }
   0xb   :  { %8046 = sst [smem:[#allocation68_spill]] %s7985_s10 }
   0xc   :  { %8047 = sst [smem:[#allocation69_spill]] %s7988_s13 }
   0xd   :  { %8048 = sst [smem:[#allocation70_spill]] %s7989_s14 }
   0xe   :  { %8049 = sst [smem:[#allocation71_spill]] %s7993_s18 }
   0xf   :  { %8050 = sst [smem:[#allocation72_spill]] %s7994_s19 }
  0x10   :  { %8051 = sst [smem:[#allocation73_spill]] %s7995_s20 }
  0x11   :  { %8052 = sst [smem:[#allocation74_spill]] %s7996_s21 }
  0x12   :  { %8053 = sst [smem:[#allocation75_spill]] %s7997_s22 }
  0x13   :  { %8054 = sst [smem:[#allocation76_spill]] %s7998_s23 }
  0x14   :  { %8055 = sst [smem:[#allocation77_spill]] %s7999_s24 }
  0x15   :  { %8056 = sst [smem:[#allocation78_spill]] %s8000_s25 }
  0x16   :  { %30 = vsyncpa [#allocation3], 0 }
  0x17   :  { %32 = vsyncpa [#allocation3 + $0x1], 0 }
  0x18   :  { %33 = vsyncpa [#allocation6], 0 }
  0x19   :  { %35 = vsyncpa [#allocation6 + $0x1], 0 }
  0x1a   :  { %36 = vsyncpa [#allocation9], 0 }
  0x1b   :  { %37 = vsyncpa [#allocation12], 0 }
  0x1c   :  { %38 = vsyncpa [#allocation15], 0 }
  0x1d   :  { %39 = vsyncpa [#allocation18], 0 }
  0x1e   :  { %40 = vsyncpa [#allocation4], 0 }
  0x1f   :  { %42 = vsyncpa [#allocation4 + $0x1], 0  ;;  %s6206_s29 = smov 0   ;;  %s6208_s2 = smov 0  }
  0x20   :  { %s6210_s6 = smov 0   ;;  %s6212_s30 = smov 0  }
  0x21 LB: > { %8057 = sst [smem:[#allocation29_spill]] %s6049_s6  ;;  %s6055_s7 = smov [#allocation7]   ;;  %s6053_s30 = sphi %s6212_s30, %s8163_s30   ;;  %s6049_s6 = sphi %s6210_s6, %s8165_s6   ;;  %s6045_s2 = sphi %s6208_s2, %s8167_s2   ;;  %s6041_s29 = sphi %s6206_s29, %s8166_s29  }
  0x22   : > { %s631_s3 = sshll.u32 %s6055_s7, 4  ;;  %s6227_s26 = sadd.s32 4294967295, %s6053_s30   ;;  %s632_s3 = int_to_ptr.vmem [resolvable:$true] %s631_s3 }
  0x23   : > { %p4522_p0 = scmp.ge.s32.totalorder %s6053_s30, 1  ;;  %p8009_p1 = scmp.eq.s32.totalorder %s6227_s26, 0 }
  0x24   : > { %p619_p2 = scmp.lt.s32.totalorder %s6053_s30, 3  ;;  %s6056_s8 = smov [#allocation8]  }
  0x25   : > { %s647_s27 = sshll.u32 %s6056_s8, 4  ;;  %s6057_s28 = smov [#allocation11]   ;;  %s6245_s27 = int_to_ptr.vmem [resolvable:$true] %s647_s27 }
  0x26   : > { %p6232_p3 = pnand %p4522_p0, %p619_p2  ;;  %s6247_s9 = sshll.u32 %s6057_s28, 4  ;;  %s683_s9 = int_to_ptr.vmem [resolvable:$true] %s6247_s9 }
  0x27   : > { %s5686_s0 = scalar_lea.vmem %s632_s3, 256  ;;  %p5694_p11 = scmp.lt.s32.totalorder %s632_s3, %s632_s3 }
  0x28   : > { %s8058_s1 = scalar_select %p6232_p3, 1, 0 }
  0x29   : > { %p5383_p5 = pneg %p6232_p3  ;;  %p5687_p8 = scmp.ne.s32.totalorder %s632_s3, %s5686_s0 }
  0x2a   : > { %p5695_p12 = scmp.lt.s32.totalorder %s5686_s0, %s5686_s0 }
  0x2b   : > { %p6241_p6 = pnand %p5383_p5, %p8009_p1 }
  0x2c   : > { %p5696_p13 = por %p5695_p12, %p5694_p11 }
  0x2d   : > { %p6251_p7 = pneg %p6241_p6 }
  0x2f   : > { %p5689_p9 = pnand %p5687_p8, %p6251_p7 }
  0x31   : > { %p5690_p10 = pneg %p5689_p9 }
  0x33   : > { %p5697_p0 = pnand %p5696_p13, %p5690_p10 }
  0x35   : > { %5700 = shalt.err (!%p5697_p0)
}
  0x36   : > { %s6058_s7 = smov 128   ;;  %s6059_s8 = smov 8  }
  0x37   : > { %s8061_s22 = sld [smem:[#allocation61_spill]]  ;;  %s5712_s23 = scalar_lea.vmem %s6245_s27, 3072 }
  0x38   : > { %p5713_p2 = scmp.ne.s32.totalorder %s6245_s27, %s5712_s23  ;;  %p5720_p9 = scmp.lt.s32.totalorder %s6245_s27, %s6245_s27 }
  0x39   : > { %p5721_p10 = scmp.lt.s32.totalorder %s5712_s23, %s5712_s23 }
  0x3a   : > { %p5715_p5 = pnand %p5713_p2, %p6251_p7 }
  0x3b   : > { %p5722_p11 = por %p5721_p10, %p5720_p9 }
  0x3c   : > { %p5716_p8 = pneg %p5715_p5 }
  0x3d   : > { %5386 = dma.hbm_to_vmem [thread:$0]  (!%p6241_p6), %s8061_s22, 256, %s632_s3, [#allocation6], %s6058_s7, %s6058_s7, %s6059_s8  }
  0x3e   : > { %p5723_p12 = pnand %p5722_p11, %p5716_p8 }
  0x40   : > { %5726 = shalt.err (!%p5723_p12)
}
  0x41   : > { %s6060_s0 = smov 384   ;;  %s6061_s20 = smov 24  }
  0x42   : > { %s8062_s3 = sld [smem:[#allocation63_spill]]  ;;  %s5738_s28 = scalar_lea.vmem %s683_s9, 512 }
  0x43   : > { %p5739_p13 = scmp.ne.s32.totalorder %s683_s9, %s5738_s28  ;;  %p5746_p5 = scmp.lt.s32.totalorder %s683_s9, %s683_s9 }
  0x44   : > { %p5747_p8 = scmp.lt.s32.totalorder %s5738_s28, %s5738_s28 }
  0x45   : > { %p5741_p0 = pnand %p5739_p13, %p6251_p7 }
  0x46   : > { %p5748_p9 = por %p5747_p8, %p5746_p5 }
  0x47   : > { %p5742_p2 = pneg %p5741_p0 }
  0x48   : > { %5389 = dma.hbm_to_vmem [thread:$0]  (!%p6241_p6), %s8062_s3, 3072, %s6245_s27, [#allocation9], %s6060_s0, %s6060_s0, %s6061_s20  }
  0x49   : > { %p5749_p10 = pnand %p5748_p9, %p5742_p2 }
  0x4b   : > { %5752 = shalt.err (!%p5749_p10)
}
  0x4c   : > { %s8063_s10 = sld [smem:[#allocation68_spill]]  ;;  %s6062_s20 = smov [#allocation14]  }
  0x4d   : > { %s714_s27 = sshll.u32 %s6062_s20, 4  ;;  %s6063_s0 = smov [#allocation17]   ;;  %s715_s27 = int_to_ptr.vmem [resolvable:$true] %s714_s27 }
  0x4e   : > { %s755_s25 = sshll.u32 %s6063_s0, 4  ;;  %s5764_s22 = scalar_lea.vmem %s715_s27, 512  ;;  %s756_s25 = int_to_ptr.vmem [resolvable:$true] %s755_s25 }
  0x4f   : > { %p5765_p11 = scmp.ne.s32.totalorder %s715_s27, %s5764_s22  ;;  %p5772_p0 = scmp.lt.s32.totalorder %s715_s27, %s715_s27 }
  0x50   : > { %p5773_p2 = scmp.lt.s32.totalorder %s5764_s22, %s5764_s22 }
  0x51   : > { %p5767_p12 = pnand %p5765_p11, %p6251_p7 }
  0x52   : > { %5395 = dma.hbm_to_vmem [thread:$0]  (!%p6241_p6), %s8063_s10, 512, %s683_s9, [#allocation12], %s6058_s7, %s6058_s7, %s6059_s8  }
  0x53   : > { %p5768_p13 = pneg %p5767_p12  ;;  %p5774_p5 = por %p5773_p2, %p5772_p0 }
  0x55   : > { %p5775_p8 = pnand %p5774_p5, %p5768_p13 }
  0x57   : > { %5778 = shalt.err (!%p5775_p8)
}
  0x58   : > { %s8064_s14 = sld [smem:[#allocation70_spill]]  ;;  %s5790_s3 = scalar_lea.vmem %s756_s25, 512 }
  0x59   : > { %p5791_p9 = scmp.ne.s32.totalorder %s756_s25, %s5790_s3  ;;  %p5798_p12 = scmp.lt.s32.totalorder %s756_s25, %s756_s25 }
  0x5a   : > { %p5799_p0 = scmp.lt.s32.totalorder %s5790_s3, %s5790_s3 }
  0x5b   : > { %p5793_p10 = pnand %p5791_p9, %p6251_p7 }
  0x5c   : > { %p5800_p13 = por %p5799_p0, %p5798_p12 }
  0x5d   : > { %p5794_p11 = pneg %p5793_p10 }
  0x5e   : > { %5401 = dma.hbm_to_vmem [thread:$0]  (!%p6241_p6), %s8064_s14, 512, %s715_s27, [#allocation15], %s6058_s7, %s6058_s7, %s6059_s8  }
  0x5f   : > { %p5801_p2 = pnand %p5800_p13, %p5794_p11 }
  0x61   : > { %5804 = shalt.err (!%p5801_p2)
}
  0x62   : > { %s8065_s21 = sld [smem:[#allocation74_spill]]  ;;  %s6064_s20 = smov [#allocation10]  }
  0x63   : > { %s669_s27 = sshll.u32 %s6064_s20, 4  ;;  %s6065_s0 = smov [#allocation13]   ;;  %s670_s27 = int_to_ptr.vmem [resolvable:$true] %s669_s27 }
  0x64   : > { %s701_s22 = sshll.u32 %s6065_s0, 4  ;;  %s5816_s18 = scalar_lea.vmem %s670_s27, 512  ;;  %s702_s22 = int_to_ptr.vmem [resolvable:$true] %s701_s22 }
  0x65   : > { %p5817_p5 = scmp.ne.s32.totalorder %s670_s27, %s5816_s18  ;;  %p5824_p10 = scmp.lt.s32.totalorder %s670_s27, %s670_s27 }
  0x66   : > { %p5825_p11 = scmp.lt.s32.totalorder %s5816_s18, %s5816_s18 }
  0x67   : > { %p5819_p8 = pnand %p5817_p5, %p6251_p7 }
  0x68   : > { %5407 = dma.hbm_to_vmem [thread:$0]  (!%p6241_p6), %s8065_s21, 512, %s756_s25, [#allocation18], %s6058_s7, %s6058_s7, %s6059_s8  }
  0x69   : > { %p5820_p9 = pneg %p5819_p8  ;;  %p5826_p12 = por %p5825_p11, %p5824_p10 }
  0x6b   : > { %p5827_p0 = pnand %p5826_p12, %p5820_p9 }
  0x6d   : > { %5830 = shalt.err (!%p5827_p0)
}
  0x6e   : > { %s8066_s3 = sld [smem:[#allocation67_spill]]  ;;  %s5842_s28 = scalar_lea.vmem %s702_s22, 512 }
  0x6f   : > { %p5843_p13 = scmp.ne.s32.totalorder %s702_s22, %s5842_s28  ;;  %p5850_p8 = scmp.lt.s32.totalorder %s702_s22, %s702_s22 }
  0x70   : > { %p5851_p10 = scmp.lt.s32.totalorder %s5842_s28, %s5842_s28 }
  0x71   : > { %p5845_p2 = pnand %p5843_p13, %p6251_p7 }
  0x72   : > { %p5852_p9 = por %p5851_p10, %p5850_p8 }
  0x73   : > { %p5846_p5 = pneg %p5845_p2 }
  0x74   : > { %5392 = dma.hbm_to_vmem [thread:$0]  (!%p6241_p6), %s8066_s3, 512, %s670_s27, [#allocation9], %s6058_s7, %s6058_s7, %s6059_s8  }
  0x75   : > { %p5853_p11 = pnand %p5852_p9, %p5846_p5 }
  0x77   : > { %5856 = shalt.err (!%p5853_p11)
}
  0x78   : > { %s8067_s13 = sld [smem:[#allocation69_spill]]  ;;  %s6066_s27 = smov [#allocation16]  }
  0x79   : > { %s739_s0 = sshll.u32 %s6066_s27, 4  ;;  %s6067_s18 = smov [#allocation19]   ;;  %s740_s0 = int_to_ptr.vmem [resolvable:$true] %s739_s0 }
  0x7a   : > { %s775_s25 = sshll.u32 %s6067_s18, 4  ;;  %s5868_s9 = scalar_lea.vmem %s740_s0, 512  ;;  %s776_s25 = int_to_ptr.vmem [resolvable:$true] %s775_s25 }
  0x7b   : > { %p5869_p12 = scmp.ne.s32.totalorder %s740_s0, %s5868_s9  ;;  %p5876_p2 = scmp.lt.s32.totalorder %s740_s0, %s740_s0 }
  0x7c   : > { %p5877_p5 = scmp.lt.s32.totalorder %s5868_s9, %s5868_s9 }
  0x7d   : > { %p5871_p0 = pnand %p5869_p12, %p6251_p7 }
  0x7e   : > { %5398 = dma.hbm_to_vmem [thread:$0]  (!%p6241_p6), %s8067_s13, 512, %s702_s22, [#allocation12], %s6058_s7, %s6058_s7, %s6059_s8  }
  0x7f   : > { %p5872_p13 = pneg %p5871_p0  ;;  %p5878_p8 = por %p5877_p5, %p5876_p2 }
  0x81   : > { %p5879_p10 = pnand %p5878_p8, %p5872_p13 }
  0x83   : > { %5882 = shalt.err (!%p5879_p10)
}
  0x84   : > { %s8068_s19 = sld [smem:[#allocation72_spill]]  ;;  %s5894_s28 = scalar_lea.vmem %s776_s25, 16 }
  0x85   : > { %p5895_p9 = scmp.ne.s32.totalorder %s776_s25, %s5894_s28  ;;  %s5901_s23 = scalar_lea.vmem %s776_s25, 32 }
  0x86   : > { %p5902_p0 = scmp.lt.s32.totalorder %s776_s25, %s776_s25  ;;  %p5903_p13 = scmp.lt.s32.totalorder %s5901_s23, %s5894_s28 }
  0x87   : > { %p5897_p11 = pnand %p5895_p9, %p6251_p7 }
  0x88   : > { %p5904_p2 = por %p5903_p13, %p5902_p0 }
  0x89   : > { %p5898_p12 = pneg %p5897_p11 }
  0x8a   : > { %5404 = dma.hbm_to_vmem [thread:$0]  (!%p6241_p6), %s8068_s19, 512, %s740_s0, [#allocation15], %s6058_s7, %s6058_s7, %s6059_s8  }
  0x8b   : > { %p5905_p5 = pnand %p5904_p2, %p5898_p12 }
  0x8d   : > { %5908 = shalt.err (!%p5905_p5)
}
  0x8e   : > { %s8069_s24 = sld [smem:[#allocation77_spill]]  ;;  %s4521_s5 = sadd.s32 4294967294, %s6053_s30  }
  0x8f   : > { %s6347_s4 = sadd.s32 1, %s6053_s30   ;;  %s55_s7 = sadd.s32 1, %s6049_s6 }
  0x90   : > { %8070 = sst [smem:[#allocation30_spill]] %s6347_s4  ;;  %s52_s8 = ssub.s32 %s6053_s30, %s6347_s4 }
  0x91   : > { %p62_p7 = scmp.ne.s32.totalorder %s6049_s6, %s6045_s2  ;;  %p53_p8 = scmp.eq.s32.totalorder %s52_s8, 0 }
  0x92   : > { %p63_p10 = scmp.eq.s32.totalorder %s6053_s30, 0  ;;  %p68_p9 = scmp.ne.s32.totalorder %s6045_s2, %s6041_s29 }
  0x93   : > { %p606_p11 = scmp.eq.s32.totalorder %s6227_s26, 1  ;;  %p612_p13 = scmp.eq.s32.totalorder %s4521_s5, 1 }
  0x94   : > { %5410 = dma.hbm_to_vmem [thread:$0]  (!%p6241_p6), %s8069_s24, 16, %s776_s25, [#allocation18]  }
  0x95   : > { %s6359_s0 = scalar_select %p53_p8, %s6049_s6, %s55_s7  }
  0x96   : > { %p64_p12 = por %p63_p10, %p62_p7  ;;  %p6363_p0 = por %p8009_p1, %p68_p9 }
  0x97   : > { %8071 = sst [smem:[#allocation31_spill]] %s6359_s0  ;;  %p6367_p6 = por %p606_p11, %p62_p7 }
  0x98   : > { %s8072_s18 = scalar_select %p6363_p0, 1, 0 }
  0x99   : > { %s8073_s25 = scalar_select %p6367_p6, 1, 0 }
  0x9a   : > { %p5431_p2 = scmp.lt.s32.totalorder %s6053_s30, 2  ;;  %s786_s9 = sand.u32 1, %s6049_s6  }
  0x9b   : > { %p6373_p5 = por %p612_p13, %p68_p9  ;;  %s6377_s3 = sshll.u32 %s786_s9, 3 }
  0x9c   : > { %s4534_s28 = sshll.u32 %s6053_s30, 7  ;;  %s8075_s27 = sld [smem:[#allocation58_spill]] }
  0x9d   : > { %s8074_s22 = scalar_select %p6373_p5, 1, 0 }
  0x9e   : > { %s790_s8 = scalar_lea.vmem [#allocation2], %s6377_s3  ;;  %p6386_p7 = pnand %p5431_p2, %p64_p12 }
  0x9f   : > { %s797_s5 = sshll.u32 %s790_s8, 4  ;;  %s8077_s19 = sld [smem:[#allocation60_spill]]  ;;  %s798_s5 = int_to_ptr.vmem [resolvable:$true] %s797_s5 }
  0xa0   : > { %s787_s23 = scalar_lea.sflag [#allocation3], %s786_s9  ;;  %p5911_p10 = pneg %p6386_p7 }
  0xa2   : > { %s6383_s7 = scalar_lea.hbm %s8075_s27, %s4534_s28  ;;  %s5914_s0 = scalar_lea.hbm %s8075_s27, 256 }
  0xa3   : > { %s5909_s20 = scalar_lea.hbm %s6383_s7, 128  ;;  %p5915_p12 = scmp.lt.s32.totalorder %s6383_s7, %s8075_s27 }
  0xa4   : > { %p5910_p8 = scmp.ne.s32.totalorder %s6383_s7, %s5909_s20  ;;  %p5916_p13 = scmp.lt.s32.totalorder %s5914_s0, %s5909_s20 }
  0xa5   : > { %s6393_s21 = scalar_lea.hbm %s8077_s19, %s4534_s28 }
  0xa6   : > { %p5912_p9 = pnand %p5911_p10, %p5910_p8  ;;  %p5917_p2 = por %p5916_p13, %p5915_p12 }
  0xa8   : > { %p5913_p11 = pneg %p5912_p9 }
  0xaa   : > { %p5918_p4 = pnand %p5917_p2, %p5913_p11 }
  0xac   : > { %5921 = shalt.err (!%p5918_p4)
}
  0xad   : > { %s5922_s13 = scalar_lea.vmem %s798_s5, 128  ;;  %s6068_s14 = smov [#allocation2]  }
  0xae   : > { %p5923_p1 = scmp.ne.s32.totalorder %s798_s5, %s5922_s13  ;;  %s5927_s9 = sshll.u32 %s6068_s14, 4  ;;  %s5928_s9 = int_to_ptr.vmem [resolvable:$false] %s5927_s9 }
  0xaf   : > { %s5929_s24 = scalar_lea.vmem %s5928_s9, 256  ;;  %p5930_p9 = scmp.lt.s32.totalorder %s798_s5, %s5928_s9 }
  0xb0   : > { %p5925_p5 = pnand %p5923_p1, %p5911_p10  ;;  %p5931_p6 = scmp.lt.s32.totalorder %s5929_s24, %s5922_s13 }
  0xb2   : > { %p5926_p8 = pneg %p5925_p5  ;;  %p5932_p0 = por %p5931_p6, %p5930_p9 }
  0xb4   : > { %p5933_p3 = pnand %p5932_p0, %p5926_p8 }
  0xb6   : > { %5936 = shalt.err (!%p5933_p3)
}
  0xb7   : > { %5414 = dma.hbm_to_vmem [thread:$0]  (!%p6386_p7), %s6383_s7, 128, %s798_s5, %s787_s23  }
  0xb8   : > { %s812_s6 = sand.u32 1, %s6053_s30   ;;  %s816_s4 = scalar_lea.vmem [#allocation5], %s6377_s3 }
  0xb9   : > { %s823_s0 = sshll.u32 %s816_s4, 4  ;;  %s813_s28 = scalar_lea.sflag [#allocation6], %s812_s6  ;;  %s824_s0 = int_to_ptr.vmem [resolvable:$true] %s823_s0 }
  0xba   : > { %s5937_s20 = scalar_lea.hbm %s6393_s21, 128  ;;  %s5942_s14 = scalar_lea.hbm %s8077_s19, 256 }
  0xbb   : > { %p5938_p1 = scmp.ne.s32.totalorder %s6393_s21, %s5937_s20  ;;  %p5943_p0 = scmp.lt.s32.totalorder %s6393_s21, %s8077_s19 }
  0xbc   : > { %p5944_p6 = scmp.lt.s32.totalorder %s5942_s14, %s5937_s20 }
  0xbd   : > { %p5940_p3 = pnand %p5938_p1, %p5911_p10 }
  0xbe   : > { %p5945_p5 = por %p5944_p6, %p5943_p0 }
  0xbf   : > { %p5941_p4 = pneg %p5940_p3 }
  0xc1   : > { %p5946_p11 = pnand %p5945_p5, %p5941_p4 }
  0xc3   : > { %5949 = shalt.err (!%p5946_p11)
}
  0xc4   : > { %s5950_s3 = scalar_lea.vmem %s824_s0, 128  ;;  %s6069_s7 = smov [#allocation5]  }
  0xc5   : > { %p5951_p12 = scmp.ne.s32.totalorder %s824_s0, %s5950_s3  ;;  %s5955_s5 = sshll.u32 %s6069_s7, 4  ;;  %s5956_s5 = int_to_ptr.vmem [resolvable:$false] %s5955_s5 }
  0xc6   : > { %s5957_s23 = scalar_lea.vmem %s5956_s5, 256  ;;  %p5958_p8 = scmp.lt.s32.totalorder %s824_s0, %s5956_s5 }
  0xc7   : > { %p5953_p13 = pnand %p5951_p12, %p5911_p10  ;;  %p5959_p9 = scmp.lt.s32.totalorder %s5957_s23, %s5950_s3 }
  0xc9   : > { %p5954_p2 = pneg %p5953_p13  ;;  %p5960_p1 = por %p5959_p9, %p5958_p8 }
  0xcb   : > { %p5961_p3 = pnand %p5960_p1, %p5954_p2 }
  0xcd   : > { %5964 = shalt.err (!%p5961_p3)
}
  0xce   : > { %5417 = dma.hbm_to_vmem [thread:$0]  (!%p6386_p7), %s6393_s21, 128, %s824_s0, %s813_s28  }
  0xcf   : > { %p8078_p4 = scmp.ne.s32.totalorder %s8058_s1, 0 }
  0xd1   : > { %832 = sbr.rel (%p8078_p4) target bundleno = 7131 (0x1bdb), region = 120 }
  0xd6   : > { %s6438_s6 = sand.u32 1, %s6045_s2   ;;  %p8079_p10 = scmp.ne.s32.totalorder %s8072_s18, 0 }
  0xd7   : > { %s4538_s4 = sshll.u32 %s6438_s6, 3  ;;  %s835_s20 = scalar_lea.sflag [#allocation3], %s6438_s6 }
  0xd8   : > { %s6442_s8 = scalar_lea.vmem [#allocation2], %s4538_s4 }
  0xd9   : > { %6008 = dma.done.wait (%p8079_p10), %s835_s20, 128  }
  0xda   : > { %6010 = vsyncadd (%p8079_p10), %s835_s20, 4294967168  ;;  %s843_s10 = sand.u32 1, %s6227_s26   ;;  %s6449_s1 = scalar_lea.vmem [#allocation5], %s4538_s4 }
  0xdb   : > { %s844_s21 = scalar_lea.sflag [#allocation6], %s843_s10 }
  0xdc   : > { %6012 = dma.done.wait (%p8079_p10), %s844_s21, 128  }
  0xdd   : > { %6014 = vsyncadd (%p8079_p10), %s844_s21, 4294967168  ;;  %p8080_p7 = scmp.eq.s32.totalorder %s6227_s26, 0 }
  0xdf   : > { %6016 = dma.done.wait (%p8080_p7), [#allocation6], 256   ;;  %p8081_p0 = pmov %p8080_p7 }
  0xe1   : > { %6018 = vsyncadd (%p8081_p0), [#allocation6], 4294967040  ;;  %p8082_p6 = pmov %p8081_p0 }
  0xe2   : > { %p8083_p5 = pmov %p8081_p0 }
  0xe3   : > { %6020 = dma.done.wait (%p8082_p6), [#allocation9], 3584  }
  0xe4   : > { %6022 = vsyncadd (%p8083_p5), [#allocation9], 4294963712  ;;  %p8084_p11 = pmov %p8081_p0 }
  0xe5   : > { %p8085_p12 = pmov %p8081_p0 }
  0xe6   : > { %6024 = dma.done.wait (%p8084_p11), [#allocation12], 1024  }
  0xe7   : > { %6026 = vsyncadd (%p8085_p12), [#allocation12], 4294966272  ;;  %p8086_p13 = pmov %p8081_p0 }
  0xe8   : > { %p8087_p2 = pmov %p8081_p0 }
  0xe9   : > { %6028 = dma.done.wait (%p8086_p13), [#allocation15], 1024  }
  0xea   : > { %6030 = vsyncadd (%p8087_p2), [#allocation15], 4294966272  ;;  %p8088_p8 = pmov %p8081_p0 }
  0xeb   : > { %p8089_p9 = pmov %p8081_p0 }
  0xec   : > { %6032 = dma.done.wait (%p8088_p8), [#allocation18], 528  }
  0xed   : > { %6034 = vsyncadd (%p8089_p9), [#allocation18], 4294966768  ;;  %p959_p1 = scmp.lt.s32.totalorder %s6227_s26, 1  ;;  %v8013_v0 = vmov 0.0   ;;  %vm6071_vm0 = vmmov 0   ;;  %v966_v1 = vld [vmem:[#allocation7 + $0x8] sm:$0xff] }
  0xee   : > { %4875 = vmatprep.subr.mxu0 %v8013_v0  ;;  %4879 = vmatprep.mubr.msk.f32.mxu0 %vm6071_vm0, %v8013_v0  ;;  %v1094_v2 = vld [vmem:[#allocation8 + $0xb0] sm:$0xff]  ;;  %v1093_v3 = vld [vmem:[#allocation8 + $0xa8] sm:$0xff]  ;;  %v1091_v5 = vld [vmem:[#allocation8 + $0x98] sm:$0xff]  ;;  %vm974_vm1 = vcmask 130048   ;;  %s8090_s14 = sld [smem:[#allocation59_spill]]  ;;  %vm1113_vm2 = vcmask 523264  }
  0xef   : > { %1196 = vmatprep.mubr.f32.mxu1 %v8013_v0  ;;  %s960_s18 = scalar_select %p959_p1, %s6227_s26, 1  ;;  %4876 = vmatpush3.msra.mxu0 %v966_v1  ;;  %v965_v4 = vld [vmem:[#allocation7] sm:$0xff]  ;;  %v1088_v8 = vld [vmem:[#allocation8 + $0x80] sm:$0xff]  ;;  %v1087_v9 = vld [vmem:[#allocation8 + $0x78] sm:$0xff]  ;;  %vm2392_vm3 = vcmask 261120   ;;  %vm3917_vm4 = vcmask 64512  }
  0xf0   : > { %1148 = vmatprep.subr.mxu1 %v1094_v2  ;;  %v964_v6 = vld [vmem:[%s6442_s8] sm:$0xff]  ;;  %4877 = vmatprep.subr.mxu0 %v8013_v0  ;;  %v1085_v10 = vld [vmem:[#allocation8 + $0x68] sm:$0xff]  ;;  %v1084_v11 = vld [vmem:[#allocation8 + $0x60] sm:$0xff]  ;;  %s8091_s7 = sld [smem:[#allocation64_spill]]  ;;  %s6072_s24 = smov 64   ;;  %vm4301_vm5 = vcmask 39936  }
  0xf1   : > { %s5340_s0 = smul.u32 48, %s960_s18  ;;  %1149 = vmatpush1.msra.mxu1 %v1093_v3  ;;  %v1090_v7 = vld [vmem:[#allocation8 + $0x90] sm:$0xff]  ;;  %4878 = vmatpush3.msra.mxu0 %v965_v4  ;;  %v1081_v14 = vld [vmem:[#allocation8 + $0x48] sm:$0xff]  ;;  %v1079_v15 = vld [vmem:[#allocation8 + $0x38] sm:$0xff]  ;;  %s8113_s23 = sld [smem:[#allocation66_spill]]  ;;  %vm4320_vm6 = vcmask 32768  }
  0xf2   : > { %1150 = vmatprep.subr.mxu1 %v1091_v5  ;;  %4880 = vmatmul.mubr.msk.f32.vlgmr.msra.gmra.mxu0 %vm974_vm1, %v964_v6  ;;  %v1082_v12 = vld [vmem:[#allocation8 + $0x50] sm:$0xff]  ;;  %v1076_v17 = vld [vmem:[#allocation8 + $0x20] sm:$0xff]  ;;  %v1075_v18 = vld [vmem:[#allocation8 + $0x18] sm:$0xff]  ;;  %s6074_s20 = smov 96   ;;  %s8155_s5 = sld [smem:[#allocation71_spill]] }
  0xf3   : > { %1151 = vmatpush1.msra.mxu1 %v1090_v7  ;;  %v1078_v16 = vld [vmem:[#allocation8 + $0x30] sm:$0xff]  ;;  %v1073_v19 = vld [vmem:[#allocation8 + $0x8] sm:$0xff]  ;;  %v1095_v20 = vld [vmem:[#allocation8 + $0xb8] sm:$0xff]  ;;  %s8156_s4 = sld [smem:[#allocation73_spill]]  ;;  %s4323_s18 = scalar_lea.sflag [#allocation4], %s6438_s6 }
  0xf4   : > { %s6486_s9 = scalar_lea.vmem %s8090_s14, %s5340_s0  ;;  %1152 = vmatprep.subr.mxu1 %v1088_v8  ;;  %v1072_v21 = vld [vmem:[#allocation8] sm:$0xff]  ;;  %4882 = vmatprep.subr.mxu0 %v1095_v20  ;;  %v1089_v26 = vld [vmem:[#allocation8 + $0x88] sm:$0xff]  ;;  %v1086_v32 = vld [vmem:[#allocation8 + $0x70] sm:$0xff]  ;;  %s8101_s0 = sld [smem:[#allocation62_spill]] }
  0xf5   : > { %1153 = vmatpush1.msra.mxu1 %v1087_v9  ;;  %v1066_v13 = vld [vmem:[%s6486_s9] sm:$0xff]  ;;  %4883 = vmatpush3.msra.mxu0 %v1095_v20  ;;  %v1092_v23 = vld [vmem:[#allocation8 + $0xa0] sm:$0xff]  ;;  %v6520_v29 = vld [vmem:[%s6486_s9 + $0x8] sm:$0xff]  ;;  %s8102_s14 = sld [smem:[#allocation65_spill]]  ;;  %p8160_p4 = scmp.ne.s32.totalorder %s8073_s25, 0 }
  0xf6   : > { %1154 = vmatprep.subr.mxu1 %v1085_v10  ;;  %4898 = vmatprep.mubr.msk.f32.mxu0 %vm1113_vm2, %v1066_v13  ;;  %v6493_v22 = vld [vmem:[%s8091_s7 + $0x170] sm:$0xff]  ;;  %v6498_v24 = vld [vmem:[%s8091_s7 + $0x168] sm:$0xff]  ;;  %v6503_v25 = vld [vmem:[%s8091_s7 + $0x158] sm:$0xff]  ;;  %s8157_s10 = sld [smem:[#allocation76_spill]]  ;;  %s6075_s28 = smov [#allocation20]  }
  0xf7   : > { %1155 = vmatpush1.msra.mxu1 %v1084_v11  ;;  %8092 = vst [vmem:[#allocation32_spill] sm:$0xff] %v6493_v22  ;;  %4884 = vmatprep.subr.mxu0 %v1092_v23  ;;  %v6510_v27 = vld [vmem:[%s8091_s7 + $0x150] sm:$0xff]  ;;  %v6516_v28 = vld [vmem:[%s8091_s7 + $0x140] sm:$0xff]  ;;  %v6526_v30 = vld [vmem:[%s8091_s7 + $0x138] sm:$0xff]  ;;  %s8159_s8 = sld [smem:[#allocation78_spill]]  ;;  %s5969_s13 = sshll.u32 %s6075_s28, 4  ;;  %s5970_s13 = int_to_ptr.vmem [resolvable:$false] %s5969_s13 }
  0xf8   : > { %1156 = vmatprep.subr.mxu1 %v1082_v12  ;;  %4885 = vmatpush3.msra.mxu0 %v1092_v23  ;;  %v6532_v31 = vld [vmem:[%s8091_s7 + $0x128] sm:$0xff]  ;;  %v6538_v33 = vld [vmem:[%s8091_s7 + $0x120] sm:$0xff]  ;;  %v6546_v34 = vld [vmem:[%s8091_s7 + $0x110] sm:$0xff] }
  0xf9   : > { %1157 = vmatpush1.msra.mxu1 %v1081_v14  ;;  %4886 = vmatprep.subr.mxu0 %v1089_v26  ;;  %v6550_v35 = vld [vmem:[%s6486_s9 + $0x10] sm:$0xff]  ;;  %v6556_v36 = vld [vmem:[%s8091_s7 + $0x108] sm:$0xff]  ;;  %v6562_v37 = vld [vmem:[%s8091_s7 + $0xf8] sm:$0xff] }
  0xfa   : > { %1158 = vmatprep.subr.mxu1 %v1079_v15  ;;  %4887 = vmatpush3.msra.mxu0 %v1089_v26  ;;  %v1083_v38 = vld [vmem:[#allocation8 + $0x58] sm:$0xff]  ;;  %v6568_v39 = vld [vmem:[%s8091_s7 + $0xf0] sm:$0xff]  ;;  %v6576_v40 = vld [vmem:[%s8091_s7 + $0xe0] sm:$0xff]  ;;  %v1098_v26 = vlaneseq }
  0xfb   : > { %1159 = vmatpush1.msra.mxu1 %v1078_v16  ;;  %4888 = vmatprep.subr.mxu0 %v1086_v32  ;;  %v6580_v41 = vld [vmem:[%s6486_s9 + $0x18] sm:$0xff]  ;;  %v6592_v43 = vld [vmem:[%s8091_s7 + $0xc8] sm:$0xff]  ;;  %v1080_v44 = vld [vmem:[#allocation8 + $0x40] sm:$0xff] }
  0xfc   : > { %1160 = vmatprep.subr.mxu1 %v1076_v17  ;;  %4889 = vmatpush3.msra.mxu0 %v1086_v32  ;;  %v6586_v42 = vld [vmem:[%s8091_s7 + $0xd8] sm:$0xff]  ;;  %v6598_v45 = vld [vmem:[%s8091_s7 + $0xc0] sm:$0xff]  ;;  %v6606_v46 = vld [vmem:[%s8091_s7 + $0xb0] sm:$0xff] }
  0xfd   : > { %1161 = vmatpush1.msra.mxu1 %v1075_v18  ;;  %4890 = vmatprep.subr.mxu0 %v1083_v38  ;;  %v6610_v47 = vld [vmem:[%s6486_s9 + $0x20] sm:$0xff]  ;;  %v6616_v48 = vld [vmem:[%s8091_s7 + $0xa8] sm:$0xff]  ;;  %v6622_v49 = vld [vmem:[%s8091_s7 + $0x98] sm:$0xff] }
  0xfe   : > { %1162 = vmatprep.subr.mxu1 %v1073_v19  ;;  %4891 = vmatpush3.msra.mxu0 %v1083_v38  ;;  %v1077_v50 = vld [vmem:[#allocation8 + $0x28] sm:$0xff]  ;;  %v6628_v51 = vld [vmem:[%s8091_s7 + $0x90] sm:$0xff]  ;;  %v6636_v52 = vld [vmem:[%s8091_s7 + $0x80] sm:$0xff] }
  0xff   : > { %1163 = vmatpush1.msra.mxu1 %v1072_v21  ;;  %4892 = vmatprep.subr.mxu0 %v1080_v44  ;;  %v6640_v53 = vld [vmem:[%s6486_s9 + $0x28] sm:$0xff]  ;;  %v6646_v54 = vld [vmem:[%s8091_s7 + $0x78] sm:$0xff]  ;;  %v1074_v55 = vld [vmem:[#allocation8 + $0x10] sm:$0xff]  ;;  %s6073_s9 = smov 32  }
 0x100   : > { %4553 = vmatmul.mubr.msk.f32.vlgmr.msra.gmra.mxu1 %vm1113_vm2, %v1066_v13  ;;  %1393 = vmatprep.subr.mxu1 %v6493_v22  ;;  %v6652_v56 = vld [vmem:[%s8091_s7 + $0x68] sm:$0xff]  ;;  %v6658_v57 = vld [vmem:[%s8091_s7 + $0x60] sm:$0xff]  ;;  %v6666_v58 = vld [vmem:[%s8091_s7 + $0x50] sm:$0xff] }
 0x101   : > { %1394 = vmatpush1.msra.mxu1 %v6498_v24  ;;  %1202 = vmatprep.mubr.f32.mxu1 %v8013_v0  ;;  %v6672_v59 = vld [vmem:[%s8091_s7 + $0x48] sm:$0xff]  ;;  %v6678_v60 = vld [vmem:[%s8091_s7 + $0x38] sm:$0xff]  ;;  %v6690_v62 = vld [vmem:[%s8091_s7 + $0x30] sm:$0xff] }
 0x102   : > { %1395 = vmatprep.subr.mxu1 %v6503_v25  ;;  %4893 = vmatpush3.msra.mxu0 %v1080_v44  ;;  %v6684_v61 = vld [vmem:[%s8091_s7 + $0x178] sm:$0xff]  ;;  %8093 = vst [vmem:[#allocation33_spill] sm:$0xff] %v6690_v62  ;;  %v6697_v63 = vld [vmem:[%s8091_s7 + $0x20] sm:$0xff]  ;;  %v6717_v3 = vld [vmem:[%s8091_s7 + $0x8] sm:$0xff] }
 0x103   : > { %1396 = vmatpush1.msra.mxu1 %v6510_v27  ;;  %4894 = vmatprep.subr.mxu0 %v1077_v50  ;;  %8094 = vst [vmem:[#allocation34_spill] sm:$0xff] %v6697_v63  ;;  %v6704_v1 = vld [vmem:[%s8091_s7 + $0x160] sm:$0xff]  ;;  %v6710_v2 = vld [vmem:[%s8091_s7 + $0x18] sm:$0xff]  ;;  %8096 = vst [vmem:[#allocation36_spill] sm:$0xff] %v6717_v3 }
 0x104   : > { %1397 = vmatprep.subr.mxu1 %v6516_v28  ;;  %4554 = vmatmul.mubr.msk.f32.gmra.mxu1 %vm1113_vm2, %v6520_v29  ;;  %8095 = vst [vmem:[#allocation35_spill] sm:$0xff] %v6710_v2  ;;  %v6723_v4 = vld [vmem:[%s8091_s7 + $0x148] sm:$0xff]  ;;  %v6729_v5 = vld [vmem:[%s8091_s7] sm:$0xff]  ;;  %v6737_v6 = vld [vmem:[%s8091_s7 + $0x130] sm:$0xff] }
 0x105   : > { %1398 = vmatpush1.msra.mxu1 %v6526_v30  ;;  %1208 = vmatprep.mubr.f32.mxu1 %v8013_v0  ;;  %8097 = vst [vmem:[#allocation37_spill] sm:$0xff] %v6729_v5  ;;  %v6746_v7 = vld [vmem:[%s8091_s7 + $0x118] sm:$0xff]  ;;  %v6754_v8 = vld [vmem:[%s8091_s7 + $0x100] sm:$0xff]  ;;  %v6764_v9 = vld [vmem:[%s8091_s7 + $0xe8] sm:$0xff] }
 0x106   : > { %1399 = vmatprep.subr.mxu1 %v6532_v31  ;;  %4895 = vmatpush3.msra.mxu0 %v1077_v50  ;;  %v6775_v10 = vld [vmem:[%s8091_s7 + $0xd0] sm:$0xff]  ;;  %v6784_v11 = vld [vmem:[%s8091_s7 + $0xb8] sm:$0xff]  ;;  %v6795_v12 = vld [vmem:[%s8091_s7 + $0xa0] sm:$0xff] }
 0x107   : > { %1400 = vmatpush1.msra.mxu1 %v6538_v33  ;;  %4896 = vmatprep.subr.mxu0 %v1074_v55  ;;  %v6804_v13 = vld [vmem:[%s8091_s7 + $0x88] sm:$0xff]  ;;  %v6813_v14 = vld [vmem:[%s8091_s7 + $0x70] sm:$0xff]  ;;  %v6822_v15 = vld [vmem:[%s8091_s7 + $0x58] sm:$0xff] }
 0x108   : > { %1401 = vmatprep.subr.mxu1 %v6546_v34  ;;  %4555 = vmatmul.mubr.msk.f32.gmra.mxu1 %vm1113_vm2, %v6550_v35  ;;  %v6831_v16 = vld [vmem:[%s8091_s7 + $0x40] sm:$0xff]  ;;  %v6840_v17 = vld [vmem:[%s8091_s7 + $0x28] sm:$0xff]  ;;  %v6849_v18 = vld [vmem:[%s8091_s7 + $0x10] sm:$0xff] }
 0x109   : > { %1402 = vmatpush1.msra.mxu1 %v6556_v36  ;;  %1214 = vmatprep.mubr.f32.mxu1 %v8013_v0  ;;  %8098 = vst [vmem:[#allocation38_spill] sm:$0xff] %v6831_v16  ;;  %8099 = vst [vmem:[#allocation39_spill] sm:$0xff] %v6840_v17  ;;  %v4550_v19 = vld [vmem:[%s8101_s0] ss:$0 sm:$0xff] }
 0x10a   : > { %1403 = vmatprep.subr.mxu1 %v6562_v37  ;;  %4897 = vmatpush3.msra.mxu0 %v1074_v55  ;;  %8100 = vst [vmem:[#allocation40_spill] sm:$0xff] %v6849_v18 }
 0x10b   : > { %1404 = vmatpush1.msra.mxu1 %v6568_v39  ;;  %4907 = vmatprep.subr.mxu0 %v8013_v0 }
 0x10c   : > { %1405 = vmatprep.subr.mxu1 %v6576_v40  ;;  %4556 = vmatmul.mubr.msk.f32.gmra.mxu1 %vm1113_vm2, %v6580_v41 }
 0x10d   : > { %1406 = vmatpush1.msra.mxu1 %v6586_v42  ;;  %1220 = vmatprep.mubr.f32.mxu1 %v8013_v0 }
 0x10e   : > { %1407 = vmatprep.subr.mxu1 %v6592_v43  ;;  %4899 = vmatmul.mubr.msk.f32.vlgmr.msra.gmra.mxu0 %vm1113_vm2, %v6520_v29  ;;  %v6915_v29 = vshrl.u32 %v1098_v26, 7 }
 0x10f   : > { %1408 = vmatpush1.msra.mxu1 %v6598_v45  ;;  %4908 = vmatpush3.msra.mxu0 %v6684_v61 }
 0x110   : > { %1409 = vmatprep.subr.mxu1 %v6606_v46  ;;  %4557 = vmatmul.mubr.msk.f32.gmra.mxu1 %vm1113_vm2, %v6610_v47  ;;  %v1100_v32 = vsub.s32 0, %v6915_v29 }
 0x111   : > { %1410 = vmatpush1.msra.mxu1 %v6616_v48  ;;  %1226 = vmatprep.mubr.f32.mxu1 %v8013_v0 }
 0x112   : > { %1411 = vmatprep.subr.mxu1 %v6622_v49  ;;  %4909 = vmatprep.subr.mxu0 %v8013_v0 }
 0x113   : > { %1412 = vmatpush1.msra.mxu1 %v6628_v51  ;;  %4910 = vmatpush3.msra.mxu0 %v6704_v1 }
 0x114   : > { %1413 = vmatprep.subr.mxu1 %v6636_v52  ;;  %4558 = vmatmul.mubr.msk.f32.gmra.mxu1 %vm1113_vm2, %v6640_v53 }
 0x115   : > { %1414 = vmatpush1.msra.mxu1 %v6646_v54  ;;  %1457 = vmatprep.mubr.f32.mxu1 %v8013_v0 }
 0x116   : > { %1415 = vmatprep.subr.mxu1 %v6652_v56  ;;  %4911 = vmatprep.subr.mxu0 %v8013_v0 }
 0x117   : > { %1416 = vmatpush1.msra.mxu1 %v6658_v57  ;;  %4912 = vmatpush3.msra.mxu0 %v6723_v4 }
 0x118   : > { %1417 = vmatprep.subr.mxu1 %v6666_v58  ;;  %4913 = vmatprep.subr.mxu0 %v8013_v0 }
 0x119   : > { %1418 = vmatpush1.msra.mxu1 %v6672_v59  ;;  %4914 = vmatpush3.msra.mxu0 %v6737_v6 }
 0x11a   : > { %1419 = vmatprep.subr.mxu1 %v6678_v60  ;;  %4915 = vmatprep.subr.mxu0 %v8013_v0 }
 0x11b   : > { %1420 = vmatpush1.msra.mxu1 %v6690_v62  ;;  %4901 = vmatprep.mubr.msk.f32.mxu0 %vm1113_vm2, %v6550_v35  ;;  %v1096_v35 = vld [vmem:[%s8102_s14] sm:$0x7] }
 0x11c   : > { %1421 = vmatprep.subr.mxu1 %v6697_v63  ;;  %4916 = vmatpush3.msra.mxu0 %v6746_v7  ;;  %v1101_v50 = vrot.slane %v1096_v35, %v1100_v32 }
 0x11d   : > { %1422 = vmatpush1.msra.mxu1 %v6710_v2  ;;  %4917 = vmatprep.subr.mxu0 %v8013_v0 }
 0x11e   : > { %1423 = vmatprep.subr.mxu1 %v6717_v3  ;;  %4902 = vmatmul.mubr.msk.f32.gmra.mxu0 %vm1113_vm2, %v6580_v41  ;;  %v1104_v41 = vsub.s32 1, %v6915_v29 }
 0x11f   : > { %1424 = vmatpush1.msra.mxu1 %v6729_v5  ;;  %4918 = vmatpush3.msra.mxu0 %v6754_v8 }
 0x120   : > { %1458 = vmatmul.mubr.f32.vlgmr.msra.gmra.mxu1 %v8013_v0  ;;  %1555 = vmatprep.subr.mxu1 %v6493_v22  ;;  %v1105_v55 = vrot.slane %v1096_v35, %v1104_v41 }
 0x121   : > { %4904 = vmatprep.mubr.msk.f32.mxu0 %vm1113_vm2, %v6610_v47  ;;  %4919 = vmatprep.subr.mxu0 %v8013_v0 }
 0x122   : > { %1556 = vmatpush1.msra.mxu1 %v6498_v24  ;;  %4920 = vmatpush3.msra.mxu0 %v6764_v9 }
 0x123   : > { %1557 = vmatprep.subr.mxu1 %v6503_v25  ;;  %4921 = vmatprep.subr.mxu0 %v8013_v0 }
 0x124   : > { %4905 = vmatmul.mubr.msk.f32.gmra.mxu0 %vm1113_vm2, %v6640_v53  ;;  %1558 = vmatpush1.msra.mxu1 %v6510_v27 }
 0x125   : > { %4922 = vmatpush3.msra.mxu0 %v6775_v10  ;;  %4939 = vmatprep.mubr.msk.f32.mxu0 %vm6071_vm0, %v8013_v0 }
 0x126   : > { %4923 = vmatprep.subr.mxu0 %v8013_v0  ;;  %1559 = vmatprep.subr.mxu1 %v6516_v28 }
 0x127   : > { %4924 = vmatpush3.msra.mxu0 %v6784_v11  ;;  %1560 = vmatpush1.msra.mxu1 %v6526_v30 }
 0x128   : > { %4925 = vmatprep.subr.mxu0 %v8013_v0  ;;  %1561 = vmatprep.subr.mxu1 %v6532_v31 }
 0x129   : > { %4926 = vmatpush3.msra.mxu0 %v6795_v12  ;;  %1562 = vmatpush1.msra.mxu1 %v6538_v33 }
 0x12a   : > { %4927 = vmatprep.subr.mxu0 %v8013_v0  ;;  %1563 = vmatprep.subr.mxu1 %v6546_v34 }
 0x12b   : > { %4928 = vmatpush3.msra.mxu0 %v6804_v13  ;;  %1564 = vmatpush1.msra.mxu1 %v6556_v36 }
 0x12c   : > { %4929 = vmatprep.subr.mxu0 %v8013_v0  ;;  %1565 = vmatprep.subr.mxu1 %v6562_v37 }
 0x12d   : > { %4930 = vmatpush3.msra.mxu0 %v6813_v14  ;;  %1566 = vmatpush1.msra.mxu1 %v6568_v39 }
 0x12e   : > { %4931 = vmatprep.subr.mxu0 %v8013_v0  ;;  %1567 = vmatprep.subr.mxu1 %v6576_v40 }
 0x12f   : > { %4932 = vmatpush3.msra.mxu0 %v6822_v15  ;;  %1568 = vmatpush1.msra.mxu1 %v6586_v42 }
 0x130   : > { %4933 = vmatprep.subr.mxu0 %v8013_v0  ;;  %1569 = vmatprep.subr.mxu1 %v6592_v43 }
 0x131   : > { %4934 = vmatpush3.msra.mxu0 %v6831_v16  ;;  %1570 = vmatpush1.msra.mxu1 %v6598_v45 }
 0x132   : > { %4935 = vmatprep.subr.mxu0 %v8013_v0  ;;  %1571 = vmatprep.subr.mxu1 %v6606_v46 }
 0x133   : > { %4936 = vmatpush3.msra.mxu0 %v6840_v17  ;;  %1572 = vmatpush1.msra.mxu1 %v6616_v48 }
 0x134   : > { %4937 = vmatprep.subr.mxu0 %v8013_v0  ;;  %1573 = vmatprep.subr.mxu1 %v6622_v49 }
 0x135   : > { %4938 = vmatpush3.msra.mxu0 %v6849_v18  ;;  %1574 = vmatpush1.msra.mxu1 %v6628_v51 }
 0x136   : > { %4940 = vmatmul.mubr.f32.vlgmr.msra.gmra.mxu0 %v8013_v0  ;;  %4942 = vmatprep.subr.mxu0 %v8013_v0 }
 0x137   : > { %4943 = vmatpush3.msra.mxu0 %v6684_v61  ;;  %1575 = vmatprep.subr.mxu1 %v6636_v52 }
 0x138   : > { %4944 = vmatprep.subr.mxu0 %v8013_v0  ;;  %1576 = vmatpush1.msra.mxu1 %v6646_v54 }
 0x139   : > { %4945 = vmatpush3.msra.mxu0 %v6704_v1  ;;  %1577 = vmatprep.subr.mxu1 %v6652_v56 }
 0x13a   : > { %4946 = vmatprep.subr.mxu0 %v8013_v0  ;;  %1578 = vmatpush1.msra.mxu1 %v6658_v57 }
 0x13b   : > { %4947 = vmatpush3.msra.mxu0 %v6723_v4  ;;  %1579 = vmatprep.subr.mxu1 %v6666_v58 }
 0x13c   : > { %4948 = vmatprep.subr.mxu0 %v8013_v0  ;;  %1580 = vmatpush1.msra.mxu1 %v6672_v59 }
 0x13d   : > { %4949 = vmatpush3.msra.mxu0 %v6737_v6  ;;  %1581 = vmatprep.subr.mxu1 %v6678_v60 }
 0x13e   : > { %4950 = vmatprep.subr.mxu0 %v8013_v0  ;;  %1582 = vmatpush1.msra.mxu1 %v6690_v62 }
 0x13f   : > { %4951 = vmatpush3.msra.mxu0 %v6746_v7  ;;  %1583 = vmatprep.subr.mxu1 %v6697_v63 }
 0x140   : > { %4952 = vmatprep.subr.mxu0 %v8013_v0  ;;  %1584 = vmatpush1.msra.mxu1 %v6710_v2 }
 0x141   : > { %4953 = vmatpush3.msra.mxu0 %v6754_v8  ;;  %1585 = vmatprep.subr.mxu1 %v6717_v3 }
 0x142   : > { %4954 = vmatprep.subr.mxu0 %v8013_v0  ;;  %1586 = vmatpush1.msra.mxu1 %v6729_v5 }
 0x143   : > { %4955 = vmatpush3.msra.mxu0 %v6764_v9  ;;  %1619 = vmatprep.mubr.f32.mxu1 %v8013_v0 }
 0x144   : > { %4956 = vmatprep.subr.mxu0 %v8013_v0  ;;  %4974 = vmatprep.mubr.msk.f32.mxu0 %vm6071_vm0, %v8013_v0 }
 0x145   : > { %4957 = vmatpush3.msra.mxu0 %v6775_v10  ;;  %1717 = vmatprep.subr.mxu1 %v6493_v22 }
 0x146   : > { %4958 = vmatprep.subr.mxu0 %v8013_v0 }
 0x147   : > { %4959 = vmatpush3.msra.mxu0 %v6784_v11 }
 0x148   : > { %4960 = vmatprep.subr.mxu0 %v8013_v0 }
 0x149   : > { %4961 = vmatpush3.msra.mxu0 %v6795_v12 }
 0x14a   : > { %4962 = vmatprep.subr.mxu0 %v8013_v0 }
 0x14b   : > { %4963 = vmatpush3.msra.mxu0 %v6804_v13 }
 0x14c   : > { %4964 = vmatprep.subr.mxu0 %v8013_v0 }
 0x14d   : > { %4965 = vmatpush3.msra.mxu0 %v6813_v14 }
 0x14e   : > { %4966 = vmatprep.subr.mxu0 %v8013_v0 }
 0x14f   : > { %4967 = vmatpush3.msra.mxu0 %v6822_v15 }
 0x150   : > { %4968 = vmatprep.subr.mxu0 %v8013_v0 }
 0x151   : > { %4969 = vmatpush3.msra.mxu0 %v6831_v16 }
 0x152   : > { %4970 = vmatprep.subr.mxu0 %v8013_v0 }
 0x153   : > { %4971 = vmatpush3.msra.mxu0 %v6840_v17 }
 0x154   : > { %4972 = vmatprep.subr.mxu0 %v8013_v0 }
 0x155   : > { %4973 = vmatpush3.msra.mxu0 %v6849_v18 }
 0x156   : > { %4977 = vmatprep.subr.mxu0 %v8013_v0 }
 0x1b2   : > { %v1044_v20 = vpop.f32.mrf.mxu0 }
 0x1b3   : > { %v6912_v21 = vadd.f32 %v4550_v19, %v1044_v20 }
 0x1b4   : > { %v4881_v23 = vpop.f32.mrf.mxu0 }
 0x1b5   : > { %5497 = vtanh.f32 %v6912_v21 }
 0x1c0   : > { %v1198_v38 = vpop.f32.mrf.mxu1 }
 0x1c2   : > { %v1200_v44 = vpop.f32.mrf.mxu1  ;;  %v5498_v47 = vpop.eup %5497 }
 0x1c3   : > { %1056 = vrot.lane.b32.xlu0 %v5498_v47, %s6072_s24 }
 0x1c4   : > { %v1204_v53 = vpop.f32.mrf.mxu1 }
 0x1c5   : > { %v6923_v19 = vadd.f32 %v1204_v53, %v1101_v50 }
 0x1c6   : > { %v1206_v20 = vpop.f32.mrf.mxu1 }
 0x1c7   : > { %8103 = vst [vmem:[#allocation41_spill] sm:$0xff] %v6923_v19  ;;  %v6925_v23 = vadd.f32 %v1206_v20, %v1105_v55  ;;  %v1108_v19 = vsub.s32 2, %v6915_v29  ;;  %v1199_v29 = vadd.f32 %v1198_v38, %v1101_v50 }
 0x1c8   : > { %v1210_v26 = vpop.f32.mrf.mxu1 }
 0x1c9   : > { %8104 = vst [vmem:[#allocation42_spill] sm:$0xff] %v6925_v23  ;;  %v6927_v0 = vadd.f32 %v1210_v26, %v1101_v50 }
 0x1ca   : > { %v1212_v22 = vpop.f32.mrf.mxu1 }
 0x1cb   : > { %8105 = vst [vmem:[#allocation43_spill] sm:$0xff] %v6927_v0  ;;  %v6929_v18 = vadd.f32 %v1212_v22, %v1105_v55  ;;  %v1109_v22 = vrot.slane %v1096_v35, %v1108_v19 }
 0x1cc   : > { %v1216_v5 = vpop.f32.mrf.mxu1 }
 0x1cd   : > { %8106 = vst [vmem:[#allocation44_spill] sm:$0xff] %v6929_v18  ;;  %v6931_v3 = vadd.f32 %v1216_v5, %v1101_v50 }
 0x1ce   : > { %v1218_v17 = vpop.f32.mrf.mxu1  ;;  %v4900_v5 = vpop.f32.mrf.mxu0 }
 0x1cf   : > { %8107 = vst [vmem:[#allocation45_spill] sm:$0xff] %v6931_v3  ;;  %v6933_v2 = vadd.f32 %v1218_v17, %v1105_v55  ;;  %v1376_v17 = vld [vmem:[%s8113_s23] sm:$0x7] }
 0x1d0   : > { %v1222_v47 = vpop.f32.mrf.mxu1 }
 0x1d1   : > { %8108 = vst [vmem:[#allocation46_spill] sm:$0xff] %v6933_v2  ;;  %v6935_v63 = vadd.f32 %v1222_v47, %v1101_v50  ;;  %v6947_v2 = vadd.f32 %v4900_v5, %v1109_v22  ;;  %v6949_v47 = vrot.slane %v1376_v17, %v1100_v32  ;;  %v1201_v32 = vadd.f32 %v1200_v44, %v1105_v55 }
 0x1d2   : > { %v1224_v53 = vpop.f32.mrf.mxu1 }
 0x1d3   : > { %8109 = vst [vmem:[#allocation47_spill] sm:$0xff] %v6935_v63  ;;  %v6938_v20 = vadd.f32 %v1224_v53, %v1105_v55  ;;  %8114 = vst [vmem:[#allocation51_spill] sm:$0xff] %v6947_v2 }
 0x1d4   : > { %v1228_v23 = vpop.f32.mrf.mxu1  ;;  %8115 = vst [vmem:[#allocation52_spill] sm:$0xff] %v6949_v47 }
 0x1d5   : > { %8110 = vst [vmem:[#allocation48_spill] sm:$0xff] %v6938_v20  ;;  %v6940_v26 = vadd.f32 %v1228_v23, %v1101_v50  ;;  %v6952_v20 = vrot.slane %v1376_v17, %v1104_v41  ;;  %v1299_v23 = vpop.f32.mrf.mxu0 }
 0x1d6   : > { %v1230_v0 = vpop.f32.mrf.mxu1 }
 0x1d7   : > { %8111 = vst [vmem:[#allocation49_spill] sm:$0xff] %v6940_v26  ;;  %v6942_v18 = vadd.f32 %v1230_v0, %v1105_v55 }
 0x1d9   : > { %8112 = vst [vmem:[#allocation50_spill] sm:$0xff] %v6942_v18 }
 0x1de   : > { %v4903_v0 = vpop.f32.mrf.mxu0 }
 0x1df   : > { %v6954_v18 = vadd.f32 %v4903_v0, %v1109_v22 }
 0x1e0   : > { %v1459_v63 = vpop.f32.mrf.mxu1  ;;  %v1309_v62 = vpop.f32.mrf.mxu0 }
 0x1e1   : > { %v1460_v53 = vadd.f32 %v1459_v63, %v6949_v47  ;;  %8116 = vst [vmem:[#allocation53_spill] sm:$0xff] %v6954_v18  ;;  %v6957_v5 = vadd.f32 %v1309_v62, %v1109_v22 }
 0x1e2   : > { %v1461_v26 = vpop.f32.mrf.mxu1 }
 0x1e3   : > { %v1534_v35 = vadd.f32 %v1460_v53, %v1199_v29  ;;  %v1462_v16 = vadd.f32 %v1461_v26, %v6952_v20  ;;  %8117 = vst [vmem:[#allocation54_spill] sm:$0xff] %v6957_v5  ;;  %v6963_v26 = vrot.slane %v1376_v17, %v1108_v19  ;;  %v8133_v5 = vld [vmem:[#allocation42_spill] sm:$0xff] }
 0x1e4   : > { %v4906_v2 = vpop.f32.mrf.mxu0 }
 0x1e5   : > { %v4565_v3 = vmul.f32 -1.442695, %v1534_v35  ;;  %v6959_v38 = vadd.f32 %v4906_v2, %v1109_v22  ;;  %v1541_v63 = vadd.f32 %v1462_v16, %v1201_v32  ;;  %v1300_v2 = vadd.f32 %v1299_v23, %v1109_v22 }
 0x1e6   : > { %v1319_v41 = vpop.f32.mrf.mxu0  ;;  %v4552_v32 = vmul.f32 -1.442695, %v6912_v21 }
 0x1e7   : > { %5499 = vpow2.f32 %v4565_v3  ;;  %8118 = vst [vmem:[#allocation55_spill] sm:$0xff] %v6959_v38  ;;  %v6961_v50 = vadd.f32 %v1319_v41, %v1109_v22  ;;  %v4566_v47 = vmul.f32 -1.442695, %v1541_v63 }
 0x1e9   : > { %8119 = vst [vmem:[#allocation56_spill] sm:$0xff] %v6961_v50  ;;  %5501 = vpow2.f32 %v4566_v47 }
 0x1f4   : > { %v5500_v29 = vpop.eup %5499 }
 0x1f5   : > { %v1538_v53 = vadd.f32 1.0, %v5500_v29 }
 0x1f6   : > { %v1530_v35 = vpop.f32.mrf.mxu0  ;;  %v5502_v62 = vpop.eup %5501 }
 0x1f7   : > { %5503 = vrcp.f32 %v1538_v53  ;;  %v1545_v18 = vadd.f32 1.0, %v5502_v62  ;;  %v1531_v3 = vadd.f32 %v1530_v35, %v6963_v26  ;;  %v8122_v35 = vld [vmem:[#allocation33_spill] sm:$0xff] }
 0x1f8   : > { %v4941_v0 = vpop.f32.mrf.mxu0 }
 0x1f9   : > { %5505 = vrcp.f32 %v1545_v18  ;;  %v8120_v18 = vmov 0.0   ;;  %v8123_v0 = vld [vmem:[#allocation38_spill] sm:$0xff] }
 0x204   : > { %v5504_v44 = vpop.eup %5503 }
 0x205   : > { %v1548_v16 = vmul.f32 %v5504_v44, %v1531_v3  ;;  %v8124_v3 = vld [vmem:[#allocation34_spill] sm:$0xff]  ;;  %v8125_v44 = vld [vmem:[#allocation35_spill] sm:$0xff] }
 0x206   : > { %v5506_v47 = vpop.eup %5505 }
 0x207   : > { %v1549_v55 = vadd.f32 %v1548_v16, %v1300_v2  ;;  %v1551_v63 = vsub.f32 1.0, %v5506_v47  ;;  %v1553_v53 = vmul.f32 0.0, %v5506_v47  ;;  %v8126_v2 = vld [vmem:[#allocation39_spill] sm:$0xff]  ;;  %v8127_v16 = vld [vmem:[#allocation36_spill] sm:$0xff] }
 0x208   : > { %v8130_v47 = vld [vmem:[#allocation32_spill] sm:$0xff] }
 0x209   : > { %5507 = vtanh.f32 %v1549_v55  ;;  %v8128_v55 = vld [vmem:[#allocation37_spill] sm:$0xff] }
 0x20a   : > { %5509 = vpow2.f32 %v4552_v32  ;;  %v8129_v32 = vld [vmem:[#allocation40_spill] sm:$0xff] }
 0x216   : > { %v5508_v41 = vpop.eup %5507 }
 0x217   : > { %v1552_v29 = vmul.f32 %v5508_v41, %v1551_v63  ;;  %v5510_v21 = vpop.eup %5509 }
 0x218   : > { %v1051_v22 = vadd.f32 1.0, %v5510_v21 }
 0x219   : > { %v6967_v19 = vadd.f32 %v1553_v53, %v1552_v29  ;;  %v8131_v53 = vld [vmem:[#allocation52_spill] sm:$0xff] }
 0x21a   : > { %5511 = vrcp.f32 %v1051_v22 }
 0x21b   : > { %1620 = vmatmul.mubr.f32.vlgmr.msra.gmra.mxu1 %v6967_v19  ;;  %4975 = vmatmul.mubr.f32.vlgmr.msra.gmra.mxu0 %v6967_v19 }
 0x21c   : > { %1718 = vmatpush1.msra.mxu1 %v6498_v24  ;;  %4978 = vmatpush3.msra.mxu0 %v6684_v61 }
 0x21d   : > { %1719 = vmatprep.subr.mxu1 %v6503_v25  ;;  %4979 = vmatprep.subr.mxu0 %v8120_v18 }
 0x21e   : > { %1720 = vmatpush1.msra.mxu1 %v6510_v27  ;;  %4980 = vmatpush3.msra.mxu0 %v6704_v1 }
 0x21f   : > { %1721 = vmatprep.subr.mxu1 %v6516_v28  ;;  %4981 = vmatprep.subr.mxu0 %v8120_v18 }
 0x220   : > { %1722 = vmatpush1.msra.mxu1 %v6526_v30  ;;  %4982 = vmatpush3.msra.mxu0 %v6723_v4 }
 0x221   : > { %1723 = vmatprep.subr.mxu1 %v6532_v31  ;;  %4983 = vmatprep.subr.mxu0 %v8120_v18 }
 0x222   : > { %1724 = vmatpush1.msra.mxu1 %v6538_v33  ;;  %4984 = vmatpush3.msra.mxu0 %v6737_v6 }
 0x223   : > { %1725 = vmatprep.subr.mxu1 %v6546_v34  ;;  %4985 = vmatprep.subr.mxu0 %v8120_v18 }
 0x224   : > { %1726 = vmatpush1.msra.mxu1 %v6556_v36  ;;  %4986 = vmatpush3.msra.mxu0 %v6746_v7 }
 0x225   : > { %1727 = vmatprep.subr.mxu1 %v6562_v37  ;;  %4987 = vmatprep.subr.mxu0 %v8120_v18 }
 0x226   : > { %1728 = vmatpush1.msra.mxu1 %v6568_v39  ;;  %4988 = vmatpush3.msra.mxu0 %v6754_v8 }
 0x227   : > { %1729 = vmatprep.subr.mxu1 %v6576_v40  ;;  %4989 = vmatprep.subr.mxu0 %v8120_v18  ;;  %v7023_v17 = vpop.eup %5511 }
 0x228   : > { %1730 = vmatpush1.msra.mxu1 %v6586_v42  ;;  %4990 = vmatpush3.msra.mxu0 %v6764_v9  ;;  %8121 = vst [vmem:[#allocation57_spill] sm:$0xff] %v7023_v17 }
 0x229   : > { %1731 = vmatprep.subr.mxu1 %v6592_v43  ;;  %4991 = vmatprep.subr.mxu0 %v8120_v18 }
 0x22a   : > { %1732 = vmatpush1.msra.mxu1 %v6598_v45  ;;  %4992 = vmatpush3.msra.mxu0 %v6775_v10 }
 0x22b   : > { %1733 = vmatprep.subr.mxu1 %v6606_v46  ;;  %4993 = vmatprep.subr.mxu0 %v8120_v18 }
 0x22c   : > { %1734 = vmatpush1.msra.mxu1 %v6616_v48  ;;  %4994 = vmatpush3.msra.mxu0 %v6784_v11 }
 0x22d   : > { %1735 = vmatprep.subr.mxu1 %v6622_v49  ;;  %4995 = vmatprep.subr.mxu0 %v8120_v18 }
 0x22e   : > { %1736 = vmatpush1.msra.mxu1 %v6628_v51  ;;  %4996 = vmatpush3.msra.mxu0 %v6795_v12 }
 0x22f   : > { %1737 = vmatprep.subr.mxu1 %v6636_v52  ;;  %4997 = vmatprep.subr.mxu0 %v8120_v18 }
 0x230   : > { %1738 = vmatpush1.msra.mxu1 %v6646_v54  ;;  %4998 = vmatpush3.msra.mxu0 %v6804_v13 }
 0x231   : > { %1739 = vmatprep.subr.mxu1 %v6652_v56  ;;  %4999 = vmatprep.subr.mxu0 %v8120_v18 }
 0x232   : > { %1740 = vmatpush1.msra.mxu1 %v6658_v57  ;;  %5000 = vmatpush3.msra.mxu0 %v6813_v14 }
 0x233   : > { %1741 = vmatprep.subr.mxu1 %v6666_v58  ;;  %5001 = vmatprep.subr.mxu0 %v8120_v18 }
 0x234   : > { %1742 = vmatpush1.msra.mxu1 %v6672_v59  ;;  %5002 = vmatpush3.msra.mxu0 %v6822_v15 }
 0x235   : > { %1743 = vmatprep.subr.mxu1 %v6678_v60  ;;  %5003 = vmatprep.subr.mxu0 %v8120_v18  ;;  %v1057_v23 = vpop.permute.xlu0 %1056 }
 0x236   : > { %1744 = vmatpush1.msra.mxu1 %v8122_v35  ;;  %5004 = vmatpush3.msra.mxu0 %v8123_v0  ;;  %v1059_v62 = vmul.f32 %v7023_v17, %v1057_v23 }
 0x237   : > { %1745 = vmatprep.subr.mxu1 %v8124_v3  ;;  %5005 = vmatprep.subr.mxu0 %v8120_v18 }
 0x238   : > { %1746 = vmatpush1.msra.mxu1 %v8125_v44  ;;  %5006 = vmatpush3.msra.mxu0 %v8126_v2  ;;  %5513 = vtanh.f32 %v1059_v62  ;;  %v8132_v62 = vld [vmem:[#allocation41_spill] sm:$0xff] }
 0x239   : > { %1747 = vmatprep.subr.mxu1 %v8127_v16  ;;  %5007 = vmatprep.subr.mxu0 %v8120_v18 }
 0x23a   : > { %1748 = vmatpush1.msra.mxu1 %v8128_v55  ;;  %1781 = vmatprep.mubr.f32.mxu1 %v8120_v18 }
 0x23b   : > { %5008 = vmatpush3.msra.mxu0 %v8129_v32  ;;  %5009 = vmatprep.mubr.msk.f32.mxu0 %vm6071_vm0, %v8120_v18 }
 0x23c   : > { %1879 = vmatprep.subr.mxu1 %v8130_v47  ;;  %5012 = vmatprep.subr.mxu0 %v8120_v18 }
 0x245   : > { %v5514_v63 = vpop.eup %5513 }
 0x246   : > { %1062 = vrot.lane.b32.xlu0 %v5514_v63, %s6073_s9 }
 0x2db   : > { %v1621_v41 = vpop.f32.mrf.mxu1  ;;  %v1692_v29 = vpop.f32.mrf.mxu0 }
 0x2dc   : > { %v1622_v21 = vadd.f32 %v1621_v41, %v8131_v53  ;;  %v1693_v44 = vadd.f32 %v1692_v29, %v6963_v26 }
 0x2dd   : > { %v1623_v22 = vpop.f32.mrf.mxu1  ;;  %v4976_v23 = vpop.f32.mrf.mxu0 }
 0x2de   : > { %v1696_v17 = vadd.f32 %v1622_v21, %v8132_v62  ;;  %v1624_v50 = vadd.f32 %v1623_v22, %v6952_v20  ;;  %v8134_v23 = vld [vmem:[#allocation51_spill] sm:$0xff] }
 0x2e0   : > { %v4567_v38 = vmul.f32 -1.442695, %v1696_v17  ;;  %v1703_v47 = vadd.f32 %v1624_v50, %v8133_v5 }
 0x2e2   : > { %5515 = vpow2.f32 %v4567_v38  ;;  %v4568_v32 = vmul.f32 -1.442695, %v1703_v47  ;;  %v8142_v47 = vld [vmem:[#allocation43_spill] sm:$0xff] }
 0x2e4   : > { %5517 = vpow2.f32 %v4568_v32 }
 0x2ef   : > { %v5516_v55 = vpop.eup %5515 }
 0x2f0   : > { %v1700_v16 = vadd.f32 1.0, %v5516_v55 }
 0x2f1   : > { %v5518_v63 = vpop.eup %5517 }
 0x2f2   : > { %5519 = vrcp.f32 %v1700_v16  ;;  %v1707_v2 = vadd.f32 1.0, %v5518_v63 }
 0x2f4   : > { %5521 = vrcp.f32 %v1707_v2  ;;  %v8141_v2 = vld [vmem:[#allocation52_spill] sm:$0xff] }
 0x2ff   : > { %v5520_v41 = vpop.eup %5519 }
 0x300   : > { %v1710_v53 = vmul.f32 %v5520_v41, %v1693_v44  ;;  %v8143_v41 = vld [vmem:[#allocation44_spill] sm:$0xff] }
 0x301   : > { %v5522_v17 = vpop.eup %5521 }
 0x302   : > { %v1711_v21 = vadd.f32 %v1710_v53, %v8134_v23  ;;  %v1713_v22 = vsub.f32 1.0, %v5522_v17  ;;  %v1715_v5 = vmul.f32 %v5522_v17, %v6967_v19 }
 0x304   : > { %5523 = vtanh.f32 %v1711_v21 }
 0x311   : > { %v5524_v38 = vpop.eup %5523 }
 0x312   : > { %v1714_v62 = vmul.f32 %v5524_v38, %v1713_v22 }
 0x314   : > { %v7049_v50 = vadd.f32 %v1715_v5, %v1714_v62 }
 0x316   : > { %1782 = vmatmul.mubr.f32.vlgmr.msra.gmra.mxu1 %v7049_v50  ;;  %5010 = vmatmul.mubr.f32.vlgmr.msra.gmra.mxu0 %v7049_v50 }
 0x317   : > { %1880 = vmatpush1.msra.mxu1 %v6498_v24  ;;  %5013 = vmatpush3.msra.mxu0 %v6684_v61  ;;  %v8135_v24 = vld [vmem:[#allocation35_spill] sm:$0xff] }
 0x318   : > { %1881 = vmatprep.subr.mxu1 %v6503_v25  ;;  %5014 = vmatprep.subr.mxu0 %v8120_v18  ;;  %v8136_v25 = vld [vmem:[#allocation39_spill] sm:$0xff] }
 0x319   : > { %1882 = vmatpush1.msra.mxu1 %v6510_v27  ;;  %5015 = vmatpush3.msra.mxu0 %v6704_v1  ;;  %v8137_v27 = vld [vmem:[#allocation36_spill] sm:$0xff] }
 0x31a   : > { %1883 = vmatprep.subr.mxu1 %v6516_v28  ;;  %5016 = vmatprep.subr.mxu0 %v8120_v18  ;;  %v8138_v28 = vld [vmem:[#allocation37_spill] sm:$0xff] }
 0x31b   : > { %1884 = vmatpush1.msra.mxu1 %v6526_v30  ;;  %5017 = vmatpush3.msra.mxu0 %v6723_v4  ;;  %v8139_v30 = vld [vmem:[#allocation40_spill] sm:$0xff] }
 0x31c   : > { %1885 = vmatprep.subr.mxu1 %v6532_v31  ;;  %5018 = vmatprep.subr.mxu0 %v8120_v18  ;;  %v8140_v31 = vld [vmem:[#allocation32_spill] sm:$0xff] }
 0x31d   : > { %1886 = vmatpush1.msra.mxu1 %v6538_v33  ;;  %5019 = vmatpush3.msra.mxu0 %v6737_v6 }
 0x31e   : > { %1887 = vmatprep.subr.mxu1 %v6546_v34  ;;  %5020 = vmatprep.subr.mxu0 %v8120_v18 }
 0x31f   : > { %1888 = vmatpush1.msra.mxu1 %v6556_v36  ;;  %5021 = vmatpush3.msra.mxu0 %v6746_v7 }
 0x320   : > { %1889 = vmatprep.subr.mxu1 %v6562_v37  ;;  %5022 = vmatprep.subr.mxu0 %v8120_v18 }
 0x321   : > { %1890 = vmatpush1.msra.mxu1 %v6568_v39  ;;  %5023 = vmatpush3.msra.mxu0 %v6754_v8 }
 0x322   : > { %1891 = vmatprep.subr.mxu1 %v6576_v40  ;;  %5024 = vmatprep.subr.mxu0 %v8120_v18 }
 0x323   : > { %1892 = vmatpush1.msra.mxu1 %v6586_v42  ;;  %5025 = vmatpush3.msra.mxu0 %v6764_v9 }
 0x324   : > { %1893 = vmatprep.subr.mxu1 %v6592_v43  ;;  %5026 = vmatprep.subr.mxu0 %v8120_v18 }
 0x325   : > { %1894 = vmatpush1.msra.mxu1 %v6598_v45  ;;  %5027 = vmatpush3.msra.mxu0 %v6775_v10 }
 0x326   : > { %1895 = vmatprep.subr.mxu1 %v6606_v46  ;;  %5028 = vmatprep.subr.mxu0 %v8120_v18 }
 0x327   : > { %1896 = vmatpush1.msra.mxu1 %v6616_v48  ;;  %5029 = vmatpush3.msra.mxu0 %v6784_v11 }
 0x328   : > { %1897 = vmatprep.subr.mxu1 %v6622_v49  ;;  %5030 = vmatprep.subr.mxu0 %v8120_v18 }
 0x329   : > { %1898 = vmatpush1.msra.mxu1 %v6628_v51  ;;  %5031 = vmatpush3.msra.mxu0 %v6795_v12 }
 0x32a   : > { %1899 = vmatprep.subr.mxu1 %v6636_v52  ;;  %5032 = vmatprep.subr.mxu0 %v8120_v18 }
 0x32b   : > { %1900 = vmatpush1.msra.mxu1 %v6646_v54  ;;  %5033 = vmatpush3.msra.mxu0 %v6804_v13 }
 0x32c   : > { %1901 = vmatprep.subr.mxu1 %v6652_v56  ;;  %5034 = vmatprep.subr.mxu0 %v8120_v18 }
 0x32d   : > { %1902 = vmatpush1.msra.mxu1 %v6658_v57  ;;  %5035 = vmatpush3.msra.mxu0 %v6813_v14 }
 0x32e   : > { %1903 = vmatprep.subr.mxu1 %v6666_v58  ;;  %5036 = vmatprep.subr.mxu0 %v8120_v18 }
 0x32f   : > { %1904 = vmatpush1.msra.mxu1 %v6672_v59  ;;  %5037 = vmatpush3.msra.mxu0 %v6822_v15 }
 0x330   : > { %1905 = vmatprep.subr.mxu1 %v6678_v60  ;;  %5038 = vmatprep.subr.mxu0 %v8120_v18 }
 0x331   : > { %1906 = vmatpush1.msra.mxu1 %v8122_v35  ;;  %5039 = vmatpush3.msra.mxu0 %v8123_v0 }
 0x332   : > { %1907 = vmatprep.subr.mxu1 %v8124_v3  ;;  %5040 = vmatprep.subr.mxu0 %v8120_v18 }
 0x333   : > { %1908 = vmatpush1.msra.mxu1 %v8135_v24  ;;  %5041 = vmatpush3.msra.mxu0 %v8136_v25 }
 0x334   : > { %1909 = vmatprep.subr.mxu1 %v8137_v27  ;;  %5042 = vmatprep.subr.mxu0 %v8120_v18 }
 0x335   : > { %1910 = vmatpush1.msra.mxu1 %v8138_v28  ;;  %1943 = vmatprep.mubr.f32.mxu1 %v8120_v18 }
 0x336   : > { %5043 = vmatpush3.msra.mxu0 %v8139_v30  ;;  %5044 = vmatprep.mubr.msk.f32.mxu0 %vm6071_vm0, %v8120_v18 }
 0x337   : > { %2041 = vmatprep.subr.mxu1 %v8140_v31  ;;  %5047 = vmatprep.subr.mxu0 %v8120_v18 }
 0x3d6   : > { %v1783_v19 = vpop.f32.mrf.mxu1  ;;  %v1854_v44 = vpop.f32.mrf.mxu0 }
 0x3d7   : > { %v1784_v16 = vadd.f32 %v1783_v19, %v8141_v2  ;;  %v1855_v5 = vadd.f32 %v1854_v44, %v6963_v26  ;;  %v7134_v44 = vld [vmem:[%s8091_s7 + $0x168] sm:$0xff] }
 0x3d8   : > { %v1785_v55 = vpop.f32.mrf.mxu1  ;;  %v5011_v32 = vpop.f32.mrf.mxu0 }
 0x3d9   : > { %v1858_v29 = vadd.f32 %v1784_v16, %v8142_v47  ;;  %v1786_v63 = vadd.f32 %v1785_v55, %v6952_v20  ;;  %v8144_v32 = vld [vmem:[#allocation54_spill] sm:$0xff] }
 0x3db   : > { %v4569_v53 = vmul.f32 -1.442695, %v1858_v29  ;;  %v1865_v23 = vadd.f32 %v1786_v63, %v8143_v41 }
 0x3dd   : > { %5525 = vpow2.f32 %v4569_v53  ;;  %v4570_v21 = vmul.f32 -1.442695, %v1865_v23  ;;  %v7141_v23 = vld [vmem:[%s8091_s7 + $0x158] sm:$0xff] }
 0x3df   : > { %5527 = vpow2.f32 %v4570_v21  ;;  %v7162_v21 = vld [vmem:[%s8091_s7 + $0x138] sm:$0xff] }
 0x3ea   : > { %v5526_v17 = vpop.eup %5525 }
 0x3eb   : > { %v1862_v22 = vadd.f32 1.0, %v5526_v17  ;;  %v5645_v17 = vld [vmem:[%s8091_s7 + $0xf0] sm:$0xff] }
 0x3ec   : > { %v5528_v38 = vpop.eup %5527 }
 0x3ed   : > { %5529 = vrcp.f32 %v1862_v22  ;;  %v1869_v62 = vadd.f32 1.0, %v5528_v38  ;;  %v5646_v22 = vld [vmem:[%s8091_s7 + $0x100] sm:$0xff] }
 0x3ee   : > { %v5647_v38 = vld [vmem:[%s8091_s7 + $0xe0] sm:$0xff] }
 0x3ef   : > { %5531 = vrcp.f32 %v1869_v62  ;;  %v5648_v62 = vld [vmem:[%s8091_s7 + $0xd8] sm:$0xff] }
 0x3fa   : > { %v5530_v31 = vpop.eup %5529 }
 0x3fb   : > { %v1872_v19 = vmul.f32 %v5530_v31, %v1855_v5  ;;  %v5649_v5 = vld [vmem:[%s8091_s7 + $0xe8] sm:$0xff] }
 0x3fc   : > { %v5532_v47 = vpop.eup %5531  ;;  %v5650_v31 = vld [vmem:[%s8091_s7 + $0xc8] sm:$0xff] }
 0x3fd   : > { %v1873_v16 = vadd.f32 %v1872_v19, %v8144_v32  ;;  %v1875_v55 = vsub.f32 1.0, %v5532_v47  ;;  %v1877_v63 = vmul.f32 %v5532_v47, %v7049_v50  ;;  %v7148_v50 = vld [vmem:[%s8091_s7 + $0x150] sm:$0xff]  ;;  %v5651_v19 = vld [vmem:[%s8091_s7 + $0xc0] sm:$0xff]  ;;  %v5654_v47 = vld [vmem:[%s8091_s7 + $0xa8] sm:$0xff] }
 0x3fe   : > { %v5652_v32 = vld [vmem:[%s8091_s7 + $0xd0] sm:$0xff] }
 0x3ff   : > { %5533 = vtanh.f32 %v1873_v16  ;;  %v5653_v16 = vld [vmem:[%s8091_s7 + $0xb0] sm:$0xff] }
 0x40c   : > { %v5534_v29 = vpop.eup %5533 }
 0x40d   : > { %v1876_v53 = vmul.f32 %v5534_v29, %v1875_v55  ;;  %v5655_v55 = vld [vmem:[%s8091_s7 + $0xb8] sm:$0xff] }
 0x40e   : > { %v5656_v29 = vld [vmem:[%s8091_s7 + $0x98] sm:$0xff] }
 0x40f   : > { %v7127_v41 = vadd.f32 %v1877_v63, %v1876_v53  ;;  %v5657_v53 = vld [vmem:[%s8091_s7 + $0x90] sm:$0xff]  ;;  %v5658_v63 = vld [vmem:[%s8091_s7 + $0xa0] sm:$0xff] }
 0x411   : > { %1944 = vmatmul.mubr.f32.vlgmr.msra.gmra.mxu1 %v7127_v41  ;;  %5045 = vmatmul.mubr.f32.vlgmr.msra.gmra.mxu0 %v7127_v41 }
 0x412   : > { %2042 = vmatpush1.msra.mxu1 %v7134_v44  ;;  %5048 = vmatpush3.msra.mxu0 %v6684_v61  ;;  %v7155_v61 = vld [vmem:[%s8091_s7 + $0x140] sm:$0xff] }
 0x413   : > { %2043 = vmatprep.subr.mxu1 %v7141_v23  ;;  %5049 = vmatprep.subr.mxu0 %v8120_v18 }
 0x414   : > { %2044 = vmatpush1.msra.mxu1 %v7148_v50  ;;  %5050 = vmatpush3.msra.mxu0 %v6704_v1  ;;  %v7169_v1 = vld [vmem:[%s8091_s7 + $0x128] sm:$0xff] }
 0x415   : > { %2045 = vmatprep.subr.mxu1 %v7155_v61  ;;  %5051 = vmatprep.subr.mxu0 %v8120_v18 }
 0x416   : > { %2046 = vmatpush1.msra.mxu1 %v7162_v21  ;;  %5052 = vmatpush3.msra.mxu0 %v6723_v4  ;;  %v8147_v4 = vld [vmem:[#allocation53_spill] sm:$0xff] }
 0x417   : > { %2047 = vmatprep.subr.mxu1 %v7169_v1  ;;  %5053 = vmatprep.subr.mxu0 %v8120_v18 }
 0x418   : > { %2048 = vmatpush1.msra.mxu1 %v6538_v33  ;;  %5054 = vmatpush3.msra.mxu0 %v6737_v6  ;;  %v5635_v33 = vld [vmem:[%s8091_s7 + $0x170] sm:$0xff] }
 0x419   : > { %2049 = vmatprep.subr.mxu1 %v6546_v34  ;;  %5055 = vmatprep.subr.mxu0 %v8120_v18 }
 0x41a   : > { %2050 = vmatpush1.msra.mxu1 %v6556_v36  ;;  %5056 = vmatpush3.msra.mxu0 %v6746_v7 }
 0x41b   : > { %2051 = vmatprep.subr.mxu1 %v6562_v37  ;;  %5057 = vmatprep.subr.mxu0 %v8120_v18 }
 0x41c   : > { %2052 = vmatpush1.msra.mxu1 %v6568_v39  ;;  %5058 = vmatpush3.msra.mxu0 %v6754_v8 }
 0x41d   : > { %2053 = vmatprep.subr.mxu1 %v6576_v40  ;;  %5059 = vmatprep.subr.mxu0 %v8120_v18 }
 0x41e   : > { %2054 = vmatpush1.msra.mxu1 %v6586_v42  ;;  %5060 = vmatpush3.msra.mxu0 %v6764_v9  ;;  %v8145_v42 = vld [vmem:[#allocation45_spill] sm:$0xff] }
 0x41f   : > { %2055 = vmatprep.subr.mxu1 %v6592_v43  ;;  %5061 = vmatprep.subr.mxu0 %v8120_v18 }
 0x420   : > { %2056 = vmatpush1.msra.mxu1 %v6598_v45  ;;  %5062 = vmatpush3.msra.mxu0 %v6775_v10 }
 0x421   : > { %2057 = vmatprep.subr.mxu1 %v6606_v46  ;;  %5063 = vmatprep.subr.mxu0 %v8120_v18 }
 0x422   : > { %2058 = vmatpush1.msra.mxu1 %v6616_v48  ;;  %5064 = vmatpush3.msra.mxu0 %v6784_v11  ;;  %v8146_v48 = vld [vmem:[#allocation46_spill] sm:$0xff] }
 0x423   : > { %2059 = vmatprep.subr.mxu1 %v6622_v49  ;;  %5065 = vmatprep.subr.mxu0 %v8120_v18 }
 0x424   : > { %2060 = vmatpush1.msra.mxu1 %v6628_v51  ;;  %5066 = vmatpush3.msra.mxu0 %v6795_v12 }
 0x425   : > { %2061 = vmatprep.subr.mxu1 %v6636_v52  ;;  %5067 = vmatprep.subr.mxu0 %v8120_v18 }
 0x426   : > { %2062 = vmatpush1.msra.mxu1 %v6646_v54  ;;  %5068 = vmatpush3.msra.mxu0 %v6804_v13  ;;  %v5636_v13 = vld [vmem:[%s8091_s7 + $0x178] sm:$0xff] }
 0x427   : > { %2063 = vmatprep.subr.mxu1 %v6652_v56  ;;  %5069 = vmatprep.subr.mxu0 %v8120_v18 }
 0x428   : > { %2064 = vmatpush1.msra.mxu1 %v6658_v57  ;;  %5070 = vmatpush3.msra.mxu0 %v6813_v14  ;;  %v5637_v14 = vld [vmem:[%s8091_s7 + $0x160] sm:$0xff] }
 0x429   : > { %2065 = vmatprep.subr.mxu1 %v6666_v58  ;;  %5071 = vmatprep.subr.mxu0 %v8120_v18 }
 0x42a   : > { %2066 = vmatpush1.msra.mxu1 %v6672_v59  ;;  %5072 = vmatpush3.msra.mxu0 %v6822_v15  ;;  %v5638_v15 = vld [vmem:[%s8091_s7 + $0x148] sm:$0xff] }
 0x42b   : > { %2067 = vmatprep.subr.mxu1 %v6678_v60  ;;  %5073 = vmatprep.subr.mxu0 %v8120_v18 }
 0x42c   : > { %2068 = vmatpush1.msra.mxu1 %v8122_v35  ;;  %5074 = vmatpush3.msra.mxu0 %v8123_v0  ;;  %v5639_v35 = vld [vmem:[%s8091_s7 + $0x120] sm:$0xff]  ;;  %v5640_v0 = vld [vmem:[%s8091_s7 + $0x130] sm:$0xff] }
 0x42d   : > { %2069 = vmatprep.subr.mxu1 %v8124_v3  ;;  %5075 = vmatprep.subr.mxu0 %v8120_v18  ;;  %v5641_v3 = vld [vmem:[%s8091_s7 + $0x110] sm:$0xff] }
 0x42e   : > { %2070 = vmatpush1.msra.mxu1 %v8135_v24  ;;  %5076 = vmatpush3.msra.mxu0 %v8136_v25  ;;  %v5642_v24 = vld [vmem:[%s8091_s7 + $0x108] sm:$0xff] }
 0x42f   : > { %2071 = vmatprep.subr.mxu1 %v8137_v27  ;;  %5077 = vmatprep.subr.mxu0 %v8120_v18  ;;  %v5643_v27 = vld [vmem:[%s8091_s7 + $0x118] sm:$0xff] }
 0x430   : > { %2072 = vmatpush1.msra.mxu1 %v8138_v28  ;;  %2105 = vmatprep.mubr.f32.mxu1 %v8120_v18  ;;  %v5644_v28 = vld [vmem:[%s8091_s7 + $0xf8] sm:$0xff] }
 0x431   : > { %5078 = vmatpush3.msra.mxu0 %v8139_v30  ;;  %5079 = vmatprep.mubr.msk.f32.mxu0 %vm6071_vm0, %v8120_v18 }
 0x432   : > { %2203 = vmatprep.subr.mxu1 %v5635_v33  ;;  %5082 = vmatprep.subr.mxu0 %v8120_v18  ;;  %v5666_v33 = vld [vmem:[%s8091_s7 + $0x48] sm:$0xff] }
 0x4d1   : > { %v1945_v34 = vpop.f32.mrf.mxu1  ;;  %v2016_v36 = vpop.f32.mrf.mxu0 }
 0x4d2   : > { %v1946_v37 = vadd.f32 %v1945_v34, %v8141_v2  ;;  %v2017_v58 = vadd.f32 %v2016_v36, %v6963_v26  ;;  %v5667_v34 = vld [vmem:[%s8091_s7 + $0x58] sm:$0xff] }
 0x4d3   : > { %v1947_v39 = vpop.f32.mrf.mxu1  ;;  %v5046_v40 = vpop.f32.mrf.mxu0  ;;  %v5668_v36 = vld [vmem:[%s8091_s7 + $0x38] sm:$0xff] }
 0x4d4   : > { %v2020_v43 = vadd.f32 %v1946_v37, %v8145_v42  ;;  %v1948_v46 = vadd.f32 %v1947_v39, %v6952_v20  ;;  %v5669_v37 = vld [vmem:[%s8091_s7 + $0x30] sm:$0xff]  ;;  %v5670_v39 = vld [vmem:[%s8091_s7 + $0x40] sm:$0xff]  ;;  %v5672_v42 = vld [vmem:[%s8091_s7 + $0x18] sm:$0xff] }
 0x4d5   : > { %v5671_v40 = vld [vmem:[%s8091_s7 + $0x20] sm:$0xff] }
 0x4d6   : > { %v4571_v45 = vmul.f32 -1.442695, %v2020_v43  ;;  %v2027_v49 = vadd.f32 %v1948_v46, %v8146_v48  ;;  %v5673_v43 = vld [vmem:[%s8091_s7 + $0x8] sm:$0xff] }
 0x4d8   : > { %5535 = vpow2.f32 %v4571_v45  ;;  %v4572_v51 = vmul.f32 -1.442695, %v2027_v49  ;;  %v5674_v45 = vld [vmem:[%s8091_s7] sm:$0xff] }
 0x4da   : > { %5537 = vpow2.f32 %v4572_v51 }
 0x4e5   : > { %v5536_v52 = vpop.eup %5535 }
 0x4e6   : > { %v2024_v54 = vadd.f32 1.0, %v5536_v52  ;;  %v8148_v52 = vld [vmem:[#allocation47_spill] sm:$0xff] }
 0x4e7   : > { %v5538_v56 = vpop.eup %5537 }
 0x4e8   : > { %5539 = vrcp.f32 %v2024_v54  ;;  %v2031_v57 = vadd.f32 1.0, %v5538_v56 }
 0x4ea   : > { %5541 = vrcp.f32 %v2031_v57 }
 0x4f5   : > { %v5540_v59 = vpop.eup %5539 }
 0x4f6   : > { %v2034_v60 = vmul.f32 %v5540_v59, %v2017_v58 }
 0x4f7   : > { %v5542_v7 = vpop.eup %5541 }
 0x4f8   : > { %v2035_v6 = vadd.f32 %v2034_v60, %v8147_v4  ;;  %v2037_v8 = vsub.f32 1.0, %v5542_v7  ;;  %v2039_v11 = vmul.f32 %v5542_v7, %v7127_v41  ;;  %v5659_v41 = vld [vmem:[%s8091_s7 + $0x80] sm:$0xff] }
 0x4fa   : > { %5543 = vtanh.f32 %v2035_v6 }
 0x507   : > { %v5544_v9 = vpop.eup %5543 }
 0x508   : > { %v2038_v10 = vmul.f32 %v5544_v9, %v2037_v8 }
 0x50a   : > { %v7237_v12 = vadd.f32 %v2039_v11, %v2038_v10  ;;  %v8150_v11 = vld [vmem:[#allocation56_spill] sm:$0xff] }
 0x50c   : > { %2106 = vmatmul.mubr.f32.vlgmr.msra.gmra.mxu1 %v7237_v12  ;;  %5080 = vmatmul.mubr.f32.vlgmr.msra.gmra.mxu0 %v7237_v12 }
 0x50d   : > { %2204 = vmatpush1.msra.mxu1 %v7134_v44  ;;  %5083 = vmatpush3.msra.mxu0 %v5636_v13  ;;  %v5660_v44 = vld [vmem:[%s8091_s7 + $0x78] sm:$0xff] }
 0x50e   : > { %2205 = vmatprep.subr.mxu1 %v7141_v23  ;;  %5084 = vmatprep.subr.mxu0 %v8120_v18  ;;  %v5661_v23 = vld [vmem:[%s8091_s7 + $0x88] sm:$0xff] }
 0x50f   : > { %2206 = vmatpush1.msra.mxu1 %v7148_v50  ;;  %5085 = vmatpush3.msra.mxu0 %v5637_v14  ;;  %v5662_v50 = vld [vmem:[%s8091_s7 + $0x68] sm:$0xff] }
 0x510   : > { %2207 = vmatprep.subr.mxu1 %v7155_v61  ;;  %5086 = vmatprep.subr.mxu0 %v8120_v18  ;;  %v5663_v61 = vld [vmem:[%s8091_s7 + $0x60] sm:$0xff] }
 0x511   : > { %2208 = vmatpush1.msra.mxu1 %v7162_v21  ;;  %5087 = vmatpush3.msra.mxu0 %v5638_v15  ;;  %v5664_v21 = vld [vmem:[%s8091_s7 + $0x70] sm:$0xff] }
 0x512   : > { %2209 = vmatprep.subr.mxu1 %v7169_v1  ;;  %5088 = vmatprep.subr.mxu0 %v8120_v18  ;;  %v5665_v1 = vld [vmem:[%s8091_s7 + $0x50] sm:$0xff] }
 0x513   : > { %2210 = vmatpush1.msra.mxu1 %v5639_v35  ;;  %5089 = vmatpush3.msra.mxu0 %v5640_v0 }
 0x514   : > { %2211 = vmatprep.subr.mxu1 %v5641_v3  ;;  %5090 = vmatprep.subr.mxu0 %v8120_v18 }
 0x515   : > { %2212 = vmatpush1.msra.mxu1 %v5642_v24  ;;  %5091 = vmatpush3.msra.mxu0 %v5643_v27 }
 0x516   : > { %2213 = vmatprep.subr.mxu1 %v5644_v28  ;;  %5092 = vmatprep.subr.mxu0 %v8120_v18 }
 0x517   : > { %2214 = vmatpush1.msra.mxu1 %v5645_v17  ;;  %5093 = vmatpush3.msra.mxu0 %v5646_v22 }
 0x518   : > { %2215 = vmatprep.subr.mxu1 %v5647_v38  ;;  %5094 = vmatprep.subr.mxu0 %v8120_v18 }
 0x519   : > { %2216 = vmatpush1.msra.mxu1 %v5648_v62  ;;  %5095 = vmatpush3.msra.mxu0 %v5649_v5  ;;  %v8151_v62 = vld [vmem:[#allocation49_spill] sm:$0xff] }
 0x51a   : > { %2217 = vmatprep.subr.mxu1 %v5650_v31  ;;  %5096 = vmatprep.subr.mxu0 %v8120_v18 }
 0x51b   : > { %2218 = vmatpush1.msra.mxu1 %v5651_v19  ;;  %5097 = vmatpush3.msra.mxu0 %v5652_v32  ;;  %v8152_v19 = vld [vmem:[#allocation50_spill] sm:$0xff] }
 0x51c   : > { %2219 = vmatprep.subr.mxu1 %v5653_v16  ;;  %5098 = vmatprep.subr.mxu0 %v8120_v18 }
 0x51d   : > { %2220 = vmatpush1.msra.mxu1 %v5654_v47  ;;  %5099 = vmatpush3.msra.mxu0 %v5655_v55 }
 0x51e   : > { %2221 = vmatprep.subr.mxu1 %v5656_v29  ;;  %5100 = vmatprep.subr.mxu0 %v8120_v18 }
 0x51f   : > { %2222 = vmatpush1.msra.mxu1 %v5657_v53  ;;  %5101 = vmatpush3.msra.mxu0 %v5658_v63 }
 0x520   : > { %2223 = vmatprep.subr.mxu1 %v5659_v41  ;;  %5102 = vmatprep.subr.mxu0 %v8120_v18 }
 0x521   : > { %2224 = vmatpush1.msra.mxu1 %v5660_v44  ;;  %5103 = vmatpush3.msra.mxu0 %v5661_v23  ;;  %v8153_v44 = vld [vmem:[#allocation55_spill] sm:$0xff] }
 0x522   : > { %2225 = vmatprep.subr.mxu1 %v5662_v50  ;;  %5104 = vmatprep.subr.mxu0 %v8120_v18  ;;  %v2375_v50 = vld [vmem:[#allocation10 + $0x18] sm:$0xff] }
 0x523   : > { %2226 = vmatpush1.msra.mxu1 %v5663_v61  ;;  %5105 = vmatpush3.msra.mxu0 %v5664_v21  ;;  %v2374_v61 = vld [vmem:[#allocation10 + $0x10] sm:$0xff] }
 0x524   : > { %2227 = vmatprep.subr.mxu1 %v5665_v1  ;;  %5106 = vmatprep.subr.mxu0 %v8120_v18  ;;  %v2495_v21 = vld [vmem:[#allocation13 + $0x10] sm:$0xff] }
 0x525   : > { %2228 = vmatpush1.msra.mxu1 %v5666_v33  ;;  %5107 = vmatpush3.msra.mxu0 %v5667_v34  ;;  %v2494_v33 = vld [vmem:[#allocation13 + $0x8] sm:$0xff]  ;;  %v2372_v34 = vld [vmem:[#allocation10] sm:$0xff] }
 0x526   : > { %2229 = vmatprep.subr.mxu1 %v5668_v36  ;;  %5108 = vmatprep.subr.mxu0 %v8120_v18  ;;  %v2493_v36 = vld [vmem:[#allocation13] sm:$0xff] }
 0x527   : > { %2230 = vmatpush1.msra.mxu1 %v5669_v37  ;;  %5109 = vmatpush3.msra.mxu0 %v5670_v39 }
 0x528   : > { %2231 = vmatprep.subr.mxu1 %v5671_v40  ;;  %5110 = vmatprep.subr.mxu0 %v8120_v18 }
 0x529   : > { %2232 = vmatpush1.msra.mxu1 %v5672_v42  ;;  %5111 = vmatpush3.msra.mxu0 %v8136_v25 }
 0x52a   : > { %2233 = vmatprep.subr.mxu1 %v5673_v43  ;;  %5112 = vmatprep.subr.mxu0 %v8120_v18 }
 0x52b   : > { %2234 = vmatpush1.msra.mxu1 %v5674_v45  ;;  %2267 = vmatprep.mubr.f32.mxu1 %v8120_v18  ;;  %v1063_v45 = vpop.permute.xlu0 %1062 }
 0x52c   : > { %5113 = vmatpush3.msra.mxu0 %v8139_v30  ;;  %5114 = vmatprep.mubr.msk.f32.mxu0 %vm6071_vm0, %v8120_v18  ;;  %v8149_v30 = vld [vmem:[#allocation48_spill] sm:$0xff] }
 0x52d   : > { %5117 = vmatprep.subr.mxu1 %v8120_v18  ;;  %5140 = vmatprep.subr.mxu0 %v8120_v18 }
 0x5cc   : > { %v2107_v25 = vpop.f32.mrf.mxu1  ;;  %v2178_v46 = vpop.f32.mrf.mxu0 }
 0x5cd   : > { %v2108_v48 = vadd.f32 %v2107_v25, %v8141_v2  ;;  %v2179_v8 = vadd.f32 %v2178_v46, %v6963_v26  ;;  %v8154_v25 = vld [vmem:[#allocation57_spill] sm:$0xff] }
 0x5ce   : > { %v2109_v49 = vpop.f32.mrf.mxu1  ;;  %v5081_v51 = vpop.f32.mrf.mxu0  ;;  %v1065_v46 = vmul.f32 %v8154_v25, %v1063_v45 }
 0x5cf   : > { %v2182_v54 = vadd.f32 %v2108_v48, %v8148_v52  ;;  %v2110_v57 = vadd.f32 %v2109_v49, %v6952_v20 }
 0x5d1   : > { %v4573_v56 = vmul.f32 -1.442695, %v2182_v54  ;;  %v2189_v58 = vadd.f32 %v2110_v57, %v8149_v30  ;;  %v7419_v54 = vld [vmem:[#allocation11 + $0x18] sm:$0xff]  ;;  %v7429_v57 = vld [vmem:[#allocation11 + $0x10] sm:$0xff] }
 0x5d2   : > { %v7431_v30 = vld [vmem:[#allocation14 + $0x10] sm:$0xff] }
 0x5d3   : > { %5545 = vpow2.f32 %v4573_v56  ;;  %v4574_v59 = vmul.f32 -1.442695, %v2189_v58  ;;  %v7421_v56 = vld [vmem:[#allocation14 + $0x18] sm:$0xff]  ;;  %v7436_v58 = vld [vmem:[#allocation11 + $0x8] sm:$0xff] }
 0x5d5   : > { %5547 = vpow2.f32 %v4574_v59  ;;  %v7439_v59 = vld [vmem:[#allocation14 + $0x8] sm:$0xff] }
 0x5e0   : > { %v5546_v60 = vpop.eup %5545 }
 0x5e1   : > { %v2186_v4 = vadd.f32 1.0, %v5546_v60  ;;  %v7445_v60 = vld [vmem:[#allocation11] sm:$0xff] }
 0x5e2   : > { %v5548_v6 = vpop.eup %5547 }
 0x5e3   : > { %5549 = vrcp.f32 %v2186_v4  ;;  %v2193_v7 = vadd.f32 1.0, %v5548_v6  ;;  %v7447_v4 = vld [vmem:[#allocation14] sm:$0xff] }
 0x5e5   : > { %5551 = vrcp.f32 %v2193_v7 }
 0x5f0   : > { %v5550_v9 = vpop.eup %5549 }
 0x5f1   : > { %v2196_v10 = vmul.f32 %v5550_v9, %v2179_v8 }
 0x5f2   : > { %v5552_v14 = vpop.eup %5551 }
 0x5f3   : > { %v2197_v13 = vadd.f32 %v2196_v10, %v8150_v11  ;;  %v2199_v15 = vsub.f32 1.0, %v5552_v14  ;;  %v2201_v3 = vmul.f32 %v5552_v14, %v7237_v12 }
 0x5f5   : > { %5553 = vtanh.f32 %v2197_v13 }
 0x602   : > { %v5554_v35 = vpop.eup %5553 }
 0x603   : > { %v2200_v0 = vmul.f32 %v5554_v35, %v2199_v15 }
 0x605   : > { %v2202_v24 = vadd.f32 %v2201_v3, %v2200_v0 }
 0x607   : > { %2268 = vmatmul.mubr.f32.vlgmr.msra.gmra.mxu1 %v2202_v24  ;;  %5115 = vmatmul.mubr.f32.vlgmr.msra.gmra.mxu0 %v2202_v24 }
 0x608   : > { %5125 = vmatprep.mubr.msk.f32.mxu1 %vm6071_vm0, %v8120_v18  ;;  %5148 = vmatprep.mubr.msk.f32.mxu0 %vm6071_vm0, %v8120_v18 }
 0x609   : > { %5118 = vmatpush3.msra.mxu1 %v2375_v50 }
 0x60a   : > { %5119 = vmatprep.subr.mxu1 %v8120_v18 }
 0x60b   : > { %5120 = vmatpush3.msra.mxu1 %v2374_v61 }
 0x60c   : > { %5121 = vmatprep.subr.mxu1 %v8120_v18 }
 0x6c7   : > { %v2269_v27 = vpop.f32.mrf.mxu1  ;;  %v2340_v28 = vpop.f32.mrf.mxu0 }
 0x6c8   : > { %v2270_v17 = vadd.f32 %v2269_v27, %v8141_v2  ;;  %v2341_v63 = vadd.f32 %v2340_v28, %v6963_v26  ;;  %v2373_v26 = vld [vmem:[#allocation10 + $0x8] sm:$0xff] }
 0x6c9   : > { %v2271_v22 = vpop.f32.mrf.mxu1  ;;  %v5116_v38 = vpop.f32.mrf.mxu0  ;;  %5122 = vmatpush3.msra.mxu1 %v2373_v26 }
 0x6ca   : > { %v2344_v5 = vadd.f32 %v2270_v17, %v8151_v62  ;;  %v2272_v12 = vadd.f32 %v2271_v22, %v6952_v20  ;;  %v2496_v20 = vld [vmem:[#allocation13 + $0x18] sm:$0xff]  ;;  %5123 = vmatprep.subr.mxu1 %v8120_v18 }
 0x6cb   : > { %5141 = vmatpush3.msra.mxu0 %v2496_v20  ;;  %5124 = vmatpush3.msra.mxu1 %v2372_v34 }
 0x6cc   : > { %v4575_v31 = vmul.f32 -1.442695, %v2344_v5  ;;  %v2351_v32 = vadd.f32 %v2272_v12, %v8152_v19  ;;  %5142 = vmatprep.subr.mxu0 %v8120_v18  ;;  %5163 = vmatprep.subr.mxu1 %v8120_v18 }
 0x6cd   : > { %5143 = vmatpush3.msra.mxu0 %v2495_v21 }
 0x6ce   : > { %5555 = vpow2.f32 %v4575_v31  ;;  %v4576_v16 = vmul.f32 -1.442695, %v2351_v32  ;;  %5144 = vmatprep.subr.mxu0 %v8120_v18  ;;  %v7522_v32 = vld [vmem:[%s7987_s12] ss:$0 sm:$0xff] }
 0x6cf   : > { %5145 = vmatpush3.msra.mxu0 %v2494_v33 }
 0x6d0   : > { %5557 = vpow2.f32 %v4576_v16  ;;  %5146 = vmatprep.subr.mxu0 %v8120_v18  ;;  %v7527_v16 = vld [vmem:[%s7991_s16] ss:$0 sm:$0xff] }
 0x6d1   : > { %5147 = vmatpush3.msra.mxu0 %v2493_v36 }
 0x6d2   : > { %5174 = vmatprep.subr.mxu0 %v8120_v18 }
 0x6db   : > { %v5556_v47 = vpop.eup %5555 }
 0x6dc   : > { %v2348_v55 = vadd.f32 1.0, %v5556_v47 }
 0x6dd   : > { %v5558_v29 = vpop.eup %5557 }
 0x6de   : > { %5559 = vrcp.f32 %v2348_v55  ;;  %v2355_v53 = vadd.f32 1.0, %v5558_v29 }
 0x6e0   : > { %5561 = vrcp.f32 %v2355_v53 }
 0x6eb   : > { %v5560_v2 = vpop.eup %5559 }
 0x6ec   : > { %v2358_v41 = vmul.f32 %v5560_v2, %v2341_v63 }
 0x6ed   : > { %v5562_v1 = vpop.eup %5561 }
 0x6ee   : > { %v2359_v23 = vadd.f32 %v2358_v41, %v8153_v44  ;;  %v2361_v37 = vsub.f32 1.0, %v5562_v1  ;;  %v2363_v42 = vmul.f32 %v5562_v1, %v2202_v24  ;;  %v7536_v41 = vld [vmem:[%s7986_s11] ss:$0 sm:$0xff] }
 0x6f0   : > { %5563 = vtanh.f32 %v2359_v23  ;;  %v7542_v23 = vld [vmem:[%s7990_s15] ss:$0 sm:$0xff] }
 0x6fd   : > { %v5564_v39 = vpop.eup %5563 }
 0x6fe   : > { %v2362_v40 = vmul.f32 %v5564_v39, %v2361_v37 }
 0x700   : > { %v2364_v43 = vadd.f32 %v2363_v42, %v2362_v40 }
 0x702   : > { %2370 = vrot.lane.b32.xlu0 %v2364_v43, %s6072_s24  ;;  %2366 = vrot.lane.b32.xlu1 %v2364_v43, %s6073_s9 }
 0x706   : > { %2368 = vrot.lane.b32.xlu1 %v2364_v43, %s6074_s20 }
 0x70a   : > { %2384 = vrot.lane.b32.xlu1 %v1065_v46, %s6074_s20 }
 0x774   : > { %v2367_v48 = vpop.permute.xlu1 %2366  ;;  %v2371_v49 = vpop.permute.xlu0 %2370 }
 0x775   : > { %2386 = vrot.lane.b32.xlu0 %v2367_v48, %s6074_s20 }
 0x778   : > { %v2369_v51 = vpop.permute.xlu1 %2368 }
 0x779   : > { %2390 = vrot.lane.b32.xlu0 %v2371_v49, %s6074_s20  ;;  %2388 = vrot.lane.b32.xlu1 %v2369_v51, %s6074_s20 }
 0x77c   : > { %v2385_v52 = vpop.permute.xlu1 %2384 }
 0x77d   : > { %5126 = vmatmul.mubr.msk.f32.vlgmr.msra.gmra.mxu1 %vm2392_vm3, %v2385_v52  ;;  %5149 = vmatmul.mubr.msk.f32.vlgmr.msra.gmra.mxu0 %vm2392_vm3, %v2385_v52 }
 0x77e   : > { %5128 = vmatprep.mubr.msk.f32.mxu1 %vm6071_vm0, %v8120_v18  ;;  %5151 = vmatprep.mubr.msk.f32.mxu0 %vm6071_vm0, %v8120_v18 }
 0x77f   : > { %5164 = vmatpush3.msra.mxu1 %v7419_v54  ;;  %5175 = vmatpush3.msra.mxu0 %v7421_v56 }
 0x780   : > { %5165 = vmatprep.subr.mxu1 %v8120_v18  ;;  %5176 = vmatprep.subr.mxu0 %v8120_v18 }
 0x781   : > { %5166 = vmatpush3.msra.mxu1 %v7429_v57  ;;  %5177 = vmatpush3.msra.mxu0 %v7431_v30 }
 0x782   : > { %5167 = vmatprep.subr.mxu1 %v8120_v18  ;;  %5178 = vmatprep.subr.mxu0 %v8120_v18 }
 0x783   : > { %5168 = vmatpush3.msra.mxu1 %v7436_v58  ;;  %5179 = vmatpush3.msra.mxu0 %v7439_v59 }
 0x784   : > { %5169 = vmatprep.subr.mxu1 %v8120_v18  ;;  %5180 = vmatprep.subr.mxu0 %v8120_v18 }
 0x785   : > { %5170 = vmatpush3.msra.mxu1 %v7445_v60  ;;  %5181 = vmatpush3.msra.mxu0 %v7447_v4 }
 0x786   : > { %5185 = vmatprep.subr.mxu1 %v8120_v18  ;;  %5196 = vmatprep.subr.mxu0 %v8120_v18 }
 0x7e7   : > { %v2387_v6 = vpop.permute.xlu0 %2386 }
 0x7e8   : > { %5129 = vmatmul.mubr.msk.f32.gmra.mxu1 %vm2392_vm3, %v2387_v6  ;;  %5152 = vmatmul.mubr.msk.f32.gmra.mxu0 %vm2392_vm3, %v2387_v6 }
 0x7e9   : > { %5131 = vmatprep.mubr.msk.f32.mxu1 %vm6071_vm0, %v8120_v18  ;;  %5154 = vmatprep.mubr.msk.f32.mxu0 %vm6071_vm0, %v8120_v18 }
 0x7eb   : > { %v2389_v7 = vpop.permute.xlu1 %2388  ;;  %v2391_v8 = vpop.permute.xlu0 %2390 }
 0x7ec   : > { %5132 = vmatmul.mubr.msk.f32.gmra.mxu1 %vm2392_vm3, %v2369_v51  ;;  %5155 = vmatmul.mubr.msk.f32.gmra.mxu0 %vm2392_vm3, %v2369_v51 }
 0x7ed   : > { %5134 = vmatprep.mubr.msk.f32.mxu1 %vm6071_vm0, %v8120_v18  ;;  %5157 = vmatprep.mubr.msk.f32.mxu0 %vm6071_vm0, %v8120_v18 }
 0x7f0   : > { %5135 = vmatmul.mubr.msk.f32.gmra.mxu1 %vm2392_vm3, %v2389_v7  ;;  %5158 = vmatmul.mubr.msk.f32.gmra.mxu0 %vm2392_vm3, %v2389_v7 }
 0x7f1   : > { %5137 = vmatprep.mubr.msk.f32.mxu1 %vm6071_vm0, %v8120_v18  ;;  %5160 = vmatprep.mubr.msk.f32.mxu0 %vm6071_vm0, %v8120_v18 }
 0x7f4   : > { %5138 = vmatmul.mubr.msk.f32.gmra.mxu1 %vm2392_vm3, %v2391_v8  ;;  %5161 = vmatmul.mubr.msk.f32.gmra.mxu0 %vm2392_vm3, %v2391_v8 }
 0x7f5   : > { %5171 = vmatprep.mubr.msk.f32.mxu1 %vm6071_vm0, %v8120_v18  ;;  %5182 = vmatprep.mubr.msk.f32.mxu0 %vm6071_vm0, %v8120_v18 }
 0x7f8   : > { %5172 = vmatmul.mubr.f32.vlgmr.msra.gmra.mxu1 %v8120_v18  ;;  %5183 = vmatmul.mubr.f32.vlgmr.msra.gmra.mxu0 %v8120_v18 }
 0x7f9   : > { %5186 = vmatpush3.msra.mxu1 %v7419_v54  ;;  %5197 = vmatpush3.msra.mxu0 %v7421_v56 }
 0x7fa   : > { %5187 = vmatprep.subr.mxu1 %v8120_v18  ;;  %5198 = vmatprep.subr.mxu0 %v8120_v18 }
 0x7fb   : > { %5188 = vmatpush3.msra.mxu1 %v7429_v57  ;;  %5199 = vmatpush3.msra.mxu0 %v7431_v30 }
 0x7fc   : > { %5189 = vmatprep.subr.mxu1 %v8120_v18  ;;  %5200 = vmatprep.subr.mxu0 %v8120_v18 }
 0x7fd   : > { %5190 = vmatpush3.msra.mxu1 %v7436_v58  ;;  %5201 = vmatpush3.msra.mxu0 %v7439_v59 }
 0x7fe   : > { %5191 = vmatprep.subr.mxu1 %v8120_v18  ;;  %5202 = vmatprep.subr.mxu0 %v8120_v18 }
 0x7ff   : > { %5203 = vmatpush3.msra.mxu0 %v7447_v4  ;;  %5204 = vmatprep.mubr.msk.f32.mxu0 %vm6071_vm0, %v8120_v18 }
 0x800   : > { %5192 = vmatpush3.msra.mxu1 %v7445_v60  ;;  %5193 = vmatprep.mubr.msk.f32.mxu1 %vm6071_vm0, %v8120_v18 }
 0x801   : > { %5207 = vmatprep.subr.mxu1 %v8120_v18  ;;  %5218 = vmatprep.subr.mxu0 %v8120_v18 }
 0x83d   : > { %v2469_v9 = vpop.f32.mrf.mxu1  ;;  %v7503_v10 = vpop.f32.mrf.mxu0 }
 0x83e   : > { %v2470_v44 = vadd.f32 %v7536_v41, %v2469_v9 }
 0x83f   : > { %v5127_v11 = vpop.f32.mrf.mxu1  ;;  %v5150_v13 = vpop.f32.mrf.mxu0 }
 0x8a8   : > { %v7505_v14 = vpop.f32.mrf.mxu1  ;;  %v7507_v15 = vpop.f32.mrf.mxu0 }
 0x8aa   : > { %v5130_v35 = vpop.f32.mrf.mxu1  ;;  %v5153_v0 = vpop.f32.mrf.mxu0 }
 0x8ac   : > { %v7509_v3 = vpop.f32.mrf.mxu1  ;;  %v7511_v24 = vpop.f32.mrf.mxu0 }
 0x8ae   : > { %v5133_v27 = vpop.f32.mrf.mxu1  ;;  %v5156_v28 = vpop.f32.mrf.mxu0 }
 0x8b0   : > { %v7513_v17 = vpop.f32.mrf.mxu1  ;;  %v7515_v22 = vpop.f32.mrf.mxu0 }
 0x8b2   : > { %v5136_v38 = vpop.f32.mrf.mxu1  ;;  %v5159_v62 = vpop.f32.mrf.mxu0 }
 0x8b4   : > { %v7517_v5 = vpop.f32.mrf.mxu1  ;;  %v2590_v31 = vpop.f32.mrf.mxu0 }
 0x8b5   : > { %v2591_v50 = vadd.f32 %v7542_v23, %v2590_v31 }
 0x8b6   : > { %v5139_v12 = vpop.f32.mrf.mxu1  ;;  %v5162_v19 = vpop.f32.mrf.mxu0 }
 0x8b8   : > { %v2674_v47 = vpop.f32.mrf.mxu1  ;;  %v2781_v55 = vpop.f32.mrf.mxu0 }
 0x8b9   : > { %v2675_v29 = vadd.f32 %v7522_v32, %v2674_v47  ;;  %v2782_v53 = vadd.f32 %v7527_v16, %v2781_v55 }
 0x8ba   : > { %v5173_v63 = vpop.f32.mrf.mxu1  ;;  %v5184_v2 = vpop.f32.mrf.mxu0 }
 0x8bb   : > { %2793 = vrot.lane.b32.xlu0 %v2782_v53, %s6072_s24  ;;  %2686 = vrot.lane.b32.xlu1 %v2675_v29, %s6072_s24  ;;  %v2678_v20 = vadd.f32 %v2675_v29, %v2470_v44  ;;  %v2785_v61 = vadd.f32 %v2782_v53, %v2591_v50  ;;  %v2586_v53 = vadd.f32 %v7542_v23, %v7515_v22 }
 0x8bc   : > { %v2475_v63 = vadd.f32 %v7536_v41, %v7505_v14 }
 0x8bd   : > { %v4590_v21 = vmul.f32 -1.442695, %v2678_v20  ;;  %v4592_v1 = vmul.f32 -1.442695, %v2785_v61 }
 0x8bf   : > { %5565 = vpow2.f32 %v4590_v21 }
 0x8c0   : > { %5567 = vpow2.f32 %v4592_v1 }
 0x8cc   : > { %v5566_v26 = vpop.eup %5565 }
 0x8cd   : > { %v5568_v33 = vpop.eup %5567  ;;  %v2682_v34 = vadd.f32 1.0, %v5566_v26 }
 0x8ce   : > { %v2789_v36 = vadd.f32 1.0, %v5568_v33 }
 0x8cf   : > { %5569 = vrcp.f32 %v2682_v34 }
 0x8d0   : > { %5571 = vrcp.f32 %v2789_v36 }
 0x8dc   : > { %v5570_v37 = vpop.eup %5569 }
 0x8dd   : > { %v5572_v39 = vpop.eup %5571  ;;  %v2696_v8 = vsub.f32 1.0, %v5570_v37  ;;  %v2702_v35 = vmul.f32 0.0, %v5570_v37 }
 0x8de   : > { %v2803_v6 = vsub.f32 1.0, %v5572_v39  ;;  %v2809_v9 = vmul.f32 0.0, %v5572_v39 }
 0x92d   : > { %v2794_v40 = vpop.permute.xlu0 %2793  ;;  %v2687_v42 = vpop.permute.xlu1 %2686 }
 0x92e   : > { %v2796_v43 = vmul.f32 %v5572_v39, %v2794_v40  ;;  %v2689_v45 = vmul.f32 %v5570_v37, %v2687_v42 }
 0x930   : > { %2798 = vrot.lane.b32.xlu0 %v2796_v43, %s6072_s24  ;;  %2691 = vrot.lane.b32.xlu1 %v2689_v45, %s6072_s24 }
 0x9a2   : > { %v2799_v25 = vpop.permute.xlu0 %2798  ;;  %v2692_v46 = vpop.permute.xlu1 %2691 }
 0x9a3   : > { %v2801_v48 = vadd.f32 %v2799_v25, %v2591_v50  ;;  %v2694_v49 = vadd.f32 %v2692_v46, %v2470_v44 }
 0x9a5   : > { %5573 = vtanh.f32 %v2801_v48 }
 0x9a6   : > { %5575 = vtanh.f32 %v2694_v49 }
 0x9b2   : > { %v5574_v51 = vpop.eup %5573 }
 0x9b3   : > { %v5576_v52 = vpop.eup %5575  ;;  %2805 = vrot.lane.b32.xlu0 %v5574_v51, %s6074_s20 }
 0x9b4   : > { %2698 = vrot.lane.b32.xlu1 %v5576_v52, %s6074_s20 }
 0xa25   : > { %v2806_v7 = vpop.permute.xlu0 %2805 }
 0xa26   : > { %v2808_v11 = vmul.f32 %v2806_v7, %v2803_v6  ;;  %v2699_v13 = vpop.permute.xlu1 %2698 }
 0xa27   : > { %v2701_v0 = vmul.f32 %v2699_v13, %v2696_v8 }
 0xa28   : > { %v7549_v27 = vadd.f32 %v2809_v9, %v2808_v11 }
 0xa29   : > { %v7551_v28 = vadd.f32 %v2702_v35, %v2701_v0 }
 0xa2a   : > { %2913 = vrot.lane.b32.xlu0 %v7549_v27, %s6074_s20 }
 0xa2b   : > { %2812 = vrot.lane.b32.xlu1 %v7551_v28, %s6074_s20 }
 0xa9c   : > { %v2914_v38 = vpop.permute.xlu0 %2913 }
 0xa9d   : > { %v7557_v62 = vpop.permute.xlu1 %2812  ;;  %5205 = vmatmul.mubr.msk.f32.vlgmr.msra.gmra.mxu0 %vm2392_vm3, %v2914_v38 }
 0xa9e   : > { %5194 = vmatmul.mubr.msk.f32.vlgmr.msra.gmra.mxu1 %vm2392_vm3, %v7557_v62  ;;  %5219 = vmatpush3.msra.mxu0 %v7421_v56 }
 0xa9f   : > { %5208 = vmatpush3.msra.mxu1 %v7419_v54  ;;  %5220 = vmatprep.subr.mxu0 %v8120_v18 }
 0xaa0   : > { %5209 = vmatprep.subr.mxu1 %v8120_v18  ;;  %5221 = vmatpush3.msra.mxu0 %v7431_v30 }
 0xaa1   : > { %5210 = vmatpush3.msra.mxu1 %v7429_v57  ;;  %5222 = vmatprep.subr.mxu0 %v8120_v18 }
 0xaa2   : > { %5211 = vmatprep.subr.mxu1 %v8120_v18  ;;  %5223 = vmatpush3.msra.mxu0 %v7439_v59 }
 0xaa3   : > { %5212 = vmatpush3.msra.mxu1 %v7436_v58  ;;  %5224 = vmatprep.subr.mxu0 %v8120_v18 }
 0xaa4   : > { %5213 = vmatprep.subr.mxu1 %v8120_v18  ;;  %5225 = vmatpush3.msra.mxu0 %v7447_v4 }
 0xaa5   : > { %5226 = vmatprep.mubr.msk.f32.mxu0 %vm6071_vm0, %v8120_v18  ;;  %5214 = vmatpush3.msra.mxu1 %v7445_v60 }
 0xaa6   : > { %5215 = vmatprep.mubr.msk.f32.mxu1 %vm6071_vm0, %v8120_v18  ;;  %5229 = vmatprep.subr.mxu1 %v8120_v18 }
 0xaa7   : > { %5240 = vmatprep.subr.mxu0 %v8120_v18 }
 0xb5d   : > { %v2983_v31 = vpop.f32.mrf.mxu0 }
 0xb5e   : > { %v2882_v12 = vpop.f32.mrf.mxu1  ;;  %v2984_v19 = vadd.f32 %v7527_v16, %v2983_v31 }
 0xb5f   : > { %v2883_v47 = vadd.f32 %v7522_v32, %v2882_v12  ;;  %v5206_v55 = vpop.f32.mrf.mxu0 }
 0xb60   : > { %v5195_v29 = vpop.f32.mrf.mxu1  ;;  %2995 = vrot.lane.b32.xlu0 %v2984_v19, %s6072_s24  ;;  %v2987_v2 = vadd.f32 %v2984_v19, %v2586_v53  ;;  %v2480_v55 = vadd.f32 %v7536_v41, %v7509_v3 }
 0xb61   : > { %2894 = vrot.lane.b32.xlu1 %v2883_v47, %s6072_s24  ;;  %v2886_v44 = vadd.f32 %v2883_v47, %v2475_v63  ;;  %v2581_v47 = vadd.f32 %v7542_v23, %v7511_v24 }
 0xb62   : > { %v4596_v50 = vmul.f32 -1.442695, %v2987_v2 }
 0xb63   : > { %v4594_v20 = vmul.f32 -1.442695, %v2886_v44 }
 0xb64   : > { %5577 = vpow2.f32 %v4596_v50 }
 0xb65   : > { %5579 = vpow2.f32 %v4594_v20 }
 0xb71   : > { %v5578_v61 = vpop.eup %5577 }
 0xb72   : > { %v5580_v21 = vpop.eup %5579  ;;  %v2991_v1 = vadd.f32 1.0, %v5578_v61 }
 0xb73   : > { %v2890_v26 = vadd.f32 1.0, %v5580_v21 }
 0xb74   : > { %5581 = vrcp.f32 %v2991_v1 }
 0xb75   : > { %5583 = vrcp.f32 %v2890_v26 }
 0xb81   : > { %v5582_v33 = vpop.eup %5581 }
 0xb82   : > { %v5584_v36 = vpop.eup %5583  ;;  %v3005_v46 = vsub.f32 1.0, %v5582_v33  ;;  %v3011_v51 = vmul.f32 %v5582_v33, %v7549_v27 }
 0xb83   : > { %v2904_v49 = vsub.f32 1.0, %v5584_v36  ;;  %v2910_v7 = vmul.f32 %v5584_v36, %v7551_v28 }
 0xbd2   : > { %v2996_v34 = vpop.permute.xlu0 %2995 }
 0xbd3   : > { %v2998_v37 = vmul.f32 %v5582_v33, %v2996_v34  ;;  %v2895_v22 = vpop.permute.xlu1 %2894 }
 0xbd4   : > { %v2897_v39 = vmul.f32 %v5584_v36, %v2895_v22 }
 0xbd5   : > { %3000 = vrot.lane.b32.xlu0 %v2998_v37, %s6072_s24 }
 0xbd6   : > { %2899 = vrot.lane.b32.xlu1 %v2897_v39, %s6072_s24 }
 0xc47   : > { %v3001_v14 = vpop.permute.xlu0 %3000 }
 0xc48   : > { %v3003_v40 = vadd.f32 %v3001_v14, %v2586_v53  ;;  %v2900_v42 = vpop.permute.xlu1 %2899 }
 0xc49   : > { %v2902_v43 = vadd.f32 %v2900_v42, %v2475_v63 }
 0xc4a   : > { %5585 = vtanh.f32 %v3003_v40 }
 0xc4b   : > { %5587 = vtanh.f32 %v2902_v43 }
 0xc57   : > { %v5586_v45 = vpop.eup %5585 }
 0xc58   : > { %v5588_v25 = vpop.eup %5587  ;;  %3007 = vrot.lane.b32.xlu0 %v5586_v45, %s6074_s20 }
 0xc59   : > { %2906 = vrot.lane.b32.xlu1 %v5588_v25, %s6074_s20 }
 0xcca   : > { %v3008_v48 = vpop.permute.xlu0 %3007 }
 0xccb   : > { %v3010_v52 = vmul.f32 %v3008_v48, %v3005_v46  ;;  %v2907_v6 = vpop.permute.xlu1 %2906 }
 0xccc   : > { %v2909_v8 = vmul.f32 %v2907_v6, %v2904_v49 }
 0xccd   : > { %v7596_v9 = vadd.f32 %v3011_v51, %v3010_v52 }
 0xcce   : > { %v7598_v11 = vadd.f32 %v2910_v7, %v2909_v8 }
 0xccf   : > { %3115 = vrot.lane.b32.xlu0 %v7596_v9, %s6074_s20 }
 0xcd0   : > { %3014 = vrot.lane.b32.xlu1 %v7598_v11, %s6074_s20 }
 0xd41   : > { %v3116_v13 = vpop.permute.xlu0 %3115 }
 0xd42   : > { %v7604_v35 = vpop.permute.xlu1 %3014  ;;  %5227 = vmatmul.mubr.msk.f32.vlgmr.msra.gmra.mxu0 %vm2392_vm3, %v3116_v13 }
 0xd43   : > { %5216 = vmatmul.mubr.msk.f32.vlgmr.msra.gmra.mxu1 %vm2392_vm3, %v7604_v35  ;;  %5241 = vmatpush3.msra.mxu0 %v7421_v56 }
 0xd44   : > { %5230 = vmatpush3.msra.mxu1 %v7419_v54  ;;  %5242 = vmatprep.subr.mxu0 %v8120_v18 }
 0xd45   : > { %5231 = vmatprep.subr.mxu1 %v8120_v18  ;;  %5243 = vmatpush3.msra.mxu0 %v7431_v30 }
 0xd46   : > { %5232 = vmatpush3.msra.mxu1 %v7429_v57  ;;  %5244 = vmatprep.subr.mxu0 %v8120_v18 }
 0xd47   : > { %5233 = vmatprep.subr.mxu1 %v8120_v18  ;;  %5245 = vmatpush3.msra.mxu0 %v7439_v59 }
 0xd48   : > { %5234 = vmatpush3.msra.mxu1 %v7436_v58  ;;  %5246 = vmatprep.subr.mxu0 %v8120_v18 }
 0xd49   : > { %5235 = vmatprep.subr.mxu1 %v8120_v18  ;;  %5247 = vmatpush3.msra.mxu0 %v7447_v4 }
 0xd4a   : > { %5248 = vmatprep.mubr.msk.f32.mxu0 %vm6071_vm0, %v8120_v18  ;;  %5236 = vmatpush3.msra.mxu1 %v7445_v60 }
 0xd4b   : > { %5237 = vmatprep.mubr.msk.f32.mxu1 %vm6071_vm0, %v8120_v18  ;;  %5251 = vmatprep.subr.mxu1 %v8120_v18 }
 0xd4c   : > { %5262 = vmatprep.subr.mxu0 %v8120_v18 }
 0xe02   : > { %v3185_v0 = vpop.f32.mrf.mxu0 }
 0xe03   : > { %v3084_v28 = vpop.f32.mrf.mxu1  ;;  %v3186_v38 = vadd.f32 %v7527_v16, %v3185_v0 }
 0xe04   : > { %v3085_v31 = vadd.f32 %v7522_v32, %v3084_v28  ;;  %v5228_v12 = vpop.f32.mrf.mxu0 }
 0xe05   : > { %v5217_v19 = vpop.f32.mrf.mxu1  ;;  %3197 = vrot.lane.b32.xlu0 %v3186_v38, %s6072_s24  ;;  %v3189_v29 = vadd.f32 %v3186_v38, %v2581_v47 }
 0xe06   : > { %3096 = vrot.lane.b32.xlu1 %v3085_v31, %s6072_s24  ;;  %v3088_v53 = vadd.f32 %v3085_v31, %v2480_v55 }
 0xe07   : > { %v4600_v63 = vmul.f32 -1.442695, %v3189_v29 }
 0xe08   : > { %v4598_v2 = vmul.f32 -1.442695, %v3088_v53 }
 0xe09   : > { %5589 = vpow2.f32 %v4600_v63 }
 0xe0a   : > { %5591 = vpow2.f32 %v4598_v2 }
 0xe16   : > { %v5590_v44 = vpop.eup %5589 }
 0xe17   : > { %v5592_v50 = vpop.eup %5591  ;;  %v3193_v20 = vadd.f32 1.0, %v5590_v44 }
 0xe18   : > { %v3092_v61 = vadd.f32 1.0, %v5592_v50 }
 0xe19   : > { %5593 = vrcp.f32 %v3193_v20 }
 0xe1a   : > { %5595 = vrcp.f32 %v3092_v61 }
 0xe26   : > { %v5594_v21 = vpop.eup %5593 }
 0xe27   : > { %v5596_v26 = vpop.eup %5595  ;;  %v3207_v40 = vsub.f32 1.0, %v5594_v21  ;;  %v3213_v45 = vmul.f32 %v5594_v21, %v7596_v9 }
 0xe28   : > { %v3106_v43 = vsub.f32 1.0, %v5596_v26  ;;  %v3112_v48 = vmul.f32 %v5596_v26, %v7598_v11 }
 0xe77   : > { %v3198_v1 = vpop.permute.xlu0 %3197 }
 0xe78   : > { %v3200_v33 = vmul.f32 %v5594_v21, %v3198_v1  ;;  %v3097_v24 = vpop.permute.xlu1 %3096 }
 0xe79   : > { %v3099_v34 = vmul.f32 %v5596_v26, %v3097_v24 }
 0xe7a   : > { %3202 = vrot.lane.b32.xlu0 %v3200_v33, %s6072_s24 }
 0xe7b   : > { %3101 = vrot.lane.b32.xlu1 %v3099_v34, %s6072_s24 }
 0xeec   : > { %v3203_v3 = vpop.permute.xlu0 %3202 }
 0xeed   : > { %v3205_v36 = vadd.f32 %v3203_v3, %v2581_v47  ;;  %v3102_v37 = vpop.permute.xlu1 %3101 }
 0xeee   : > { %v3104_v22 = vadd.f32 %v3102_v37, %v2480_v55 }
 0xeef   : > { %5597 = vtanh.f32 %v3205_v36 }
 0xef0   : > { %5599 = vtanh.f32 %v3104_v22 }
 0xefc   : > { %v5598_v39 = vpop.eup %5597 }
 0xefd   : > { %v5600_v14 = vpop.eup %5599  ;;  %3209 = vrot.lane.b32.xlu0 %v5598_v39, %s6074_s20 }
 0xefe   : > { %3108 = vrot.lane.b32.xlu1 %v5600_v14, %s6074_s20 }
 0xf6f   : > { %v3210_v42 = vpop.permute.xlu0 %3209 }
 0xf70   : > { %v3212_v25 = vmul.f32 %v3210_v42, %v3207_v40  ;;  %v3109_v46 = vpop.permute.xlu1 %3108 }
 0xf71   : > { %v3111_v49 = vmul.f32 %v3109_v46, %v3106_v43  ;;  %v7710_v46 = vadd.f32 %v7542_v23, %v7503_v10 }
 0xf72   : > { %v7643_v51 = vadd.f32 %v3213_v45, %v3212_v25 }
 0xf73   : > { %v7645_v52 = vadd.f32 %v3112_v48, %v3111_v49  ;;  %v7714_v48 = vadd.f32 %v7536_v41, %v7517_v5 }
 0xf74   : > { %3317 = vrot.lane.b32.xlu0 %v7643_v51, %s6074_s20 }
 0xf75   : > { %3216 = vrot.lane.b32.xlu1 %v7645_v52, %s6074_s20 }
 0xfe6   : > { %v3318_v6 = vpop.permute.xlu0 %3317 }
 0xfe7   : > { %v7651_v7 = vpop.permute.xlu1 %3216  ;;  %5249 = vmatmul.mubr.msk.f32.vlgmr.msra.gmra.mxu0 %vm2392_vm3, %v3318_v6 }
 0xfe8   : > { %5238 = vmatmul.mubr.msk.f32.vlgmr.msra.gmra.mxu1 %vm2392_vm3, %v7651_v7  ;;  %5263 = vmatpush3.msra.mxu0 %v7421_v56 }
 0xfe9   : > { %5252 = vmatpush3.msra.mxu1 %v7419_v54  ;;  %5264 = vmatprep.subr.mxu0 %v8120_v18 }
 0xfea   : > { %5253 = vmatprep.subr.mxu1 %v8120_v18  ;;  %5265 = vmatpush3.msra.mxu0 %v7431_v30 }
 0xfeb   : > { %5254 = vmatpush3.msra.mxu1 %v7429_v57  ;;  %5266 = vmatprep.subr.mxu0 %v8120_v18 }
 0xfec   : > { %5255 = vmatprep.subr.mxu1 %v8120_v18  ;;  %5267 = vmatpush3.msra.mxu0 %v7439_v59 }
 0xfed   : > { %5256 = vmatpush3.msra.mxu1 %v7436_v58  ;;  %5268 = vmatprep.subr.mxu0 %v8120_v18 }
 0xfee   : > { %5257 = vmatprep.subr.mxu1 %v8120_v18  ;;  %5269 = vmatpush3.msra.mxu0 %v7447_v4  ;;  %v2485_v4 = vadd.f32 %v7536_v41, %v7513_v17 }
 0xfef   : > { %5270 = vmatprep.mubr.msk.f32.mxu0 %vm6071_vm0, %v8120_v18  ;;  %5258 = vmatpush3.msra.mxu1 %v7445_v60  ;;  %v2576_v60 = vadd.f32 %v7542_v23, %v7507_v15 }
 0xff0   : > { %5259 = vmatprep.mubr.msk.f32.mxu1 %vm6071_vm0, %v8120_v18  ;;  %5273 = vmatprep.subr.mxu0 %v8120_v18 }
0x10a7   : > { %v3387_v54 = vpop.f32.mrf.mxu0 }
0x10a8   : > { %v3286_v56 = vpop.f32.mrf.mxu1  ;;  %v3388_v57 = vadd.f32 %v7527_v16, %v3387_v54 }
0x10a9   : > { %v3287_v30 = vadd.f32 %v7522_v32, %v3286_v56  ;;  %v5250_v58 = vpop.f32.mrf.mxu0 }
0x10aa   : > { %v5239_v59 = vpop.f32.mrf.mxu1  ;;  %3399 = vrot.lane.b32.xlu0 %v3388_v57, %s6072_s24  ;;  %v3391_v8 = vadd.f32 %v3388_v57, %v2576_v60 }
0x10ab   : > { %3298 = vrot.lane.b32.xlu1 %v3287_v30, %s6072_s24  ;;  %v3290_v11 = vadd.f32 %v3287_v30, %v2485_v4  ;;  %v3673_v59 = vld [vmem:[%s7992_s17 + $0xf8] sm:$0xff] }
0x10ac   : > { %v4604_v13 = vmul.f32 -1.442695, %v3391_v8  ;;  %4810 = vmatprep.subr.mxu1 %v3673_v59  ;;  %v3656_v8 = vld [vmem:[%s7992_s17 + $0x70] sm:$0xff] }
0x10ad   : > { %v4602_v0 = vmul.f32 -1.442695, %v3290_v11  ;;  %v3671_v11 = vld [vmem:[%s7992_s17 + $0xe8] sm:$0xff] }
0x10ae   : > { %5601 = vpow2.f32 %v4604_v13  ;;  %v3655_v13 = vld [vmem:[%s7992_s17 + $0x68] sm:$0xff] }
0x10af   : > { %5603 = vpow2.f32 %v4602_v0  ;;  %v3670_v0 = vld [vmem:[%s7992_s17 + $0xe0] sm:$0xff] }
0x10bb   : > { %v5602_v28 = vpop.eup %5601 }
0x10bc   : > { %v5604_v38 = vpop.eup %5603  ;;  %v3395_v31 = vadd.f32 1.0, %v5602_v28  ;;  %v3654_v28 = vld [vmem:[%s7992_s17 + $0x60] sm:$0xff] }
0x10bd   : > { %v3294_v12 = vadd.f32 1.0, %v5604_v38  ;;  %v3669_v38 = vld [vmem:[%s7992_s17 + $0xd8] sm:$0xff] }
0x10be   : > { %5605 = vrcp.f32 %v3395_v31  ;;  %v3653_v31 = vld [vmem:[%s7992_s17 + $0x58] sm:$0xff] }
0x10bf   : > { %5607 = vrcp.f32 %v3294_v12  ;;  %v3668_v12 = vld [vmem:[%s7992_s17 + $0xd0] sm:$0xff] }
0x10cb   : > { %v5606_v19 = vpop.eup %5605 }
0x10cc   : > { %v5608_v55 = vpop.eup %5607  ;;  %v3409_v61 = vsub.f32 1.0, %v5606_v19  ;;  %v3415_v26 = vmul.f32 %v5606_v19, %v7643_v51 }
0x10cd   : > { %v3308_v1 = vsub.f32 1.0, %v5608_v55  ;;  %v3314_v34 = vmul.f32 %v5608_v55, %v7645_v52 }
0x111c   : > { %v3400_v47 = vpop.permute.xlu0 %3399 }
0x111d   : > { %v3402_v29 = vmul.f32 %v5606_v19, %v3400_v47  ;;  %v3299_v15 = vpop.permute.xlu1 %3298  ;;  %v3652_v19 = vld [vmem:[%s7992_s17 + $0x50] sm:$0xff]  ;;  %v3667_v47 = vld [vmem:[%s7992_s17 + $0xc8] sm:$0xff] }
0x111e   : > { %v3301_v53 = vmul.f32 %v5608_v55, %v3299_v15  ;;  %v3651_v55 = vld [vmem:[%s7992_s17 + $0x48] sm:$0xff]  ;;  %v3650_v15 = vld [vmem:[%s7992_s17 + $0x40] sm:$0xff] }
0x111f   : > { %3404 = vrot.lane.b32.xlu0 %v3402_v29, %s6072_s24  ;;  %v3666_v29 = vld [vmem:[%s7992_s17 + $0xc0] sm:$0xff] }
0x1120   : > { %3303 = vrot.lane.b32.xlu1 %v3301_v53, %s6072_s24  ;;  %v3665_v53 = vld [vmem:[%s7992_s17 + $0xb8] sm:$0xff] }
0x1191   : > { %v3405_v17 = vpop.permute.xlu0 %3404 }
0x1192   : > { %v3407_v63 = vadd.f32 %v3405_v17, %v2576_v60  ;;  %v3304_v2 = vpop.permute.xlu1 %3303  ;;  %v3657_v60 = vld [vmem:[%s7992_s17 + $0x78] sm:$0xff] }
0x1193   : > { %v3306_v44 = vadd.f32 %v3304_v2, %v2485_v4  ;;  %v3672_v4 = vld [vmem:[%s7992_s17 + $0xf0] sm:$0xff]  ;;  %v3649_v17 = vld [vmem:[%s7992_s17 + $0x38] sm:$0xff] }
0x1194   : > { %5609 = vtanh.f32 %v3407_v63  ;;  %v3664_v63 = vld [vmem:[%s7992_s17 + $0xb0] sm:$0xff] }
0x1195   : > { %5611 = vtanh.f32 %v3306_v44  ;;  %v3648_v2 = vld [vmem:[%s7992_s17 + $0x30] sm:$0xff]  ;;  %v3663_v44 = vld [vmem:[%s7992_s17 + $0xa8] sm:$0xff] }
0x11a1   : > { %v5610_v50 = vpop.eup %5609 }
0x11a2   : > { %v5612_v20 = vpop.eup %5611  ;;  %3411 = vrot.lane.b32.xlu0 %v5610_v50, %s6074_s20  ;;  %v3647_v50 = vld [vmem:[%s7992_s17 + $0x28] sm:$0xff] }
0x11a3   : > { %3310 = vrot.lane.b32.xlu1 %v5612_v20, %s6074_s20  ;;  %v3662_v20 = vld [vmem:[%s7992_s17 + $0xa0] sm:$0xff] }
0x1214   : > { %v3412_v21 = vpop.permute.xlu0 %3411 }
0x1215   : > { %v3414_v33 = vmul.f32 %v3412_v21, %v3409_v61  ;;  %v3311_v24 = vpop.permute.xlu1 %3310 }
0x1216   : > { %v3313_v3 = vmul.f32 %v3311_v24, %v3308_v1  ;;  %v3661_v24 = vld [vmem:[%s7992_s17 + $0x98] sm:$0xff] }
0x1217   : > { %v7689_v36 = vadd.f32 %v3415_v26, %v3414_v33  ;;  %v3646_v33 = vld [vmem:[%s7992_s17 + $0x20] sm:$0xff] }
0x1218   : > { %v7691_v37 = vadd.f32 %v3314_v34, %v3313_v3  ;;  %v3645_v34 = vld [vmem:[%s7992_s17 + $0x18] sm:$0xff]  ;;  %v3660_v3 = vld [vmem:[%s7992_s17 + $0x90] sm:$0xff] }
0x1219   : > { %3519 = vrot.lane.b32.xlu0 %v7689_v36, %s6074_s20 }
0x121a   : > { %3418 = vrot.lane.b32.xlu1 %v7691_v37, %s6074_s20 }
0x128b   : > { %v3520_v22 = vpop.permute.xlu0 %3519 }
0x128c   : > { %v7697_v39 = vpop.permute.xlu1 %3418  ;;  %5271 = vmatmul.mubr.msk.f32.vlgmr.msra.gmra.mxu0 %vm2392_vm3, %v3520_v22  ;;  %v3644_v22 = vld [vmem:[%s7992_s17 + $0x10] sm:$0xff] }
0x128d   : > { %5260 = vmatmul.mubr.msk.f32.vlgmr.msra.gmra.mxu1 %vm2392_vm3, %v7697_v39  ;;  %5289 = vmatprep.mubr.msk.f32.mxu0 %vm6071_vm0, %v8120_v18 }
0x128e   : > { %4811 = vmatpush3.msra.mxu1 %v3657_v60 }
0x128f   : > { %4812 = vmatprep.subr.mxu1 %v3672_v4 }
0x1290   : > { %4813 = vmatpush3.msra.mxu1 %v3656_v8 }
0x1291   : > { %4814 = vmatprep.subr.mxu1 %v3671_v11 }
0x1292   : > { %4815 = vmatpush3.msra.mxu1 %v3655_v13 }
0x1293   : > { %4816 = vmatprep.subr.mxu1 %v3670_v0 }
0x1294   : > { %4817 = vmatpush3.msra.mxu1 %v3654_v28 }
0x1295   : > { %4818 = vmatprep.subr.mxu1 %v3669_v38 }
0x1296   : > { %4819 = vmatpush3.msra.mxu1 %v3653_v31  ;;  %v3835_v31 = vld [vmem:[#allocation16 + $0x10] sm:$0xff] }
0x1297   : > { %4820 = vmatprep.subr.mxu1 %v3668_v12 }
0x1298   : > { %4821 = vmatpush3.msra.mxu1 %v3652_v19 }
0x1299   : > { %4822 = vmatprep.subr.mxu1 %v3667_v47  ;;  %v4609_v47 = vld [vmem:[%s8155_s5] ss:$0 sm:$0xff]  ;;  %s4620_s5 = sshll.u32 %s6227_s26, 4  ;;  %s5971_s26 = scalar_lea.vmem %s5970_s13, 32 }
0x129a   : > { %4823 = vmatpush3.msra.mxu1 %v3651_v55  ;;  %s4333_s21 = scalar_lea.hbm %s8159_s8, %s4620_s5 }
0x129b   : > { %4824 = vmatprep.subr.mxu1 %v3666_v29 }
0x129c   : > { %4825 = vmatpush3.msra.mxu1 %v3650_v15 }
0x129d   : > { %4826 = vmatprep.subr.mxu1 %v3665_v53 }
0x129e   : > { %4827 = vmatpush3.msra.mxu1 %v3649_v17  ;;  %v3832_v17 = vld [vmem:[%s6449_s1] sm:$0xff]  ;;  %s958_s1 = scalar_lea.vmem [#allocation20], %s6438_s6 }
0x129f   : > { %4828 = vmatprep.subr.mxu1 %v3664_v63  ;;  %s4335_s23 = sshll.u32 %s958_s1, 4  ;;  %s4336_s23 = int_to_ptr.vmem [resolvable:$true] %s4335_s23 }
0x12a0   : > { %4829 = vmatpush3.msra.mxu1 %v3648_v2  ;;  %v3995_v2 = vld [vmem:[#allocation17 + $0x18] sm:$0xff]  ;;  %s5965_s0 = scalar_lea.vmem %s4336_s23, 16  ;;  %p5972_p0 = scmp.lt.s32.totalorder %s4336_s23, %s5970_s13 }
0x12a1   : > { %4830 = vmatprep.subr.mxu1 %v3663_v44  ;;  %p5966_p3 = scmp.ne.s32.totalorder %s4336_s23, %s5965_s0  ;;  %p5973_p6 = scmp.lt.s32.totalorder %s5971_s26, %s5965_s0 }
0x12a2   : > { %4831 = vmatpush3.msra.mxu1 %v3647_v50  ;;  %v3994_v50 = vld [vmem:[#allocation17 + $0x10] sm:$0xff] }
0x12a3   : > { %4832 = vmatprep.subr.mxu1 %v3662_v20  ;;  %v3993_v20 = vld [vmem:[#allocation17 + $0x8] sm:$0xff]  ;;  %p5967_p10 = pnand %p5966_p3, %p8160_p4  ;;  %p5974_p5 = por %p5973_p6, %p5972_p0 }
0x12a4   : > { %4833 = vmatpush3.msra.mxu1 %v3646_v33 }
0x12a5   : > { %4834 = vmatprep.subr.mxu1 %v3661_v24  ;;  %p5968_p7 = pneg %p5967_p10 }
0x12a6   : > { %4835 = vmatpush3.msra.mxu1 %v3645_v34 }
0x12a7   : > { %4836 = vmatprep.subr.mxu1 %v3660_v3  ;;  %v4150_v3 = vld [vmem:[%s8157_s10 + $0x18] sm:$0xff]  ;;  %p5975_p11 = pnand %p5974_p5, %p5968_p7 }
0x12a8   : > { %4837 = vmatpush3.msra.mxu1 %v3644_v22 }
0x134c   : > { %v3589_v14 = vpop.f32.mrf.mxu0 }
0x134d   : > { %v3488_v40 = vpop.f32.mrf.mxu1  ;;  %v3590_v42 = vadd.f32 %v7527_v16, %v3589_v14  ;;  %v3659_v14 = vld [vmem:[%s7992_s17 + $0x88] sm:$0xff] }
0x134e   : > { %v3489_v43 = vadd.f32 %v7522_v32, %v3488_v40  ;;  %v5272_v45 = vpop.f32.mrf.mxu0  ;;  %4838 = vmatprep.subr.mxu1 %v3659_v14  ;;  %v3643_v40 = vld [vmem:[%s7992_s17 + $0x8] sm:$0xff]  ;;  %v4149_v14 = vld [vmem:[%s8157_s10 + $0x10] sm:$0xff] }
0x134f   : > { %v5261_v25 = vpop.f32.mrf.mxu1  ;;  %3601 = vrot.lane.b32.xlu0 %v3590_v42, %s6072_s24  ;;  %v3593_v49 = vadd.f32 %v3590_v42, %v7710_v46  ;;  %v3658_v42 = vld [vmem:[%s7992_s17 + $0x80] sm:$0xff]  ;;  %4839 = vmatpush3.msra.mxu1 %v3643_v40  ;;  %v3681_v45 = vld [vmem:[%s7992_s17 + $0x138] sm:$0xff]  ;;  %v4148_v40 = vld [vmem:[%s8157_s10 + $0x8] sm:$0xff] }
0x1350   : > { %3500 = vrot.lane.b32.xlu1 %v3489_v43, %s6072_s24  ;;  %v3492_v16 = vadd.f32 %v3489_v43, %v7714_v48  ;;  %v3642_v43 = vld [vmem:[%s7992_s17] sm:$0xff]  ;;  %4840 = vmatprep.subr.mxu1 %v3658_v42  ;;  %v3680_v25 = vld [vmem:[%s7992_s17 + $0x130] sm:$0xff] }
0x1351   : > { %v4608_v52 = vmul.f32 -1.442695, %v3593_v49  ;;  %4841 = vmatpush3.msra.mxu1 %v3642_v43  ;;  %5274 = vmatpush3.msra.mxu0 %v3681_v45  ;;  %v4147_v42 = vld [vmem:[%s8157_s10] sm:$0xff] }
0x1352   : > { %v4606_v32 = vmul.f32 -1.442695, %v3492_v16  ;;  %5319 = vmatprep.subr.mxu1 %v8120_v18  ;;  %5275 = vmatprep.subr.mxu0 %v8120_v18  ;;  %v3626_v16 = vsel %vm2392_vm3, %v7697_v39, %v7596_v9  ;;  %v3677_v9 = vld [vmem:[%s7992_s17 + $0x118] sm:$0xff] }
0x1353   : > { %5613 = vpow2.f32 %v4608_v52  ;;  %5276 = vmatpush3.msra.mxu0 %v3680_v25  ;;  %v3678_v52 = vld [vmem:[%s7992_s17 + $0x120] sm:$0xff] }
0x1354   : > { %5615 = vpow2.f32 %v4606_v32  ;;  %5277 = vmatprep.subr.mxu0 %v8120_v18  ;;  %v3622_v32 = vsel %vm2392_vm3, %v7604_v35, %v7689_v36  ;;  %v3675_v35 = vld [vmem:[%s7992_s17 + $0x108] sm:$0xff] }
0x1355   : > { %v5492_v39 = vpack.i.bf16 %v3622_v32, %v3626_v16 }
0x1360   : > { %v5614_v6 = vpop.eup %5613 }
0x1361   : > { %v5616_v54 = vpop.eup %5615  ;;  %v3597_v56 = vadd.f32 1.0, %v5614_v6  ;;  %v3676_v6 = vld [vmem:[%s7992_s17 + $0x110] sm:$0xff] }
0x1362   : > { %v3496_v57 = vadd.f32 1.0, %v5616_v54  ;;  %v3674_v54 = vld [vmem:[%s7992_s17 + $0x100] sm:$0xff] }
0x1363   : > { %5617 = vrcp.f32 %v3597_v56 }
0x1364   : > { %5619 = vrcp.f32 %v3496_v57 }
0x1370   : > { %v7718_v10 = vpop.eup %5617 }
0x1371   : > { %v7720_v30 = vpop.eup %5619  ;;  %v3611_v56 = vsub.f32 1.0, %v7718_v10 }
0x1372   : > { %v3516_v59 = vmul.f32 %v7720_v30, %v7691_v37 }
0x13c1   : > { %v3602_v23 = vpop.permute.xlu0 %3601 }
0x13c2   : > { %v3604_v5 = vmul.f32 %v7718_v10, %v3602_v23  ;;  %v3501_v41 = vpop.permute.xlu1 %3500  ;;  %v3510_v23 = vsub.f32 1.0, %v7720_v30 }
0x13c3   : > { %v3503_v58 = vmul.f32 %v7720_v30, %v3501_v41  ;;  %v3836_v30 = vld [vmem:[#allocation16 + $0x18] sm:$0xff] }
0x13c4   : > { %3606 = vrot.lane.b32.xlu0 %v3604_v5, %s6072_s24  ;;  %v3617_v5 = vmul.f32 %v7718_v10, %v7689_v36  ;;  %v3624_v36 = vsel %vm2392_vm3, %v7651_v7, %v7643_v51  ;;  %v3834_v51 = vld [vmem:[#allocation16 + $0x8] sm:$0xff]  ;;  %v3833_v7 = vld [vmem:[#allocation16] sm:$0xff] }
0x13c5   : > { %3505 = vrot.lane.b32.xlu1 %v3503_v58, %s6072_s24 }
0x1436   : > { %v3607_v61 = vpop.permute.xlu0 %3606 }
0x1437   : > { %v3609_v21 = vadd.f32 %v3607_v61, %v7710_v46  ;;  %v3506_v1 = vpop.permute.xlu1 %3505  ;;  %v3679_v46 = vld [vmem:[%s7992_s17 + $0x128] sm:$0xff]  ;;  %v3992_v61 = vld [vmem:[#allocation17] sm:$0xff] }
0x1438   : > { %v3508_v26 = vadd.f32 %v3506_v1, %v7714_v48  ;;  %5278 = vmatpush3.msra.mxu0 %v3679_v46 }
0x1439   : > { %5621 = vtanh.f32 %v3609_v21  ;;  %5279 = vmatprep.subr.mxu0 %v8120_v18  ;;  %v4612_v21 = vld [vmem:[%s8156_s4] ss:$0 sm:$0xff] }
0x143a   : > { %5623 = vtanh.f32 %v3508_v26  ;;  %5280 = vmatpush3.msra.mxu0 %v3678_v52 }
0x143b   : > { %5281 = vmatprep.subr.mxu0 %v8120_v18 }
0x143c   : > { %5282 = vmatpush3.msra.mxu0 %v3677_v9 }
0x143d   : > { %5283 = vmatprep.subr.mxu0 %v8120_v18 }
0x143e   : > { %5284 = vmatpush3.msra.mxu0 %v3676_v6 }
0x143f   : > { %5285 = vmatprep.subr.mxu0 %v8120_v18 }
0x1440   : > { %5286 = vmatpush3.msra.mxu0 %v3675_v35 }
0x1441   : > { %5287 = vmatprep.subr.mxu0 %v8120_v18 }
0x1442   : > { %5288 = vmatpush3.msra.mxu0 %v3674_v54 }
0x1443   : > { %5292 = vmatprep.subr.mxu0 %v8120_v18 }
0x1446   : > { %v5622_v48 = vpop.eup %5621 }
0x1447   : > { %v5624_v49 = vpop.eup %5623  ;;  %3613 = vrot.lane.b32.xlu0 %v5622_v48, %s6074_s20 }
0x1448   : > { %3512 = vrot.lane.b32.xlu1 %v5624_v49, %s6074_s20 }
0x144c   : > { %5493 = vrot.lane.b32.xlu1 %v5492_v39, %s6072_s24 }
0x14b9   : > { %v3614_v57 = vpop.permute.xlu0 %3613 }
0x14ba   : > { %v3616_v41 = vmul.f32 %v3614_v57, %v3611_v56  ;;  %v3513_v58 = vpop.permute.xlu1 %3512 }
0x14bb   : > { %v3515_v60 = vmul.f32 %v3513_v58, %v3510_v23 }
0x14bc   : > { %v3618_v4 = vadd.f32 %v3617_v5, %v3616_v41 }
0x14bd   : > { %v3517_v8 = vadd.f32 %v3516_v59, %v3515_v60 }
0x14be   : > { %v5494_v11 = vpop.permute.xlu1 %5493  ;;  %v3620_v13 = vsel %vm2392_vm3, %v7557_v62, %v3618_v4 }
0x14bf   : > { %v5496_v0 = vunpack.i.h.bf16 %v5494_v11  ;;  %v5495_v28 = vunpack.i.l.bf16 %v5494_v11  ;;  %3628 = vrot.lane.b32.xlu0 %v3517_v8, %s6074_s20  ;;  %s8158_s20 = sld [smem:[#allocation75_spill]] }
0x14c1   : > { %v3641_v10 = vsel %vm1113_vm2, %v3624_v36, %v5495_v28  ;;  %v3640_v38 = vsel %vm1113_vm2, %v3620_v13, %v5496_v0 }
0x14c2   : > { %3756 = vmatprep.mubr.f32.mxu1 %v3641_v10 }
0x14c3   : > { %3757 = vmatmul.mubr.f32.vlgmr.msra.gmra.mxu1 %v3640_v38 }
0x14c4   : > { %5321 = vmatprep.mubr.msk.f32.mxu1 %vm6071_vm0, %v8120_v18 }
0x14c5   : > { %v4615_v43 = vld [vmem:[%s8158_s20] ss:$0 sm:$0xff] }
0x1531   : > { %v3629_v37 = vpop.permute.xlu0 %3628 }
0x1532   : > { %v3631_v62 = vsel %vm2392_vm3, %v3629_v37, %v7549_v27 }
0x1533   : > { %5290 = vmatmul.mubr.msk.f32.vlgmr.msra.gmra.mxu0 %vm1113_vm2, %v3631_v62 }
0x1534   : > { %5293 = vmatpush3.msra.mxu0 %v3836_v30  ;;  %5300 = vmatprep.mubr.msk.f32.mxu0 %vm6071_vm0, %v8120_v18 }
0x1535   : > { %5294 = vmatprep.subr.mxu0 %v8120_v18 }
0x1536   : > { %5295 = vmatpush3.msra.mxu0 %v3835_v31 }
0x1537   : > { %5296 = vmatprep.subr.mxu0 %v8120_v18 }
0x1538   : > { %5297 = vmatpush3.msra.mxu0 %v3834_v51 }
0x1539   : > { %5298 = vmatprep.subr.mxu0 %v8120_v18 }
0x153a   : > { %5299 = vmatpush3.msra.mxu0 %v3833_v7 }
0x153b   : > { %5303 = vmatprep.subr.mxu0 %v8120_v18 }
0x1583   : > { %v4842_v27 = vpop.f32.mrf.mxu1 }
0x1585   : > { %v4843_v12 = vpop.f32.mrf.mxu1 }
0x1586   : > { %v4844_v19 = vadd.f32 %v4843_v12, %v4842_v27 }
0x1588   : > { %v3759_v55 = vadd.f32 %v4844_v19, %v4609_v47 }
0x15f3   : > { %v3828_v29 = vpop.f32.mrf.mxu0 }
0x15f4   : > { %v3829_v15 = vadd.f32 %v3828_v29, %v3759_v55 }
0x15f5   : > { %v5291_v53 = vpop.f32.mrf.mxu0 }
0x15f6   : > { %5301 = vmatmul.mubr.msk.f32.vlgmr.msra.gmra.mxu0 %vm2392_vm3, %v3829_v15 }
0x15f7   : > { %5305 = vmatprep.mubr.msk.f32.mxu0 %vm6071_vm0, %v8120_v18 }
0x16b6   : > { %v3906_v63 = vpop.f32.mrf.mxu0 }
0x16b7   : > { %5304 = vmatpush3.msra.mxu0 %v3906_v63 }
0x16b8   : > { %v5302_v44 = vpop.f32.mrf.mxu0  ;;  %5306 = vmatmul.mubr.msk.f32.vlgmr.msra.gmra.mxu0 %vm3917_vm4, %v3832_v17  ;;  %5308 = vmatprep.subr.mxu0 %v8120_v18 }
0x16b9   : > { %5309 = vmatpush3.msra.mxu0 %v3995_v2  ;;  %5316 = vmatprep.mubr.msk.f32.mxu0 %vm6071_vm0, %v8120_v18 }
0x16ba   : > { %5310 = vmatprep.subr.mxu0 %v8120_v18 }
0x16bb   : > { %5311 = vmatpush3.msra.mxu0 %v3994_v50 }
0x16bc   : > { %5312 = vmatprep.subr.mxu0 %v8120_v18 }
0x16bd   : > { %5313 = vmatpush3.msra.mxu0 %v3993_v20 }
0x16be   : > { %5314 = vmatprep.subr.mxu0 %v8120_v18 }
0x16bf   : > { %5315 = vmatpush3.msra.mxu0 %v3992_v61 }
0x16c0   : > { %5335 = vmatprep.subr.mxu0 %v8120_v18 }
0x1778   : > { %v3987_v1 = vpop.f32.mrf.mxu0 }
0x1779   : > { %v3988_v26 = vadd.f32 %v4612_v21, %v3987_v1 }
0x177a   : > { %v5307_v33 = vpop.f32.mrf.mxu0 }
0x177b   : > { %v3991_v24 = vmax.f32 %v3988_v26, 0.0 }
0x177d   : > { %5317 = vmatmul.mubr.msk.f32.vlgmr.msra.gmra.mxu0 %vm2392_vm3, %v3991_v24 }
0x177e   : > { %5337 = vmatprep.mubr.msk.f32.mxu0 %vm6071_vm0, %v8120_v18 }
0x183d   : > { %v4065_v34 = vpop.f32.mrf.mxu0 }
0x183e   : > { %5320 = vmatpush3.msra.mxu1 %v4065_v34 }
0x183f   : > { %v5318_v22 = vpop.f32.mrf.mxu0  ;;  %5322 = vmatmul.mubr.msk.f32.vlgmr.msra.gmra.mxu1 %vm3917_vm4, %v3832_v17  ;;  %5324 = vmatprep.subr.mxu1 %v8120_v18 }
0x1840   : > { %5325 = vmatpush3.msra.mxu1 %v4150_v3  ;;  %5332 = vmatprep.mubr.msk.f32.mxu1 %vm6071_vm0, %v8120_v18 }
0x1841   : > { %5326 = vmatprep.subr.mxu1 %v8120_v18 }
0x1842   : > { %5327 = vmatpush3.msra.mxu1 %v4149_v14 }
0x1843   : > { %5328 = vmatprep.subr.mxu1 %v8120_v18 }
0x1844   : > { %5329 = vmatpush3.msra.mxu1 %v4148_v40 }
0x1845   : > { %5330 = vmatprep.subr.mxu1 %v8120_v18  ;;  %v4618_v18 = vld [vmem:[#allocation19] ss:$0 sm:$0xff] }
0x1846   : > { %5331 = vmatpush3.msra.mxu1 %v4147_v42 }
0x18ff   : > { %v4142_v45 = vpop.f32.mrf.mxu1 }
0x1900   : > { %v4143_v25 = vadd.f32 %v4615_v43, %v4142_v45 }
0x1901   : > { %v5323_v46 = vpop.f32.mrf.mxu1 }
0x1902   : > { %v4146_v48 = vmax.f32 %v4143_v25, 0.0 }
0x1904   : > { %5333 = vmatmul.mubr.msk.f32.vlgmr.msra.gmra.mxu1 %vm2392_vm3, %v4146_v48 }
0x19c4   : > { %v4220_v49 = vpop.f32.mrf.mxu1 }
0x19c5   : > { %5336 = vmatpush3.msra.mxu0 %v4220_v49 }
0x19c6   : > { %v5334_v16 = vpop.f32.mrf.mxu1  ;;  %5338 = vmatmul.mubr.msk.f32.vlgmr.msra.gmra.mxu0 %vm3917_vm4, %v3832_v17 }
0x1a86   : > { %v4297_v52 = vpop.f32.mrf.mxu0 }
0x1a87   : > { %v4298_v32 = vadd.f32 %v4618_v18, %v4297_v52 }
0x1a88   : > { %v5339_v9 = vpop.f32.mrf.mxu0 }
0x1a89   : > { %v4302_v39 = vsel %vm4301_vm5, %v4298_v32, -inf }
0x1a8a   : > { %v4303_v6 = vrot.slane %v4302_v39, 4 }
0x1a8c   : > { %v4304_v35 = vmax.f32 %v4302_v39, %v4303_v6 }
0x1a8e   : > { %v4305_v54 = vrot.slane %v4304_v35, 2 }
0x1a90   : > { %v4306_v56 = vmax.f32 %v4304_v35, %v4305_v54 }
0x1a92   : > { %v4307_v57 = vrot.slane %v4306_v56, 1 }
0x1a94   : > { %v4308_v23 = vmax.f32 %v4306_v56, %v4307_v57 }
0x1a96   : > { %v4309_v5 = vsel %vm4301_vm5, %v4308_v23, -inf }
0x1a97   : > { %4310 = vmax.xlane.f32.xlu1 %v4309_v5 }
0x1b20   : > { %v4311_v41 = vpop.xlane.xlu1 %4310 }
0x1b21   : > { %v4312_v58 = vsub.f32 %v4308_v23, %v4311_v41 }
0x1b23   : > { %v4313_v59 = vmul.f32 1.442695, %v4312_v58 }
0x1b25   : > { %5625 = vpow2.f32 %v4313_v59 }
0x1b32   : > { %v5626_v60 = vpop.eup %5625 }
0x1b33   : > { %v4315_v4 = vsel %vm4301_vm5, %v5626_v60, 0.0 }
0x1b34   : > { %4316 = vadd.xlane.f32.xlu0 %v4315_v4 }
0x1bbd   : > { %v4317_v8 = vpop.xlane.xlu0 %4316 }
0x1bbe   : > { %5627 = vrcp.f32 %v4317_v8 }
0x1bcb   : > { %v5628_v11 = vpop.eup %5627 }
0x1bcc   : > { %v4319_v13 = vmul.f32 %v5628_v11, %v5626_v60 }
0x1bce   : > { %4321 = vst.msk [vmem:[%s958_s1] sm:$0x1] %vm4320_vm6, %v4319_v13 }
0x1bcf   : > { %5978 = shalt.err (!%p5975_p11)
}
0x1bd0   : > { %s5979_s14 = scalar_lea.hbm %s4333_s21, 16  ;;  %s5983_s24 = scalar_lea.hbm %s8159_s8, 32 }
0x1bd1   : > { %p5980_p12 = scmp.ne.s32.totalorder %s4333_s21, %s5979_s14  ;;  %p5984_p8 = scmp.lt.s32.totalorder %s4333_s21, %s8159_s8 }
0x1bd2   : > { %p5985_p9 = scmp.lt.s32.totalorder %s5983_s24, %s5979_s14 }
0x1bd3   : > { %p5981_p13 = pnand %p5980_p12, %p8160_p4 }
0x1bd4   : > { %p5986_p1 = por %p5985_p9, %p5984_p8 }
0x1bd5   : > { %p5982_p2 = pneg %p5981_p13 }
0x1bd7   : > { %p5987_p3 = pnand %p5986_p1, %p5982_p2 }
0x1bd9   : > { %5990 = shalt.err (!%p5987_p3)
}
0x1bda   : > { %5381 = dma.vmem_to_hbm [thread:$0]  (%p8160_p4), %s4336_s23, 16, %s4333_s21, %s4323_s18  }
0x1bdb PF: > { %s4347_s1 = sand.u32 1, %s6041_s29   ;;  %p8161_p10 = scmp.ne.s32.totalorder %s8074_s22, 0 }
0x1bdc   : > { %p8162_p7 = scmp.ge.s32.totalorder %s6053_s30, 2  ;;  %s4348_s4 = scalar_lea.sflag [#allocation4], %s4347_s1 }
0x1bde   : > { %p5419_p0 = pnand %p8162_p7, %p8161_p10 }
0x1be0   : > { %p5420_p6 = pneg %p5419_p0 }
0x1be2   : > { %6036 = dma.done.wait (%p5420_p6), %s4348_s4, 16  }
0x1be3   : > { %6038 = vsyncadd (%p5420_p6), %s4348_s4, 4294967280  ;;  %s8163_s30 = sld [smem:[#allocation30_spill]]  ;;  %s8166_s29 = smov %s6045_s2 }
0x1be4   : > { %s8164_s9 = sld [smem:[#allocation29_spill]] }
0x1be5   : > { %s8165_s6 = sld [smem:[#allocation31_spill]] }
0x1be9   : > { %p45_p5 = scmp.ge.s32.totalorder %s8163_s30, 4  }
0x1bea   : > { %s8167_s2 = smov %s8164_s9 }
0x1beb   :  { %47 = sbr.rel (!%p45_p5) target bundleno = 33 (0x21), region = 217 }
0x1bf0   :  { %4352 = vsyncpa [#allocation3], 1 }
0x1bf1   :  { %4354 = vsyncpa [#allocation3 + $0x1], 1 }
0x1bf2   :  { %4355 = vsyncpa [#allocation6], 1 }
0x1bf3   :  { %4357 = vsyncpa [#allocation6 + $0x1], 1 }
0x1bf4   :  { %4358 = vsyncpa [#allocation9], 1 }
0x1bf5   :  { %4359 = vsyncpa [#allocation12], 1 }
0x1bf6   :  { %4360 = vsyncpa [#allocation15], 1 }
0x1bf7   :  { %4361 = vsyncpa [#allocation18], 1 }
0x1bf8   :  { %4362 = vsyncpa [#allocation4], 1 }
0x1bf9   :  { %4364 = vsyncpa [#allocation4 + $0x1], 1 }

</bundles_post_ra>
